<compile_context>
chip_gen: v7x
topology: tpu7x:2x2x1
jax: 0.10.0
libtpu: 0.0.40
codegen_flags: <defaults>
</compile_context>

<pallas_src>
import jax
import jax.numpy as jnp
import numpy as np
from jax import lax
from jax.experimental import pallas as pl
from jax.experimental.pallas import tpu as pltpu


def _upsample2x_nearest(v):
    """2x nearest upsample of an (H, W, C) value inside the kernel.

    Built only from lane-preserving broadcasts and leading<->sublane reshapes
    (last dim is never changed by a reshape), so it lowers robustly in Mosaic.
    out[p, q, c] == v[p // 2, q // 2, c].
    """
    H, W, C = v.shape
    # width x2: duplicate every pixel along the flattened (H*W) axis.
    f = v.reshape(H * W, C)
    f = jnp.broadcast_to(f[:, None, :], (H * W, 2, C)).reshape(H * W * 2, C)
    v = f.reshape(H, 2 * W, C)
    # height x2: duplicate rows via a leading-dim broadcast.
    v = jnp.broadcast_to(v[:, None, :, :], (H, 2, 2 * W, C)).reshape(2 * H, 2 * W, C)
    return v


def _make_decoder_kernel(num_layers):
    """Kernel processing ONE batch element: all decoder layers fused in VMEM."""

    def kernel(*refs):
        x_ref = refs[0]                                      # (H0, W0, C0) bf16
        skip_refs = refs[1:1 + num_layers]                   # per-layer skips, bf16
        wb_refs = refs[1 + num_layers:1 + 3 * num_layers]    # w0,b0,w1,b1,...
        o_ref = refs[1 + 3 * num_layers]                     # (H, W*Cout) f32
        pad_refs = refs[2 + 3 * num_layers:]                 # per-layer halo scratch

        act = x_ref[...].astype(jnp.float32)                 # f32 staging in VMEM
        for i in range(num_layers):
            s_ref = skip_refs[i]
            w_ref = wb_refs[2 * i]                           # (9*Cin, Cout) bf16
            b_ref = wb_refs[2 * i + 1]                       # (1, Cout) f32
            cp_ref = pad_refs[i]                             # (H+2, W+2, Cin) f32
            H, W, _ = s_ref.shape
            cout = w_ref.shape[-1]

            # --- fused upsample(x2 nearest) + channel concat (torch cat dim=1) ---
            up = _upsample2x_nearest(act)                    # (H, W, Cx)
            cat = jnp.concatenate(
                [up, s_ref[...].astype(jnp.float32)], axis=-1)   # (H, W, Cin)
            cin = cat.shape[-1]

            # --- zero only the 1-px halo border; interior is overwritten below.
            # Cheaper than clearing the whole scratch and valid on every grid
            # iteration (no reliance on iteration 0 having run on this core).
            zrow = jnp.zeros((1, W + 2, cin), jnp.float32)
            zcol = jnp.zeros((H + 2, 1, cin), jnp.float32)
            cp_ref[0:1, :, :] = zrow
            cp_ref[H + 1:H + 2, :, :] = zrow
            cp_ref[:, 0:1, :] = zcol
            cp_ref[:, W + 1:W + 2, :] = zcol
            cp_ref[1:H + 1, 1:W + 1, :] = cat

            # --- im2col: 9 window reads -> ONE (H*W, 9*Cin) @ (9*Cin, Cout) matmul
            patches = jnp.concatenate(
                [cp_ref[dy:dy + H, dx:dx + W, :].reshape(H * W, cin)
                 for dy in range(3) for dx in range(3)], axis=-1)
            y = jnp.dot(patches.astype(jnp.bfloat16), w_ref[...],
                        preferred_element_type=jnp.float32)     # f32 accumulation
            y = jnp.maximum(y + b_ref[...], 0.0)                # bias + ReLU, f32

            if i + 1 < num_layers:
                act = y.reshape(H, W, cout)      # stays VMEM-resident for next layer
            else:
                # lane-dense store: (H, W*cout); here W*cout == 128.
                # (built by lane-concat over W; avoids a minor-dim-changing
                #  reshape, which Mosaic may not lower.)
                y3 = y.reshape(H, W, cout)
                o_ref[...] = jnp.concatenate(
                    [y3[:, w, :] for w in range(W)], axis=-1)

    return kernel


def decoder_forward(x, encoder_filters, params):
    """Decoder.forward (UPSAMPLE_NEAREST, attention=False) as one pallas_call.

    x:               (N, H0, W0, C0)  f32, NHWC bottleneck activation
    encoder_filters: list of NHWC skip tensors (one per decoder layer)
    params:          list of (w: (3,3,Cin,Cout) HWIO, b: (Cout,)) per layer
    """
    num_layers = len(params)
    N = x.shape[0]
    H_out, W_out = encoder_filters[-1].shape[1], encoder_filters[-1].shape[2]
    c_out = params[-1][0].shape[-1]

    # bf16 MXU/DMA operands; accumulation stays f32 inside the kernel.
    xb = x.astype(jnp.bfloat16)
    skips = [s.astype(jnp.bfloat16) for s in encoder_filters]

    flat_inputs = [xb] + skips
    in_specs = [pl.BlockSpec((None,) + xb.shape[1:], lambda n: (n, 0, 0, 0))]
    in_specs += [pl.BlockSpec((None,) + s.shape[1:], lambda n: (n, 0, 0, 0))
                 for s in skips]
    scratch = []
    for i, (w, b) in enumerate(params):
        kh, kw, cin, cout = w.shape
        wm = w.reshape(kh * kw * cin, cout).astype(jnp.bfloat16)  # im2col weight
        bm = b.reshape(1, cout).astype(jnp.float32)
        flat_inputs += [wm, bm]
        # Constant index_map -> Pallas elides the re-DMA on later grid steps.
        in_specs += [pl.BlockSpec(wm.shape, lambda n: (0, 0)),
                     pl.BlockSpec(bm.shape, lambda n: (0, 0))]
        h_i = encoder_filters[i].shape[1]
        w_i = encoder_filters[i].shape[2]
        scratch.append(pltpu.VMEM((h_i + 2, w_i + 2, cin), jnp.float32))

    out = pl.pallas_call(
        _make_decoder_kernel(num_layers),
        out_shape=jax.ShapeDtypeStruct((N, H_out, W_out * c_out), jnp.float32),
        grid_spec=pltpu.PrefetchScalarGridSpec(
            num_scalar_prefetch=0,
            grid=(N,),                       # batch axis -> both TCs on v7x
            in_specs=in_specs,
            out_specs=pl.BlockSpec((None, H_out, W_out * c_out),
                                   lambda n: (n, 0, 0)),
            scratch_shapes=scratch,
        ),
        compiler_params=pltpu.CompilerParams(
            dimension_semantics=("parallel",)),
    )(*flat_inputs)
    # (N, H, W*Cout) -> (N, H, W, Cout): same row-major memory, free reshape.
    return out.reshape(N, H_out, W_out, c_out)


# ---------------------------------------------------------------------------
# Pure-JAX reference mirroring the kernel numerics (bf16 conv operands,
# f32 accumulation) for a tight correctness check.
# ---------------------------------------------------------------------------
def decoder_forward_ref(x, encoder_filters, params):
    a = x.astype(jnp.bfloat16).astype(jnp.float32)
    for i, (w, b) in enumerate(params):
        a = jnp.repeat(jnp.repeat(a, 2, axis=1), 2, axis=2)        # nearest x2
        s = encoder_filters[i].astype(jnp.bfloat16).astype(jnp.float32)
        a = jnp.concatenate([a, s], axis=-1)                       # cat dim=1 (NCHW)
        a_q = a.astype(jnp.bfloat16).astype(jnp.float32)           # MXU operand rounding
        w_q = w.astype(jnp.bfloat16).astype(jnp.float32)
        y = lax.conv_general_dilated(
            a_q, w_q, window_strides=(1, 1), padding=((1, 1), (1, 1)),
            dimension_numbers=("NHWC", "HWIO", "NHWC"))
        a = jnp.maximum(y + b[None, None, None, :], 0.0)
    return a


if __name__ == "__main__":
    key = jax.random.PRNGKey(0)
    k_x, k_skip, k_par = jax.random.split(key, 3)

    # U-Net style decoder: channels decrease, encoder_channels increase.
    channels = [32, 16, 8]
    encoder_channels = [8, 16, 32]
    N, H0, W0 = 2, 4, 4

    # Bottleneck input x: NHWC (2, 4, 4, 32)   [torch NCHW: (2, 32, 4, 4)]
    x = jax.random.normal(k_x, (N, H0, W0, channels[0]), jnp.float32)

    encoder_filters = []
    params = []
    for i in range(len(channels) - 1):
        skip_c = encoder_channels[-i - 2]
        hw = H0 * (2 ** (i + 1))
        encoder_filters.append(
            jax.random.normal(jax.random.fold_in(k_skip, i),
                              (N, hw, hw, skip_c), jnp.float32))
        cin = channels[i] + skip_c       # UPSAMPLE mode: channels[i + 0] + skip
        cout = channels[i + 1]
        w = 0.1 * jax.random.normal(jax.random.fold_in(k_par, 2 * i),
                                    (3, 3, cin, cout), jnp.float32)
        b = 0.1 * jax.random.normal(jax.random.fold_in(k_par, 2 * i + 1),
                                    (cout,), jnp.float32)
        params.append((w, b))

    out = decoder_forward(x, encoder_filters, params)
    out = jax.block_until_ready(out)
    assert out.shape == (N, H0 * 4, W0 * 4, channels[-1])

    ref = decoder_forward_ref(x, encoder_filters, params)
    # bf16 MXU operands (mirrored in the reference) -> loosened tolerance.
    np.testing.assert_allclose(np.asarray(out), np.asarray(ref),
                               rtol=1e-2, atol=1e-2)
    print("KERNEL_OK")
</pallas_src>

<mosaic_0001>
module attributes {stable_mosaic.version = 11 : i64} {
  func.func @kernel(%arg0: i32, %arg1: memref<1x4x4x32xbf16, #tpu.memory_space<vmem>>, %arg2: memref<1x8x8x16xbf16, #tpu.memory_space<vmem>>, %arg3: memref<1x16x16x8xbf16, #tpu.memory_space<vmem>>, %arg4: memref<432x16xbf16, #tpu.memory_space<vmem>>, %arg5: memref<1x16xf32, #tpu.memory_space<vmem>>, %arg6: memref<216x8xbf16, #tpu.memory_space<vmem>>, %arg7: memref<1x8xf32, #tpu.memory_space<vmem>>, %arg8: memref<1x16x128xf32, #tpu.memory_space<vmem>>, %arg9: memref<10x10x48xf32, #tpu.memory_space<vmem>>, %arg10: memref<18x18x24xf32, #tpu.memory_space<vmem>>) attributes {dimension_semantics = [#tpu.dimension_semantics<parallel>], iteration_bounds = array<i64: 2>, scalar_prefetch = 0 : i64, scratch_operands = 2 : i64, tpu.core_type = #tpu.core_type<tc>, window_params = [{transform_indices = @transform_0, window_bounds = array<i64: 1, 4, 4, 32>}, {transform_indices = @transform_1, window_bounds = array<i64: 1, 8, 8, 16>}, {transform_indices = @transform_2, window_bounds = array<i64: 1, 16, 16, 8>}, {pipeline_mode = #tpu.pipeline_mode<synchronous>, transform_indices = @transform_3, window_bounds = array<i64: 432, 16>}, {pipeline_mode = #tpu.pipeline_mode<synchronous>, transform_indices = @transform_4, window_bounds = array<i64: 1, 16>}, {pipeline_mode = #tpu.pipeline_mode<synchronous>, transform_indices = @transform_5, window_bounds = array<i64: 216, 8>}, {pipeline_mode = #tpu.pipeline_mode<synchronous>, transform_indices = @transform_6, window_bounds = array<i64: 1, 8>}, {transform_indices = @transform_7, window_bounds = array<i64: 1, 16, 128>}]} {
    %c0 = arith.constant 0 : index
    %c0_0 = arith.constant 0 : index
    %c0_1 = arith.constant 0 : index
    %c0_2 = arith.constant 0 : index
    %0 = vector.load %arg1[%c0, %c0_0, %c0_1, %c0_2] : memref<1x4x4x32xbf16, #tpu.memory_space<vmem>>, vector<1x4x4x32xbf16>
    %1 = vector.shape_cast %0 : vector<1x4x4x32xbf16> to vector<4x4x32xbf16>
    %2 = arith.extf %1 : vector<4x4x32xbf16> to vector<4x4x32xf32>
    %3 = vector.shape_cast %2 : vector<4x4x32xf32> to vector<16x32xf32>
    %4 = vector.shape_cast %3 : vector<16x32xf32> to vector<16x1x32xf32>
    %5 = vector.shape_cast %4 : vector<16x1x32xf32> to vector<16x1x32xf32>
    %6 = vector.broadcast %5 : vector<16x1x32xf32> to vector<16x2x32xf32>
    %7 = vector.shape_cast %6 : vector<16x2x32xf32> to vector<32x32xf32>
    %8 = vector.shape_cast %7 : vector<32x32xf32> to vector<4x8x32xf32>
    %9 = vector.shape_cast %8 : vector<4x8x32xf32> to vector<4x1x8x32xf32>
    %10 = vector.shape_cast %9 : vector<4x1x8x32xf32> to vector<4x1x8x32xf32>
    %11 = vector.broadcast %10 : vector<4x1x8x32xf32> to vector<4x2x8x32xf32>
    %12 = vector.shape_cast %11 : vector<4x2x8x32xf32> to vector<8x8x32xf32>
    %c0_3 = arith.constant 0 : index
    %c0_4 = arith.constant 0 : index
    %c0_5 = arith.constant 0 : index
    %c0_6 = arith.constant 0 : index
    %13 = vector.load %arg2[%c0_3, %c0_4, %c0_5, %c0_6] : memref<1x8x8x16xbf16, #tpu.memory_space<vmem>>, vector<1x8x8x16xbf16>
    %14 = vector.shape_cast %13 : vector<1x8x8x16xbf16> to vector<8x8x16xbf16>
    %15 = arith.extf %14 : vector<8x8x16xbf16> to vector<8x8x16xf32>
    %16 = tpu.concatenate %12, %15 in 2 : vector<8x8x32xf32>, vector<8x8x16xf32> -> vector<8x8x48xf32>
    %cst = arith.constant 0.000000e+00 : f32
    %17 = vector.broadcast %cst : f32 to vector<1x10x48xf32>
    %cst_7 = arith.constant 0.000000e+00 : f32
    %18 = vector.broadcast %cst_7 : f32 to vector<10x1x48xf32>
    %c0_8 = arith.constant 0 : index
    %c0_9 = arith.constant 0 : index
    %c0_10 = arith.constant 0 : index
    %19 = vector.load %arg9[%c0_8, %c0_9, %c0_10] : memref<10x10x48xf32, #tpu.memory_space<vmem>>, vector<1x10x48xf32>
    tpu.vector_store %arg9[%c0_8, %c0_9, %c0_10], %17 {strides = array<i32>} : memref<10x10x48xf32, #tpu.memory_space<vmem>>, vector<1x10x48xf32>,
    %c9 = arith.constant 9 : index
    %c0_11 = arith.constant 0 : index
    %c0_12 = arith.constant 0 : index
    %20 = vector.load %arg9[%c9, %c0_11, %c0_12] : memref<10x10x48xf32, #tpu.memory_space<vmem>>, vector<1x10x48xf32>
    tpu.vector_store %arg9[%c9, %c0_11, %c0_12], %17 {strides = array<i32>} : memref<10x10x48xf32, #tpu.memory_space<vmem>>, vector<1x10x48xf32>,
    %c0_13 = arith.constant 0 : index
    %c0_14 = arith.constant 0 : index
    %c0_15 = arith.constant 0 : index
    %21 = vector.load %arg9[%c0_13, %c0_14, %c0_15] : memref<10x10x48xf32, #tpu.memory_space<vmem>>, vector<10x1x48xf32>
    tpu.vector_store %arg9[%c0_13, %c0_14, %c0_15], %18 {strides = array<i32>} : memref<10x10x48xf32, #tpu.memory_space<vmem>>, vector<10x1x48xf32>,
    %c0_16 = arith.constant 0 : index
    %c9_17 = arith.constant 9 : index
    %c0_18 = arith.constant 0 : index
    %22 = vector.load %arg9[%c0_16, %c9_17, %c0_18] : memref<10x10x48xf32, #tpu.memory_space<vmem>>, vector<10x1x48xf32>
    tpu.vector_store %arg9[%c0_16, %c9_17, %c0_18], %18 {strides = array<i32>} : memref<10x10x48xf32, #tpu.memory_space<vmem>>, vector<10x1x48xf32>,
    %c1 = arith.constant 1 : index
    %c1_19 = arith.constant 1 : index
    %c0_20 = arith.constant 0 : index
    %23 = vector.load %arg9[%c1, %c1_19, %c0_20] : memref<10x10x48xf32, #tpu.memory_space<vmem>>, vector<8x8x48xf32>
    tpu.vector_store %arg9[%c1, %c1_19, %c0_20], %16 {strides = array<i32>} : memref<10x10x48xf32, #tpu.memory_space<vmem>>, vector<8x8x48xf32>,
    %c0_21 = arith.constant 0 : index
    %c0_22 = arith.constant 0 : index
    %c0_23 = arith.constant 0 : index
    %24 = vector.load %arg9[%c0_21, %c0_22, %c0_23] : memref<10x10x48xf32, #tpu.memory_space<vmem>>, vector<8x8x48xf32>
    %25 = vector.shape_cast %24 : vector<8x8x48xf32> to vector<64x48xf32>
    %c0_24 = arith.constant 0 : index
    %c1_25 = arith.constant 1 : index
    %c0_26 = arith.constant 0 : index
    %26 = vector.load %arg9[%c0_24, %c1_25, %c0_26] : memref<10x10x48xf32, #tpu.memory_space<vmem>>, vector<8x8x48xf32>
    %27 = vector.shape_cast %26 : vector<8x8x48xf32> to vector<64x48xf32>
    %c0_27 = arith.constant 0 : index
    %c2 = arith.constant 2 : index
    %c0_28 = arith.constant 0 : index
    %28 = vector.load %arg9[%c0_27, %c2, %c0_28] : memref<10x10x48xf32, #tpu.memory_space<vmem>>, vector<8x8x48xf32>
    %29 = vector.shape_cast %28 : vector<8x8x48xf32> to vector<64x48xf32>
    %c1_29 = arith.constant 1 : index
    %c0_30 = arith.constant 0 : index
    %c0_31 = arith.constant 0 : index
    %30 = vector.load %arg9[%c1_29, %c0_30, %c0_31] : memref<10x10x48xf32, #tpu.memory_space<vmem>>, vector<8x8x48xf32>
    %31 = vector.shape_cast %30 : vector<8x8x48xf32> to vector<64x48xf32>
    %c1_32 = arith.constant 1 : index
    %c1_33 = arith.constant 1 : index
    %c0_34 = arith.constant 0 : index
    %32 = vector.load %arg9[%c1_32, %c1_33, %c0_34] : memref<10x10x48xf32, #tpu.memory_space<vmem>>, vector<8x8x48xf32>
    %33 = vector.shape_cast %32 : vector<8x8x48xf32> to vector<64x48xf32>
    %c1_35 = arith.constant 1 : index
    %c2_36 = arith.constant 2 : index
    %c0_37 = arith.constant 0 : index
    %34 = vector.load %arg9[%c1_35, %c2_36, %c0_37] : memref<10x10x48xf32, #tpu.memory_space<vmem>>, vector<8x8x48xf32>
    %35 = vector.shape_cast %34 : vector<8x8x48xf32> to vector<64x48xf32>
    %c2_38 = arith.constant 2 : index
    %c0_39 = arith.constant 0 : index
    %c0_40 = arith.constant 0 : index
    %36 = vector.load %arg9[%c2_38, %c0_39, %c0_40] : memref<10x10x48xf32, #tpu.memory_space<vmem>>, vector<8x8x48xf32>
    %37 = vector.shape_cast %36 : vector<8x8x48xf32> to vector<64x48xf32>
    %c2_41 = arith.constant 2 : index
    %c1_42 = arith.constant 1 : index
    %c0_43 = arith.constant 0 : index
    %38 = vector.load %arg9[%c2_41, %c1_42, %c0_43] : memref<10x10x48xf32, #tpu.memory_space<vmem>>, vector<8x8x48xf32>
    %39 = vector.shape_cast %38 : vector<8x8x48xf32> to vector<64x48xf32>
    %c2_44 = arith.constant 2 : index
    %c2_45 = arith.constant 2 : index
    %c0_46 = arith.constant 0 : index
    %40 = vector.load %arg9[%c2_44, %c2_45, %c0_46] : memref<10x10x48xf32, #tpu.memory_space<vmem>>, vector<8x8x48xf32>
    %41 = vector.shape_cast %40 : vector<8x8x48xf32> to vector<64x48xf32>
    %42 = tpu.concatenate %25, %27, %29, %31, %33, %35, %37, %39, %41 in 1 : vector<64x48xf32>, vector<64x48xf32>, vector<64x48xf32>, vector<64x48xf32>, vector<64x48xf32>, vector<64x48xf32>, vector<64x48xf32>, vector<64x48xf32>, vector<64x48xf32> -> vector<64x432xf32>
    %43 = arith.truncf %42 : vector<64x432xf32> to vector<64x432xbf16>
    %c0_47 = arith.constant 0 : index
    %c0_48 = arith.constant 0 : index
    %44 = vector.load %arg4[%c0_47, %c0_48] : memref<432x16xbf16, #tpu.memory_space<vmem>>, vector<432x16xbf16>
    %cst_49 = arith.constant dense<0.000000e+00> : vector<64x16xf32>
    %45 = tpu.matmul %43, %44, %cst_49 {dimension_numbers = #tpu.dot_dimension_numbers<[1], [0], [0], [1], [0, 0, 1, 1], [], []>} : vector<64x432xbf16>, vector<432x16xbf16>, vector<64x16xf32> -> vector<64x16xf32>
    %c0_50 = arith.constant 0 : index
    %c0_51 = arith.constant 0 : index
    %46 = vector.load %arg5[%c0_50, %c0_51] : memref<1x16xf32, #tpu.memory_space<vmem>>, vector<1x16xf32>
    %47 = vector.broadcast %46 : vector<1x16xf32> to vector<64x16xf32>
    %48 = arith.addf %45, %47 : vector<64x16xf32>
    %cst_52 = arith.constant 0.000000e+00 : f32
    %49 = vector.broadcast %cst_52 : f32 to vector<64x16xf32>
    %50 = arith.maximumf %48, %49 : vector<64x16xf32>
    %51 = vector.shape_cast %50 : vector<64x16xf32> to vector<8x8x16xf32>
    %52 = vector.shape_cast %51 : vector<8x8x16xf32> to vector<64x16xf32>
    %53 = vector.shape_cast %52 : vector<64x16xf32> to vector<64x1x16xf32>
    %54 = vector.shape_cast %53 : vector<64x1x16xf32> to vector<64x1x16xf32>
    %55 = vector.broadcast %54 : vector<64x1x16xf32> to vector<64x2x16xf32>
    %56 = vector.shape_cast %55 : vector<64x2x16xf32> to vector<128x16xf32>
    %57 = vector.shape_cast %56 : vector<128x16xf32> to vector<8x16x16xf32>
    %58 = vector.shape_cast %57 : vector<8x16x16xf32> to vector<8x1x16x16xf32>
    %59 = vector.shape_cast %58 : vector<8x1x16x16xf32> to vector<8x1x16x16xf32>
    %60 = vector.broadcast %59 : vector<8x1x16x16xf32> to vector<8x2x16x16xf32>
    %61 = vector.shape_cast %60 : vector<8x2x16x16xf32> to vector<16x16x16xf32>
    %c0_53 = arith.constant 0 : index
    %c0_54 = arith.constant 0 : index
    %c0_55 = arith.constant 0 : index
    %c0_56 = arith.constant 0 : index
    %62 = vector.load %arg3[%c0_53, %c0_54, %c0_55, %c0_56] : memref<1x16x16x8xbf16, #tpu.memory_space<vmem>>, vector<1x16x16x8xbf16>
    %63 = vector.shape_cast %62 : vector<1x16x16x8xbf16> to vector<16x16x8xbf16>
    %64 = arith.extf %63 : vector<16x16x8xbf16> to vector<16x16x8xf32>
    %65 = tpu.concatenate %61, %64 in 2 : vector<16x16x16xf32>, vector<16x16x8xf32> -> vector<16x16x24xf32>
    %cst_57 = arith.constant 0.000000e+00 : f32
    %66 = vector.broadcast %cst_57 : f32 to vector<1x18x24xf32>
    %cst_58 = arith.constant 0.000000e+00 : f32
    %67 = vector.broadcast %cst_58 : f32 to vector<18x1x24xf32>
    %c0_59 = arith.constant 0 : index
    %c0_60 = arith.constant 0 : index
    %c0_61 = arith.constant 0 : index
    %68 = vector.load %arg10[%c0_59, %c0_60, %c0_61] : memref<18x18x24xf32, #tpu.memory_space<vmem>>, vector<1x18x24xf32>
    tpu.vector_store %arg10[%c0_59, %c0_60, %c0_61], %66 {strides = array<i32>} : memref<18x18x24xf32, #tpu.memory_space<vmem>>, vector<1x18x24xf32>,
    %c17 = arith.constant 17 : index
    %c0_62 = arith.constant 0 : index
    %c0_63 = arith.constant 0 : index
    %69 = vector.load %arg10[%c17, %c0_62, %c0_63] : memref<18x18x24xf32, #tpu.memory_space<vmem>>, vector<1x18x24xf32>
    tpu.vector_store %arg10[%c17, %c0_62, %c0_63], %66 {strides = array<i32>} : memref<18x18x24xf32, #tpu.memory_space<vmem>>, vector<1x18x24xf32>,
    %c0_64 = arith.constant 0 : index
    %c0_65 = arith.constant 0 : index
    %c0_66 = arith.constant 0 : index
    %70 = vector.load %arg10[%c0_64, %c0_65, %c0_66] : memref<18x18x24xf32, #tpu.memory_space<vmem>>, vector<18x1x24xf32>
    tpu.vector_store %arg10[%c0_64, %c0_65, %c0_66], %67 {strides = array<i32>} : memref<18x18x24xf32, #tpu.memory_space<vmem>>, vector<18x1x24xf32>,
    %c0_67 = arith.constant 0 : index
    %c17_68 = arith.constant 17 : index
    %c0_69 = arith.constant 0 : index
    %71 = vector.load %arg10[%c0_67, %c17_68, %c0_69] : memref<18x18x24xf32, #tpu.memory_space<vmem>>, vector<18x1x24xf32>
    tpu.vector_store %arg10[%c0_67, %c17_68, %c0_69], %67 {strides = array<i32>} : memref<18x18x24xf32, #tpu.memory_space<vmem>>, vector<18x1x24xf32>,
    %c1_70 = arith.constant 1 : index
    %c1_71 = arith.constant 1 : index
    %c0_72 = arith.constant 0 : index
    %72 = vector.load %arg10[%c1_70, %c1_71, %c0_72] : memref<18x18x24xf32, #tpu.memory_space<vmem>>, vector<16x16x24xf32>
    tpu.vector_store %arg10[%c1_70, %c1_71, %c0_72], %65 {strides = array<i32>} : memref<18x18x24xf32, #tpu.memory_space<vmem>>, vector<16x16x24xf32>,
    %c0_73 = arith.constant 0 : index
    %c0_74 = arith.constant 0 : index
    %c0_75 = arith.constant 0 : index
    %73 = vector.load %arg10[%c0_73, %c0_74, %c0_75] : memref<18x18x24xf32, #tpu.memory_space<vmem>>, vector<16x16x24xf32>
    %74 = vector.shape_cast %73 : vector<16x16x24xf32> to vector<256x24xf32>
    %c0_76 = arith.constant 0 : index
    %c1_77 = arith.constant 1 : index
    %c0_78 = arith.constant 0 : index
    %75 = vector.load %arg10[%c0_76, %c1_77, %c0_78] : memref<18x18x24xf32, #tpu.memory_space<vmem>>, vector<16x16x24xf32>
    %76 = vector.shape_cast %75 : vector<16x16x24xf32> to vector<256x24xf32>
    %c0_79 = arith.constant 0 : index
    %c2_80 = arith.constant 2 : index
    %c0_81 = arith.constant 0 : index
    %77 = vector.load %arg10[%c0_79, %c2_80, %c0_81] : memref<18x18x24xf32, #tpu.memory_space<vmem>>, vector<16x16x24xf32>
    %78 = vector.shape_cast %77 : vector<16x16x24xf32> to vector<256x24xf32>
    %c1_82 = arith.constant 1 : index
    %c0_83 = arith.constant 0 : index
    %c0_84 = arith.constant 0 : index
    %79 = vector.load %arg10[%c1_82, %c0_83, %c0_84] : memref<18x18x24xf32, #tpu.memory_space<vmem>>, vector<16x16x24xf32>
    %80 = vector.shape_cast %79 : vector<16x16x24xf32> to vector<256x24xf32>
    %c1_85 = arith.constant 1 : index
    %c1_86 = arith.constant 1 : index
    %c0_87 = arith.constant 0 : index
    %81 = vector.load %arg10[%c1_85, %c1_86, %c0_87] : memref<18x18x24xf32, #tpu.memory_space<vmem>>, vector<16x16x24xf32>
    %82 = vector.shape_cast %81 : vector<16x16x24xf32> to vector<256x24xf32>
    %c1_88 = arith.constant 1 : index
    %c2_89 = arith.constant 2 : index
    %c0_90 = arith.constant 0 : index
    %83 = vector.load %arg10[%c1_88, %c2_89, %c0_90] : memref<18x18x24xf32, #tpu.memory_space<vmem>>, vector<16x16x24xf32>
    %84 = vector.shape_cast %83 : vector<16x16x24xf32> to vector<256x24xf32>
    %c2_91 = arith.constant 2 : index
    %c0_92 = arith.constant 0 : index
    %c0_93 = arith.constant 0 : index
    %85 = vector.load %arg10[%c2_91, %c0_92, %c0_93] : memref<18x18x24xf32, #tpu.memory_space<vmem>>, vector<16x16x24xf32>
    %86 = vector.shape_cast %85 : vector<16x16x24xf32> to vector<256x24xf32>
    %c2_94 = arith.constant 2 : index
    %c1_95 = arith.constant 1 : index
    %c0_96 = arith.constant 0 : index
    %87 = vector.load %arg10[%c2_94, %c1_95, %c0_96] : memref<18x18x24xf32, #tpu.memory_space<vmem>>, vector<16x16x24xf32>
    %88 = vector.shape_cast %87 : vector<16x16x24xf32> to vector<256x24xf32>
    %c2_97 = arith.constant 2 : index
    %c2_98 = arith.constant 2 : index
    %c0_99 = arith.constant 0 : index
    %89 = vector.load %arg10[%c2_97, %c2_98, %c0_99] : memref<18x18x24xf32, #tpu.memory_space<vmem>>, vector<16x16x24xf32>
    %90 = vector.shape_cast %89 : vector<16x16x24xf32> to vector<256x24xf32>
    %91 = tpu.concatenate %74, %76, %78, %80, %82, %84, %86, %88, %90 in 1 : vector<256x24xf32>, vector<256x24xf32>, vector<256x24xf32>, vector<256x24xf32>, vector<256x24xf32>, vector<256x24xf32>, vector<256x24xf32>, vector<256x24xf32>, vector<256x24xf32> -> vector<256x216xf32>
    %92 = arith.truncf %91 : vector<256x216xf32> to vector<256x216xbf16>
    %c0_100 = arith.constant 0 : index
    %c0_101 = arith.constant 0 : index
    %93 = vector.load %arg6[%c0_100, %c0_101] : memref<216x8xbf16, #tpu.memory_space<vmem>>, vector<216x8xbf16>
    %cst_102 = arith.constant dense<0.000000e+00> : vector<256x8xf32>
    %94 = tpu.matmul %92, %93, %cst_102 {dimension_numbers = #tpu.dot_dimension_numbers<[1], [0], [0], [1], [0, 0, 1, 1], [], []>} : vector<256x216xbf16>, vector<216x8xbf16>, vector<256x8xf32> -> vector<256x8xf32>
    %c0_103 = arith.constant 0 : index
    %c0_104 = arith.constant 0 : index
    %95 = vector.load %arg7[%c0_103, %c0_104] : memref<1x8xf32, #tpu.memory_space<vmem>>, vector<1x8xf32>
    %96 = vector.broadcast %95 : vector<1x8xf32> to vector<256x8xf32>
    %97 = arith.addf %94, %96 : vector<256x8xf32>
    %cst_105 = arith.constant 0.000000e+00 : f32
    %98 = vector.broadcast %cst_105 : f32 to vector<256x8xf32>
    %99 = arith.maximumf %97, %98 : vector<256x8xf32>
    %100 = vector.shape_cast %99 : vector<256x8xf32> to vector<16x16x8xf32>
    %101 = vector.extract_strided_slice %100 {offsets = [0, 0, 0], sizes = [16, 1, 8], strides = [1, 1, 1]} : vector<16x16x8xf32> to vector<16x1x8xf32>
    %102 = vector.shape_cast %101 : vector<16x1x8xf32> to vector<16x8xf32>
    %103 = vector.extract_strided_slice %100 {offsets = [0, 1, 0], sizes = [16, 1, 8], strides = [1, 1, 1]} : vector<16x16x8xf32> to vector<16x1x8xf32>
    %104 = vector.shape_cast %103 : vector<16x1x8xf32> to vector<16x8xf32>
    %105 = vector.extract_strided_slice %100 {offsets = [0, 2, 0], sizes = [16, 1, 8], strides = [1, 1, 1]} : vector<16x16x8xf32> to vector<16x1x8xf32>
    %106 = vector.shape_cast %105 : vector<16x1x8xf32> to vector<16x8xf32>
    %107 = vector.extract_strided_slice %100 {offsets = [0, 3, 0], sizes = [16, 1, 8], strides = [1, 1, 1]} : vector<16x16x8xf32> to vector<16x1x8xf32>
    %108 = vector.shape_cast %107 : vector<16x1x8xf32> to vector<16x8xf32>
    %109 = vector.extract_strided_slice %100 {offsets = [0, 4, 0], sizes = [16, 1, 8], strides = [1, 1, 1]} : vector<16x16x8xf32> to vector<16x1x8xf32>
    %110 = vector.shape_cast %109 : vector<16x1x8xf32> to vector<16x8xf32>
    %111 = vector.extract_strided_slice %100 {offsets = [0, 5, 0], sizes = [16, 1, 8], strides = [1, 1, 1]} : vector<16x16x8xf32> to vector<16x1x8xf32>
    %112 = vector.shape_cast %111 : vector<16x1x8xf32> to vector<16x8xf32>
    %113 = vector.extract_strided_slice %100 {offsets = [0, 6, 0], sizes = [16, 1, 8], strides = [1, 1, 1]} : vector<16x16x8xf32> to vector<16x1x8xf32>
    %114 = vector.shape_cast %113 : vector<16x1x8xf32> to vector<16x8xf32>
    %115 = vector.extract_strided_slice %100 {offsets = [0, 7, 0], sizes = [16, 1, 8], strides = [1, 1, 1]} : vector<16x16x8xf32> to vector<16x1x8xf32>
    %116 = vector.shape_cast %115 : vector<16x1x8xf32> to vector<16x8xf32>
    %117 = vector.extract_strided_slice %100 {offsets = [0, 8, 0], sizes = [16, 1, 8], strides = [1, 1, 1]} : vector<16x16x8xf32> to vector<16x1x8xf32>
    %118 = vector.shape_cast %117 : vector<16x1x8xf32> to vector<16x8xf32>
    %119 = vector.extract_strided_slice %100 {offsets = [0, 9, 0], sizes = [16, 1, 8], strides = [1, 1, 1]} : vector<16x16x8xf32> to vector<16x1x8xf32>
    %120 = vector.shape_cast %119 : vector<16x1x8xf32> to vector<16x8xf32>
    %121 = vector.extract_strided_slice %100 {offsets = [0, 10, 0], sizes = [16, 1, 8], strides = [1, 1, 1]} : vector<16x16x8xf32> to vector<16x1x8xf32>
    %122 = vector.shape_cast %121 : vector<16x1x8xf32> to vector<16x8xf32>
    %123 = vector.extract_strided_slice %100 {offsets = [0, 11, 0], sizes = [16, 1, 8], strides = [1, 1, 1]} : vector<16x16x8xf32> to vector<16x1x8xf32>
    %124 = vector.shape_cast %123 : vector<16x1x8xf32> to vector<16x8xf32>
    %125 = vector.extract_strided_slice %100 {offsets = [0, 12, 0], sizes = [16, 1, 8], strides = [1, 1, 1]} : vector<16x16x8xf32> to vector<16x1x8xf32>
    %126 = vector.shape_cast %125 : vector<16x1x8xf32> to vector<16x8xf32>
    %127 = vector.extract_strided_slice %100 {offsets = [0, 13, 0], sizes = [16, 1, 8], strides = [1, 1, 1]} : vector<16x16x8xf32> to vector<16x1x8xf32>
    %128 = vector.shape_cast %127 : vector<16x1x8xf32> to vector<16x8xf32>
    %129 = vector.extract_strided_slice %100 {offsets = [0, 14, 0], sizes = [16, 1, 8], strides = [1, 1, 1]} : vector<16x16x8xf32> to vector<16x1x8xf32>
    %130 = vector.shape_cast %129 : vector<16x1x8xf32> to vector<16x8xf32>
    %131 = vector.extract_strided_slice %100 {offsets = [0, 15, 0], sizes = [16, 1, 8], strides = [1, 1, 1]} : vector<16x16x8xf32> to vector<16x1x8xf32>
    %132 = vector.shape_cast %131 : vector<16x1x8xf32> to vector<16x8xf32>
    %133 = tpu.concatenate %102, %104, %106, %108, %110, %112, %114, %116, %118, %120, %122, %124, %126, %128, %130, %132 in 1 : vector<16x8xf32>, vector<16x8xf32>, vector<16x8xf32>, vector<16x8xf32>, vector<16x8xf32>, vector<16x8xf32>, vector<16x8xf32>, vector<16x8xf32>, vector<16x8xf32>, vector<16x8xf32>, vector<16x8xf32>, vector<16x8xf32>, vector<16x8xf32>, vector<16x8xf32>, vector<16x8xf32>, vector<16x8xf32> -> vector<16x128xf32>
    %c0_106 = arith.constant 0 : index
    %c0_107 = arith.constant 0 : index
    %c0_108 = arith.constant 0 : index
    %134 = vector.load %arg8[%c0_106, %c0_107, %c0_108] : memref<1x16x128xf32, #tpu.memory_space<vmem>>, vector<1x16x128xf32>
    %135 = vector.shape_cast %134 : vector<1x16x128xf32> to vector<16x128xf32>
    %136 = vector.shape_cast %133 : vector<16x128xf32> to vector<1x16x128xf32>
    tpu.vector_store %arg8[%c0_106, %c0_107, %c0_108], %136 {strides = array<i32>} : memref<1x16x128xf32, #tpu.memory_space<vmem>>, vector<1x16x128xf32>,
    return
  }
  func.func @transform_0(%arg0: i32) -> (i32, i32, i32, i32) {
    %c0_i32 = arith.constant 0 : i32
    %c0_i32_0 = arith.constant 0 : i32
    %c0_i32_1 = arith.constant 0 : i32
    %c0_i32_2 = arith.constant 0 : i32
    return %arg0, %c0_i32, %c0_i32_0, %c0_i32_1 : i32, i32, i32, i32
  }
  func.func @transform_1(%arg0: i32) -> (i32, i32, i32, i32) {
    %c0_i32 = arith.constant 0 : i32
    %c0_i32_0 = arith.constant 0 : i32
    %c0_i32_1 = arith.constant 0 : i32
    %c0_i32_2 = arith.constant 0 : i32
    return %arg0, %c0_i32, %c0_i32_0, %c0_i32_1 : i32, i32, i32, i32
  }
  func.func @transform_2(%arg0: i32) -> (i32, i32, i32, i32) {
    %c0_i32 = arith.constant 0 : i32
    %c0_i32_0 = arith.constant 0 : i32
    %c0_i32_1 = arith.constant 0 : i32
    %c0_i32_2 = arith.constant 0 : i32
    return %arg0, %c0_i32, %c0_i32_0, %c0_i32_1 : i32, i32, i32, i32
  }
  func.func @transform_3(%arg0: i32) -> (i32, i32) {
    %c0_i32 = arith.constant 0 : i32
    %c0_i32_0 = arith.constant 0 : i32
    %c0_i32_1 = arith.constant 0 : i32
    return %c0_i32, %c0_i32_0 : i32, i32
  }
  func.func @transform_4(%arg0: i32) -> (i32, i32) {
    %c0_i32 = arith.constant 0 : i32
    %c0_i32_0 = arith.constant 0 : i32
    %c0_i32_1 = arith.constant 0 : i32
    return %c0_i32, %c0_i32_0 : i32, i32
  }
  func.func @transform_5(%arg0: i32) -> (i32, i32) {
    %c0_i32 = arith.constant 0 : i32
    %c0_i32_0 = arith.constant 0 : i32
    %c0_i32_1 = arith.constant 0 : i32
    return %c0_i32, %c0_i32_0 : i32, i32
  }
  func.func @transform_6(%arg0: i32) -> (i32, i32) {
    %c0_i32 = arith.constant 0 : i32
    %c0_i32_0 = arith.constant 0 : i32
    %c0_i32_1 = arith.constant 0 : i32
    return %c0_i32, %c0_i32_0 : i32, i32
  }
  func.func @transform_7(%arg0: i32) -> (i32, i32, i32) {
    %c0_i32 = arith.constant 0 : i32
    %c0_i32_0 = arith.constant 0 : i32
    %c0_i32_1 = arith.constant 0 : i32
    return %arg0, %c0_i32, %c0_i32_0 : i32, i32, i32
  }
}

</mosaic_0001>

<bundles_post_ra>
// kernel: tpu_custom_call.1
= control target key start
LH: loop header
LB: loop body
LE: loop exit
PB: predicated region body
PF: predicated region fallthrough
CT: control target
= control target key end

     0   :  { %12 = vsyncpa [#allocation5], 0  ;;  %s9397_s0 = inlined_call_operand.vmem [shape: bf16[2,4,4,32], index: 0, kind: input, shape index: {}]   ;;  %s9398_s1 = inlined_call_operand.vmem [shape: bf16[2,8,8,16], index: 1, kind: input, shape index: {}]   ;;  %s9399_s2 = inlined_call_operand.vmem [shape: bf16[2,16,16,8], index: 2, kind: input, shape index: {}]   ;;  %s9400_s3 = inlined_call_operand.vmem [shape: bf16[432,16], index: 3, kind: input, shape index: {}]   ;;  %s9401_s4 = inlined_call_operand.vmem [shape: f32[1,16], index: 4, kind: input, shape index: {}]   ;;  %s9402_s5 = inlined_call_operand.vmem [shape: bf16[216,8], index: 5, kind: input, shape index: {}]   ;;  %s9403_s6 = inlined_call_operand.vmem [shape: f32[1,8], index: 6, kind: input, shape index: {}]   ;;  %s9404_s7 = inlined_call_operand.hbm [shape: f32[2,16,128], index: 7, kind: output, shape index: {}]  }
   0x1   :  { %14 = vsyncpa [#allocation5 + $0x1], 0  ;;  %s6689_s24 = smov 0   ;;  %s6691_s25 = smov 0  }
   0x2   :  { %s6693_s26 = smov 0   ;;  %s6695_s27 = smov 0  }
   0x3 LB: > { %s6710_s28 = sadd.s32 4294967295, %s6626_s27   ;;  %s5329_s29 = sadd.s32 4294967294, %s6626_s27   ;;  %s6626_s27 = sphi %s6695_s27, %s9468_s27   ;;  %s6622_s26 = sphi %s6693_s26, %s9467_s26   ;;  %s6618_s25 = sphi %s6691_s25, %s9466_s25   ;;  %s6614_s24 = sphi %s6689_s24, %s9465_s24  }
   0x4   : > { %s6714_s30 = sadd.s32 1, %s6626_s27   ;;  %s189_s8 = sadd.s32 1, %s6622_s26 }
   0x5   : > { %s186_s9 = ssub.s32 %s6626_s27, %s6714_s30  ;;  %p199_p0 = scmp.ne.s32.totalorder %s6622_s26, %s6618_s25 }
   0x6   : > { %p187_p1 = scmp.eq.s32.totalorder %s186_s9, 0  ;;  %p200_p2 = scmp.eq.s32.totalorder %s6710_s28, 1 }
   0x7   : > { %p205_p3 = scmp.ne.s32.totalorder %s6618_s25, %s6614_s24  ;;  %p206_p4 = scmp.eq.s32.totalorder %s5329_s29, 1 }
   0x8   : > { %s6725_s10 = scalar_select %p187_p1, %s6622_s26, %s189_s8  }
   0x9   : > { %p6727_p5 = por %p200_p2, %p199_p0  ;;  %p6731_p6 = por %p206_p4, %p205_p3 }
   0xa   : > { %p5332_p7 = scmp.ge.s32.totalorder %s6626_s27, 1  ;;  %p260_p8 = scmp.lt.s32.totalorder %s6626_s27, 3 }
   0xc   : > { %p261_p9 = pnand %p5332_p7, %p260_p8 }
   0xe   : > { %264 = sbr.rel (%p261_p9) target bundleno = 1353 (0x549), region = 48 }
  0x15   : > { %p302_p10 = scmp.lt.s32.totalorder %s6710_s28, 1  ;;  %vm619_vm0 = vcmask 392192   ;;  %vm621_vm1 = vcmask 386048   ;;  %vm626_vm2 = vcmask 385024   ;;  %v6628_v0 = vmov 0.0   ;;  %s6629_s18 = smov 32  }
  0x16   : > { %620 = vst.msk [vmem:[#allocation2] sm:$0xff] %vm619_vm0, %v6628_v0  ;;  %624 = vst.msk [vmem:[#allocation2 + $0x90] sm:$0xff] %vm619_vm0, %v6628_v0  ;;  %v6517_v17 = vld [vmem:[%s9400_s3 + $0x80] sm:$0xff]   ;;  %v6630_v19 = vmov 0   ;;  %v6522_v21 = vld [vmem:[%s9400_s3 + $0x48] sm:$0xff]   ;;  %v333_v32 = vlaneseq  ;;  %vm610_vm3 = vcmask 261120  }
  0x17   : > { %s6739_s13 = scalar_select %p302_p10, %s6710_s28, 1  ;;  %622 = vst.msk [vmem:[#allocation2 + $0x8] sm:$0x3] %vm621_vm1, %v6628_v0  ;;  %625 = vst.msk [vmem:[#allocation2 + $0x98] sm:$0x3] %vm621_vm1, %v6628_v0  ;;  %v6519_v18 = vld [vmem:[%s9400_s3 + $0x40] sm:$0xff]   ;;  %1330 = vmatprep.subr.bf16.mxu1 %v6630_v19 }
  0x18   : > { %628 = vst.msk [vmem:[#allocation2 + $0x10] sm:$0x1] %vm626_vm2, %v6628_v0  ;;  %629 = vst.msk [vmem:[#allocation2 + $0x20] sm:$0x1] %vm626_vm2, %v6628_v0  ;;  %v6521_v20 = vld [vmem:[%s9400_s3] sm:$0xff]   ;;  %1331 = vmatpush1.bf16.msra.mxu1 %v6517_v17  ;;  %v6518_v22 = vld [vmem:[%s9400_s3 + $0x88] sm:$0xff]   ;;  %5510 = vmatprep.subr.bf16.mxu0 %v6519_v18 }
  0x19   : > { %630 = vst.msk [vmem:[#allocation2 + $0x30] sm:$0x1] %vm626_vm2, %v6628_v0  ;;  %631 = vst.msk [vmem:[#allocation2 + $0x40] sm:$0x1] %vm626_vm2, %v6628_v0  ;;  %s5409_s14 = sshll.u32 %s6739_s13, 5  ;;  %1332 = vmatprep.subr.bf16.mxu1 %v6630_v19  ;;  %5511 = vmatpush3.bf16.msra.mxu0 %v6521_v20  ;;  %v6524_v23 = vld [vmem:[%s9400_s3 + $0x8] sm:$0xff]  }
  0x1a   : > { %632 = vst.msk [vmem:[#allocation2 + $0x50] sm:$0x1] %vm626_vm2, %v6628_v0  ;;  %633 = vst.msk [vmem:[#allocation2 + $0x60] sm:$0x1] %vm626_vm2, %v6628_v0  ;;  %s311_s17 = scalar_lea.vmem %s9398_s1, %s5409_s14  ;;  %5512 = vmatprep.subr.bf16.mxu0 %v6522_v21  ;;  %v6525_v24 = vld [vmem:[%s9400_s3 + $0x50] sm:$0xff]   ;;  %v6528_v27 = vld [vmem:[%s9400_s3 + $0x58] sm:$0xff]  }
  0x1b   : > { %634 = vst.msk [vmem:[#allocation2 + $0x70] sm:$0x1] %vm626_vm2, %v6628_v0  ;;  %635 = vst.msk [vmem:[#allocation2 + $0x80] sm:$0x1] %vm626_vm2, %v6628_v0  ;;  %v5413_v1 = vld [vmem:[%s311_s17] sm:$0xff]   ;;  %v5493_v2 = vld [vmem:[%s311_s17 + $0x10] sm:$0xff]  }
  0x1c   : > { %638 = vst.msk [vmem:[#allocation2 + $0x19] sm:$0x1] %vm626_vm2, %v6628_v0  ;;  %639 = vst.msk [vmem:[#allocation2 + $0x29] sm:$0x1] %vm626_vm2, %v6628_v0  ;;  %v5492_v3 = vld [vmem:[%s311_s17 + $0x8] sm:$0xff]   ;;  %v5414_v4 = vunpack.c.l.bf16 %v5413_v1  ;;  %v5415_v5 = vunpack.c.h.bf16 %v5413_v1  ;;  %v5422_v6 = vunpack.c.l.bf16 %v5493_v2  ;;  %v5423_v7 = vunpack.c.h.bf16 %v5493_v2  ;;  %v5494_v8 = vld [vmem:[%s311_s17 + $0x18] sm:$0xff]   ;;  %1333 = vmatpush1.bf16.msra.mxu1 %v6518_v22 }
  0x1d   : > { %640 = vst.msk [vmem:[#allocation2 + $0x39] sm:$0x1] %vm626_vm2, %v6628_v0  ;;  %641 = vst.msk [vmem:[#allocation2 + $0x49] sm:$0x1] %vm626_vm2, %v6628_v0  ;;  %v5418_v9 = vunpack.c.l.bf16 %v5492_v3  ;;  %v5419_v10 = vunpack.c.h.bf16 %v5492_v3  ;;  %v5426_v11 = vunpack.c.l.bf16 %v5494_v8  ;;  %v5427_v12 = vunpack.c.h.bf16 %v5494_v8  ;;  %v6520_v25 = vld [vmem:[%s9400_s3 + $0x90] sm:$0xff]   ;;  %1334 = vmatprep.subr.bf16.mxu1 %v6630_v19  ;;  %5513 = vmatpush3.bf16.msra.mxu0 %v6524_v23  ;;  %v6523_v28 = vld [vmem:[%s9400_s3 + $0x98] sm:$0xff]  }
  0x1e   : > { %642 = vst.msk [vmem:[#allocation2 + $0x59] sm:$0x1] %vm626_vm2, %v6628_v0  ;;  %643 = vst.msk [vmem:[#allocation2 + $0x69] sm:$0x1] %vm626_vm2, %v6628_v0  ;;  %v5637_v13 = vpack.i.bf16 %v5415_v5, %v5414_v4  ;;  %v5647_v14 = vpack.i.bf16 %v5423_v7, %v5422_v6  ;;  %v6527_v26 = vld [vmem:[%s9400_s3 + $0x10] sm:$0xff]   ;;  %5514 = vmatprep.subr.bf16.mxu0 %v6525_v24  ;;  %v6526_v29 = vld [vmem:[%s9400_s3 + $0xa0] sm:$0xff]  }
  0x1f   : > { %644 = vst.msk [vmem:[#allocation2 + $0x79] sm:$0x1] %vm626_vm2, %v6628_v0  ;;  %645 = vst.msk [vmem:[#allocation2 + $0x89] sm:$0x1] %vm626_vm2, %v6628_v0  ;;  %v5642_v15 = vpack.i.bf16 %v5419_v10, %v5418_v9  ;;  %v5652_v16 = vpack.i.bf16 %v5427_v12, %v5426_v11  ;;  %s5408_s19 = sshll.u32 %s6739_s13, 3  ;;  %v6529_v33 = vld [vmem:[%s9400_s3 + $0xa8] sm:$0xff]  }
  0x20   : > { %627 = vst.msk [vmem:[#allocation2] sm:$0x1] %vm626_vm2, %v6628_v0  ;;  %637 = vst.msk [vmem:[#allocation2 + $0x9] sm:$0x1] %vm626_vm2, %v6628_v0  ;;  %5638 = vrot.lane.b32.xlu0 %v5637_v13, %s6629_s18  ;;  %5648 = vrot.lane.b32.xlu1 %v5647_v14, %s6629_s18  ;;  %v6631_v30 = vmov 1966171168   ;;  %s306_s29 = scalar_lea.vmem %s9397_s0, %s5408_s19 }
  0x21   : > { %636 = vst.msk [vmem:[#allocation2 + $0x90] sm:$0x1] %vm626_vm2, %v6628_v0  ;;  %646 = vst.msk [vmem:[#allocation2 + $0x99] sm:$0x1] %vm626_vm2, %v6628_v0  ;;  %1335 = vmatpush1.bf16.msra.mxu1 %v6520_v25  ;;  %5515 = vmatpush3.bf16.msra.mxu0 %v6527_v26  ;;  %v331_v31 = vunpack.c.l.s4 %v6631_v30  ;;  %v334_v35 = vshrl.u32 %v333_v32, 7  ;;  %s6633_s19 = smov 48  }
  0x22   : > { %1336 = vmatprep.subr.bf16.mxu1 %v6630_v19  ;;  %5516 = vmatprep.subr.bf16.mxu0 %v6528_v27  ;;  %v318_v36 = vld [vmem:[%s306_s29] sm:$0x3]  ;;  %v320_v37 = vld [vmem:[%s306_s29 + $0x4] sm:$0x3]  ;;  %v319_v41 = vld [vmem:[%s306_s29 + $0x2] sm:$0x3] }
  0x23   : > { %v332_v34 = vunpack.c.0.s8 %v331_v31  ;;  %v322_v38 = vunpack.c.l.bf16 %v318_v36  ;;  %v324_v39 = vunpack.c.l.bf16 %v320_v37  ;;  %v321_v42 = vld [vmem:[%s306_s29 + $0x6] sm:$0x3]  ;;  %v323_v43 = vunpack.c.l.bf16 %v319_v41  ;;  %s9418_s17 = smov 96   ;;  %s6635_s20 = smov 16  }
  0x24   : > { %5643 = vrot.lane.b32.xlu0 %v5642_v15, %s6629_s18  ;;  %5653 = vrot.lane.b32.xlu1 %v5652_v16, %s6629_s18  ;;  %v325_v46 = vunpack.c.l.bf16 %v321_v42  ;;  %v6855_v57 = vsub.s32 0, %v334_v35  ;;  %v6632_v58 = vmov 1983009808   ;;  %s6636_s21 = smov 64   ;;  %s6637_s22 = smov 112   ;;  %vm970_vm4 = vcmask 130048  }
  0x25   : > { %1337 = vmatpush1.bf16.msra.mxu1 %v6523_v28  ;;  %v6845_v40 = vsub.s32 %v332_v34, %v334_v35  ;;  %v509_v59 = vunpack.c.l.s4 %v6632_v58  ;;  %s9420_s23 = smov 80   ;;  %s5410_s29 = sshll.u32 %s6739_s13, 7  ;;  %vm979_vm5 = vcmask 523264   ;;  %vm9416_vm6 = vcmask 916480  }
  0x26   : > { %1338 = vmatprep.subr.bf16.mxu1 %v6630_v19  ;;  %s7028_s14 = scalar_lea.vmem %s9399_s2, %s5410_s29  ;;  %vm9417_vm7 = vcmask 785408   ;;  %vm1005_vm8 = vcmask 654336   ;;  %vm2571_vm9 = vcmask 195584   ;;  %vm2574_vm10 = vcmask 189440   ;;  %s6639_s13 = smov 24  }
  0x27   : > { %v336_v44 = vrot.slane %v322_v38, %v6845_v40  ;;  %v384_v45 = vrot.slane %v324_v39, %v6845_v40  ;;  %v360_v49 = vrot.slane %v323_v43, %v6845_v40  ;;  %v408_v50 = vrot.slane %v325_v46, %v6845_v40  ;;  %2572 = vst.msk [vmem:[#allocation3] sm:$0xff] %vm2571_vm9, %v6628_v0  ;;  %s6640_s29 = smov 72   ;;  %s6642_s15 = smov 40  }
  0x28   : > { %v510_v5 = vunpack.c.0.s8 %v509_v59  ;;  %2573 = vst.msk [vmem:[#allocation3 + $0x8] sm:$0xff] %vm2571_vm9, %v6628_v0  ;;  %2577 = vst.msk [vmem:[#allocation3 + $0x198] sm:$0xff] %vm2571_vm9, %v6628_v0  ;;  %vm2580_vm11 = vcmask 188416   ;;  %vm4418_vm12 = vcmask 1043456   ;;  %vm4027_vm13 = vcmask 588800   ;;  %s6643_s8 = smov 56  }
  0x29   : > { %1339 = vmatpush1.bf16.msra.mxu1 %v6526_v29  ;;  %v337_v47 = vcombine.high %v336_v44, %v336_v44  ;;  %v385_v48 = vcombine.high %v384_v45, %v384_v45  ;;  %v344_v51 = vrot.slane %v336_v44, %v6845_v40  ;;  %v392_v53 = vrot.slane %v384_v45, %v6845_v40  ;;  %s6644_s9 = smov 8   ;;  %s9419_s16 = smov 88  }
  0x2a   : > { %1340 = vmatprep.subr.bf16.mxu1 %v6630_v19  ;;  %v361_v55 = vcombine.high %v360_v49, %v360_v49  ;;  %v409_v56 = vcombine.high %v408_v50, %v408_v50  ;;  %v368_v61 = vrot.slane %v360_v49, %v6845_v40  ;;  %v416_v3 = vrot.slane %v408_v50, %v6845_v40 }
  0x2b   : > { %v351_v52 = vrot.slane %v337_v47, %v6845_v40  ;;  %v399_v54 = vrot.slane %v385_v48, %v6845_v40  ;;  %v352_v60 = vcombine.high %v344_v51, %v344_v51  ;;  %v400_v63 = vcombine.high %v392_v53, %v392_v53  ;;  %2578 = vst.msk [vmem:[#allocation3 + $0x1a0] sm:$0xff] %vm2571_vm9, %v6628_v0 }
  0x2c   : > { %v375_v2 = vrot.slane %v361_v55, %v6845_v40  ;;  %v423_v4 = vrot.slane %v409_v56, %v6845_v40  ;;  %v429_v6 = vrot.slane %v344_v51, %v6855_v57  ;;  %v461_v7 = vrot.slane %v392_v53, %v6855_v57  ;;  %v6530_v51 = vld [vmem:[%s9400_s3 + $0x18] sm:$0xff]   ;;  %v6532_v53 = vld [vmem:[%s9400_s3 + $0xb0] sm:$0xff]   ;;  %2575 = vst.msk [vmem:[#allocation3 + $0x10] sm:$0x3] %vm2574_vm10, %v6628_v0 }
  0x2d   : > { %1341 = vmatpush1.bf16.msra.mxu1 %v6529_v33  ;;  %v353_v62 = vcombine.high %v351_v52, %v351_v52  ;;  %v401_v1 = vcombine.high %v399_v54, %v399_v54  ;;  %v433_v8 = vrot.slane %v351_v52, %v6855_v57  ;;  %v437_v9 = vrot.slane %v352_v60, %v6855_v57  ;;  %v6531_v52 = vld [vmem:[%s9400_s3 + $0x60] sm:$0xff]  }
  0x2e   : > { %1342 = vmatprep.subr.bf16.mxu1 %v6630_v19  ;;  %v465_v10 = vrot.slane %v399_v54, %v6855_v57  ;;  %v376_v11 = vcombine.high %v368_v61, %v368_v61  ;;  %v469_v13 = vrot.slane %v400_v63, %v6855_v57  ;;  %v377_v15 = vcombine.high %v375_v2, %v375_v2 }
  0x2f   : > { %v441_v12 = vrot.slane %v353_v62, %v6855_v57  ;;  %v473_v14 = vrot.slane %v401_v1, %v6855_v57  ;;  %v424_v16 = vcombine.high %v416_v3, %v416_v3  ;;  %v425_v17 = vcombine.high %v423_v4, %v423_v4  ;;  %5517 = vmatpush3.bf16.msra.mxu0 %v6530_v51 }
  0x30   : > { %v6869_v18 = vsub.s32 %v510_v5, %v334_v35  ;;  %v506_v20 = vcombine.low %v429_v6, %v433_v8  ;;  %v540_v21 = vcombine.low %v461_v7, %v465_v10  ;;  %v445_v22 = vrot.slane %v368_v61, %v6855_v57  ;;  %5518 = vmatprep.subr.bf16.mxu0 %v6531_v52  ;;  %v6534_v7 = vld [vmem:[%s9400_s3 + $0x68] sm:$0xff]   ;;  %v6535_v8 = vld [vmem:[%s9400_s3 + $0xb8] sm:$0xff]  }
  0x31   : > { %v449_v23 = vrot.slane %v375_v2, %v6855_v57  ;;  %v507_v24 = vcombine.low %v437_v9, %v441_v12  ;;  %v541_v25 = vcombine.low %v469_v13, %v473_v14  ;;  %v453_v26 = vrot.slane %v376_v11, %v6855_v57  ;;  %1343 = vmatpush1.bf16.msra.mxu1 %v6532_v53  ;;  %v664_v13 = vld [vmem:[#allocation2 + $0x1] sm:$0xff] }
  0x32   : > { %v457_v27 = vrot.slane %v377_v15, %v6855_v57  ;;  %v477_v28 = vrot.slane %v416_v3, %v6855_v57  ;;  %v481_v29 = vrot.slane %v423_v4, %v6855_v57  ;;  %v485_v30 = vrot.slane %v424_v16, %v6855_v57  ;;  %1344 = vmatprep.subr.bf16.mxu1 %v6630_v19  ;;  %v6533_v4 = vld [vmem:[%s9400_s3 + $0x20] sm:$0xff]   ;;  %v6536_v14 = vld [vmem:[%s9400_s3 + $0x28] sm:$0xff]   ;;  %v6537_v15 = vld [vmem:[%s9400_s3 + $0x70] sm:$0xff]  }
  0x33   : > { %v489_v31 = vrot.slane %v425_v17, %v6855_v57  ;;  %v514_v32 = vrot.slane %v506_v20, %v6869_v18  ;;  %v521_v33 = vrot.slane %v507_v24, %v6869_v18  ;;  %v523_v34 = vcombine.low %v445_v22, %v449_v23  ;;  %5519 = vmatpush3.bf16.msra.mxu0 %v6533_v4  ;;  %v6538_v16 = vld [vmem:[%s9400_s3 + $0xc0] sm:$0xff]  }
  0x34   : > { %v524_v35 = vcombine.low %v453_v26, %v457_v27  ;;  %v548_v36 = vrot.slane %v540_v21, %v6869_v18  ;;  %v555_v37 = vrot.slane %v541_v25, %v6869_v18  ;;  %v557_v38 = vcombine.low %v477_v28, %v481_v29  ;;  %5520 = vmatprep.subr.bf16.mxu0 %v6534_v7 }
  0x35   : > { %v558_v39 = vcombine.low %v485_v30, %v489_v31  ;;  %v522_v41 = vcombine.low %v514_v32, %v521_v33  ;;  %v531_v42 = vrot.slane %v523_v34, %v6869_v18  ;;  %1345 = vmatpush1.bf16.msra.mxu1 %v6535_v8  ;;  %v672_v30 = vld [vmem:[#allocation2 + $0x2] sm:$0xff]  ;;  %2579 = vst.msk [vmem:[#allocation3 + $0x1a8] sm:$0x3] %vm2574_vm10, %v6628_v0  ;;  %vm9415_vm14 = vcmask 982016  }
  0x36   : > { %v538_v43 = vrot.slane %v524_v35, %v6869_v18  ;;  %v556_v45 = vcombine.low %v548_v36, %v555_v37  ;;  %v565_v46 = vrot.slane %v557_v38, %v6869_v18  ;;  %1346 = vmatprep.subr.bf16.mxu1 %v6630_v19  ;;  %v6539_v38 = vld [vmem:[%s9400_s3 + $0x30] sm:$0xff]   ;;  %2581 = vst.msk [vmem:[#allocation3] sm:$0x1] %vm2580_vm11, %v6628_v0  ;;  %2582 = vst.msk [vmem:[#allocation3 + $0x18] sm:$0x1] %vm2580_vm11, %v6628_v0  ;;  %vm4157_vm15 = vcmask 326656  }
  0x37   : > { %v572_v47 = vrot.slane %v558_v39, %v6869_v18  ;;  %5521 = vmatpush3.bf16.msra.mxu0 %v6536_v14  ;;  %v6540_v39 = vld [vmem:[%s9400_s3 + $0x78] sm:$0xff]   ;;  %2583 = vst.msk [vmem:[#allocation3 + $0x30] sm:$0x1] %vm2580_vm11, %v6628_v0  ;;  %2584 = vst.msk [vmem:[#allocation3 + $0x48] sm:$0x1] %vm2580_vm11, %v6628_v0  ;;  %vm4369_vm1 = vcmask 719872  }
  0x38   : > { %v539_v59 = vcombine.low %v531_v42, %v538_v43  ;;  %5522 = vmatprep.subr.bf16.mxu0 %v6537_v15  ;;  %v5429_v15 = vld [vmem:[%s7028_s14] sm:$0xff]   ;;  %2585 = vst.msk [vmem:[#allocation3 + $0x60] sm:$0x1] %vm2580_vm11, %v6628_v0  ;;  %2586 = vst.msk [vmem:[#allocation3 + $0x78] sm:$0x1] %vm2580_vm11, %v6628_v0  ;;  %vm4632_vm2 = vcmask 1041409  }
  0x39   : > { %v573_v63 = vcombine.low %v565_v46, %v572_v47  ;;  %1347 = vmatpush1.bf16.msra.mxu1 %v6538_v16  ;;  %2587 = vst.msk [vmem:[#allocation3 + $0x90] sm:$0x1] %vm2580_vm11, %v6628_v0  ;;  %2588 = vst.msk [vmem:[#allocation3 + $0xa8] sm:$0x1] %vm2580_vm11, %v6628_v0  ;;  %vm4635_vm10 = vcmask 1042434  }
  0x3a   : > { %1348 = vmatprep.subr.bf16.mxu1 %v6630_v19  ;;  %2589 = vst.msk [vmem:[#allocation3 + $0xc0] sm:$0x1] %vm2580_vm11, %v6628_v0  ;;  %2590 = vst.msk [vmem:[#allocation3 + $0xd8] sm:$0x1] %vm2580_vm11, %v6628_v0 }
  0x3b   : > { %5523 = vmatpush3.bf16.msra.mxu0 %v6539_v38  ;;  %2591 = vst.msk [vmem:[#allocation3 + $0xf0] sm:$0x1] %vm2580_vm11, %v6628_v0  ;;  %2592 = vst.msk [vmem:[#allocation3 + $0x108] sm:$0x1] %vm2580_vm11, %v6628_v0 }
  0x3c   : > { %5524 = vmatprep.subr.bf16.mxu0 %v6540_v39  ;;  %2593 = vst.msk [vmem:[#allocation3 + $0x120] sm:$0x1] %vm2580_vm11, %v6628_v0  ;;  %2594 = vst.msk [vmem:[#allocation3 + $0x138] sm:$0x1] %vm2580_vm11, %v6628_v0 }
  0x3d   : > { %2595 = vst.msk [vmem:[#allocation3 + $0x150] sm:$0x1] %vm2580_vm11, %v6628_v0  ;;  %2596 = vst.msk [vmem:[#allocation3 + $0x168] sm:$0x1] %vm2580_vm11, %v6628_v0 }
  0x3e   : > { %2597 = vst.msk [vmem:[#allocation3 + $0x180] sm:$0x1] %vm2580_vm11, %v6628_v0  ;;  %2598 = vst.msk [vmem:[#allocation3 + $0x198] sm:$0x1] %vm2580_vm11, %v6628_v0 }
  0x3f   : > { %2599 = vst.msk [vmem:[#allocation3 + $0x11] sm:$0x1] %vm2580_vm11, %v6628_v0  ;;  %2600 = vst.msk [vmem:[#allocation3 + $0x29] sm:$0x1] %vm2580_vm11, %v6628_v0 }
  0x40   : > { %2601 = vst.msk [vmem:[#allocation3 + $0x41] sm:$0x1] %vm2580_vm11, %v6628_v0  ;;  %2602 = vst.msk [vmem:[#allocation3 + $0x59] sm:$0x1] %vm2580_vm11, %v6628_v0 }
  0x41   : > { %2603 = vst.msk [vmem:[#allocation3 + $0x71] sm:$0x1] %vm2580_vm11, %v6628_v0  ;;  %2604 = vst.msk [vmem:[#allocation3 + $0x89] sm:$0x1] %vm2580_vm11, %v6628_v0 }
  0x42   : > { %2605 = vst.msk [vmem:[#allocation3 + $0xa1] sm:$0x1] %vm2580_vm11, %v6628_v0  ;;  %2606 = vst.msk [vmem:[#allocation3 + $0xb9] sm:$0x1] %vm2580_vm11, %v6628_v0 }
  0x43   : > { %2607 = vst.msk [vmem:[#allocation3 + $0xd1] sm:$0x1] %vm2580_vm11, %v6628_v0  ;;  %2608 = vst.msk [vmem:[#allocation3 + $0xe9] sm:$0x1] %vm2580_vm11, %v6628_v0 }
  0x44   : > { %2609 = vst.msk [vmem:[#allocation3 + $0x101] sm:$0x1] %vm2580_vm11, %v6628_v0  ;;  %2610 = vst.msk [vmem:[#allocation3 + $0x119] sm:$0x1] %vm2580_vm11, %v6628_v0 }
  0x45   : > { %2611 = vst.msk [vmem:[#allocation3 + $0x131] sm:$0x1] %vm2580_vm11, %v6628_v0  ;;  %2612 = vst.msk [vmem:[#allocation3 + $0x149] sm:$0x1] %vm2580_vm11, %v6628_v0 }
  0x46   : > { %2613 = vst.msk [vmem:[#allocation3 + $0x161] sm:$0x1] %vm2580_vm11, %v6628_v0  ;;  %2614 = vst.msk [vmem:[#allocation3 + $0x179] sm:$0x1] %vm2580_vm11, %v6628_v0 }
  0x47   : > { %2615 = vst.msk [vmem:[#allocation3 + $0x191] sm:$0x1] %vm2580_vm11, %v6628_v0  ;;  %2616 = vst.msk [vmem:[#allocation3 + $0x1a9] sm:$0x1] %vm2580_vm11, %v6628_v0  ;;  %vm4638_vm11 = vcmask 1043459  }
  0x92   : > { %v5639_v44 = vpop.permute.xlu0 %5638  ;;  %v5649_v50 = vpop.permute.xlu1 %5648 }
  0x93   : > { %v5641_v48 = vunpack.i.h.bf16 %v5639_v44  ;;  %v5640_v49 = vunpack.i.l.bf16 %v5639_v44  ;;  %v5651_v54 = vunpack.i.h.bf16 %v5649_v50  ;;  %v5650_v55 = vunpack.i.l.bf16 %v5649_v50  ;;  %v6542_v44 = vld [vmem:[%s9400_s3 + $0x38] sm:$0xff]  }
  0x94   : > { %5525 = vmatpush3.bf16.msra.mxu0 %v6542_v44 }
  0x95   : > { %v611_v56 = vsel %vm610_vm3, %v522_v41, %v5640_v49  ;;  %v612_v58 = vsel %vm610_vm3, %v522_v41, %v5641_v48  ;;  %v615_v60 = vsel %vm610_vm3, %v556_v45, %v5650_v55  ;;  %v616_v61 = vsel %vm610_vm3, %v556_v45, %v5651_v54  ;;  %v6541_v41 = vld [vmem:[%s9400_s3 + $0xc8] sm:$0xff]   ;;  %v6543_v45 = vld [vmem:[%s9400_s3 + $0xd0] sm:$0xff]   ;;  %4422 = vmatprep.subr.bf16.mxu0 %v6630_v19 }
  0x96   : > { %648 = vst.msk [vmem:[#allocation2 + $0x11] sm:$0xff] %vm619_vm0, %v611_v56  ;;  %649 = vst.msk [vmem:[#allocation2 + $0x21] sm:$0xff] %vm619_vm0, %v612_v58  ;;  %v5644_v62 = vpop.permute.xlu0 %5643  ;;  %v5654_v3 = vpop.permute.xlu1 %5653  ;;  %1349 = vmatpush1.bf16.msra.mxu1 %v6541_v41 }
  0x97   : > { %652 = vst.msk [vmem:[#allocation2 + $0x51] sm:$0xff] %vm619_vm0, %v615_v60  ;;  %653 = vst.msk [vmem:[#allocation2 + $0x61] sm:$0xff] %vm619_vm0, %v616_v61  ;;  %v5646_v1 = vunpack.i.h.bf16 %v5644_v62  ;;  %v5645_v2 = vunpack.i.l.bf16 %v5644_v62  ;;  %v5656_v5 = vunpack.i.h.bf16 %v5654_v3  ;;  %v5655_v6 = vunpack.i.l.bf16 %v5654_v3  ;;  %1350 = vmatprep.subr.bf16.mxu1 %v6630_v19 }
  0x99   : > { %v613_v9 = vsel %vm610_vm3, %v539_v59, %v5645_v2  ;;  %v614_v10 = vsel %vm610_vm3, %v539_v59, %v5646_v1  ;;  %v617_v11 = vsel %vm610_vm3, %v573_v63, %v5655_v6  ;;  %v618_v12 = vsel %vm610_vm3, %v573_v63, %v5656_v5 }
  0x9a   : > { %650 = vst.msk [vmem:[#allocation2 + $0x31] sm:$0xff] %vm619_vm0, %v613_v9  ;;  %651 = vst.msk [vmem:[#allocation2 + $0x41] sm:$0xff] %vm619_vm0, %v614_v10  ;;  %1351 = vmatpush1.bf16.msra.mxu1 %v6543_v45 }
  0x9b   : > { %654 = vst.msk [vmem:[#allocation2 + $0x71] sm:$0xff] %vm619_vm0, %v617_v11  ;;  %655 = vst.msk [vmem:[#allocation2 + $0x81] sm:$0xff] %vm619_vm0, %v618_v12  ;;  %5550 = vmatprep.subr.bf16.mxu1 %v6630_v19 }
  0x9d   : > { %v665_v17 = vld [vmem:[#allocation2 + $0x11] sm:$0xff]  ;;  %v721_v22 = vld [vmem:[#allocation2 + $0x22] sm:$0xff] }
  0x9e   : > { %v5657_v20 = vpack.i.bf16 %v665_v17, %v664_v13  ;;  %v6932_v21 = vld [vmem:[#allocation2 + $0x51] sm:$0xff]  ;;  %v666_v23 = vld [vmem:[#allocation2 + $0x21] sm:$0xff] }
  0x9f   : > { %v673_v31 = vld [vmem:[#allocation2 + $0x12] sm:$0xff]  ;;  %v6939_v33 = vld [vmem:[#allocation2 + $0x20] sm:$0xff]  ;;  %v5682_v48 = vpack.i.bf16 %v666_v23, %v665_v17 }
  0xa0   : > { %5658 = vrot.lane.b32.xlu0 %v5657_v20, %s6633_s19  ;;  %v6937_v32 = vld [vmem:[#allocation2 + $0x10] sm:$0xff]  ;;  %v6947_v36 = vld [vmem:[#allocation2 + $0x62] sm:$0xff]  ;;  %v5672_v42 = vpack.i.bf16 %v673_v31, %v672_v30  ;;  %v5687_v49 = vpack.i.bf16 %v721_v22, %v673_v31 }
  0xa1   : > { %v722_v24 = vld [vmem:[#allocation2 + $0x32] sm:$0xff]  ;;  %v668_v26 = vld [vmem:[#allocation2 + $0x41] sm:$0xff]  ;;  %v5677_v43 = vpack.i.bf16 %v6939_v33, %v6937_v32 }
  0xa2   : > { %v667_v25 = vld [vmem:[#allocation2 + $0x31] sm:$0xff]  ;;  %v1017_v27 = vpack.c.bf16 %v722_v24, %v721_v22  ;;  %v5667_v29 = vpack.i.bf16 %v6932_v21, %v668_v26  ;;  %v6945_v35 = vld [vmem:[#allocation2 + $0x42] sm:$0xff]  ;;  %v5702_v53 = vpack.i.bf16 %v722_v24, %v721_v22  ;;  %v5431_v22 = vunpack.c.h.bf16 %v5429_v15 }
  0xa3   : > { %v5662_v28 = vpack.i.bf16 %v667_v25, %v666_v23  ;;  %v6941_v34 = vld [vmem:[#allocation2 + $0x52] sm:$0xff]  ;;  %v6985_v52 = vld [vmem:[#allocation2 + $0x40] sm:$0xff]  ;;  %v5712_v55 = vpack.i.bf16 %v668_v26, %v667_v25  ;;  %v5717_v56 = vpack.i.bf16 %v6945_v35, %v722_v24  ;;  %v5495_v20 = vld [vmem:[%s7028_s14 + $0x8] sm:$0xff]  }
  0xa4   : > { %5368 = vmatprep.mubr.msk.bf16.mxu1 %vm619_vm0, %v1017_v27  ;;  %v6949_v37 = vld [vmem:[#allocation2 + $0x72] sm:$0xff]  ;;  %5668 = vrot.lane.b32.xlu0 %v5667_v29, %s6633_s19  ;;  %v1021_v46 = vpack.c.bf16 %v6941_v34, %v6945_v35  ;;  %v5727_v60 = vpack.i.bf16 %v6941_v34, %v6945_v35  ;;  %v7001_v61 = vld [vmem:[#allocation2 + $0x60] sm:$0xff]  ;;  %v5747_v2 = vpack.i.bf16 %v6947_v36, %v6941_v34  ;;  %v5434_v25 = vunpack.c.l.bf16 %v5495_v20 }
  0xa5   : > { %5663 = vrot.lane.b32.xlu1 %v5662_v28, %s6633_s19  ;;  %v1025_v47 = vpack.c.bf16 %v6949_v37, %v6947_v36  ;;  %v6976_v50 = vld [vmem:[#allocation2 + $0x30] sm:$0xff]  ;;  %v693_v63 = vld [vmem:[#allocation2 + $0x61] sm:$0xff]  ;;  %v5762_v10 = vpack.i.bf16 %v6949_v37, %v6947_v36  ;;  %v5435_v26 = vunpack.c.h.bf16 %v5495_v20 }
  0xa6   : > { %v5692_v51 = vpack.i.bf16 %v6976_v50, %v6939_v33  ;;  %v5707_v54 = vpack.i.bf16 %v6985_v52, %v6976_v50  ;;  %v6993_v58 = vld [vmem:[#allocation2 + $0x50] sm:$0xff]  ;;  %v5742_v1 = vpack.i.bf16 %v693_v63, %v6932_v21  ;;  %v687_v6 = vld [vmem:[#allocation2 + $0x80] sm:$0xff]  ;;  %v5430_v21 = vunpack.c.l.bf16 %v5429_v15 }
  0xa7   : > { %v5722_v59 = vpack.i.bf16 %v6993_v58, %v6985_v52  ;;  %v5732_v62 = vpack.i.bf16 %v7001_v61, %v6993_v58  ;;  %v7012_v3 = vld [vmem:[#allocation2 + $0x70] sm:$0xff]  ;;  %v695_v9 = vld [vmem:[#allocation2 + $0x81] sm:$0xff]  ;;  %v5802_v38 = vpack.i.bf16 %v5435_v26, %v5434_v25 }
  0xa8   : > { %5678 = vrot.lane.b32.xlu0 %v5677_v43, %s6635_s20  ;;  %v718_v4 = vld [vmem:[#allocation2 + $0x71] sm:$0xff]  ;;  %v5752_v5 = vpack.i.bf16 %v7012_v3, %v7001_v61  ;;  %v5767_v8 = vpack.i.bf16 %v687_v6, %v7012_v3  ;;  %v7031_v12 = vld [vmem:[#allocation2 + $0x82] sm:$0xff]  ;;  %v5797_v27 = vpack.i.bf16 %v5431_v22, %v5430_v21 }
  0xa9   : > { %5673 = vrot.lane.b32.xlu1 %v5672_v42, %s9418_s17  ;;  %v5757_v7 = vpack.i.bf16 %v718_v4, %v693_v63  ;;  %v5772_v11 = vpack.i.bf16 %v695_v9, %v718_v4  ;;  %v712_v13 = vld [vmem:[#allocation2 + $0x90] sm:$0xff]  ;;  %v5782_v14 = vpack.i.bf16 %v7031_v12, %v6949_v37  ;;  %v5498_v31 = vld [vmem:[%s7028_s14 + $0x20] sm:$0xff]   ;;  %v5499_v43 = vld [vmem:[%s7028_s14 + $0x28] sm:$0xff]  }
  0xaa   : > { %v5787_v16 = vpack.i.bf16 %v712_v13, %v687_v6  ;;  %v720_v17 = vld [vmem:[#allocation2 + $0x91] sm:$0xff]  ;;  %v5446_v44 = vunpack.c.l.bf16 %v5498_v31  ;;  %v5447_v45 = vunpack.c.h.bf16 %v5498_v31  ;;  %v5503_v4 = vld [vmem:[%s7028_s14 + $0x48] sm:$0xff]  }
  0xab   : > { %v5496_v23 = vld [vmem:[%s7028_s14 + $0x10] sm:$0xff]   ;;  %v5792_v24 = vpack.i.bf16 %v720_v17, %v695_v9  ;;  %v5466_v9 = vunpack.c.l.bf16 %v5503_v4  ;;  %v5505_v13 = vld [vmem:[%s7028_s14 + $0x58] sm:$0xff]  }
  0xac   : > { %5688 = vrot.lane.b32.xlu0 %v5687_v49, %s6637_s22  ;;  %v5439_v30 = vunpack.c.h.bf16 %v5496_v23  ;;  %v5474_v20 = vunpack.c.l.bf16 %v5505_v13  ;;  %v5475_v21 = vunpack.c.h.bf16 %v5505_v13  ;;  %v5508_v26 = vld [vmem:[%s7028_s14 + $0x70] sm:$0xff]   ;;  %v5509_v31 = vld [vmem:[%s7028_s14 + $0x78] sm:$0xff]  }
  0xad   : > { %5683 = vrot.lane.b32.xlu1 %v5682_v48, %s6636_s21  ;;  %v5500_v48 = vld [vmem:[%s7028_s14 + $0x30] sm:$0xff]  }
  0xae   : > { %v728_v36 = vld [vmem:[#allocation2 + $0x92] sm:$0xff] }
  0xb0   : > { %5698 = vrot.lane.b32.xlu0 %v5662_v28, %s9420_s23  ;;  %v5497_v28 = vld [vmem:[%s7028_s14 + $0x18] sm:$0xff]  }
  0xb1   : > { %5693 = vrot.lane.b32.xlu1 %v5692_v51, %s6629_s18  ;;  %v5442_v39 = vunpack.c.l.bf16 %v5497_v28  ;;  %v5443_v41 = vunpack.c.h.bf16 %v5497_v28  ;;  %v5450_v51 = vunpack.c.l.bf16 %v5499_v43 }
  0xb3   : > { %v5812_v49 = vpack.i.bf16 %v5443_v41, %v5442_v39  ;;  %v5487_v39 = vunpack.c.h.bf16 %v5508_v26 }
  0xb4   : > { %5708 = vrot.lane.b32.xlu0 %v5707_v54, %s6635_s20  ;;  %v5817_v54 = vpack.i.bf16 %v5447_v45, %v5446_v44 }
  0xb5   : > { %5703 = vrot.lane.b32.xlu1 %v5702_v53, %s9418_s17  ;;  %v5451_v53 = vunpack.c.h.bf16 %v5499_v43  ;;  %v5491_v43 = vunpack.c.h.bf16 %v5509_v31 }
  0xb8   : > { %5718 = vrot.lane.b32.xlu0 %v5717_v56, %s6637_s22  ;;  %v5454_v56 = vunpack.c.l.bf16 %v5500_v48 }
  0xb9   : > { %5713 = vrot.lane.b32.xlu1 %v5712_v55, %s6636_s21  ;;  %v5501_v55 = vld [vmem:[%s7028_s14 + $0x38] sm:$0xff]  }
  0xba   : > { %v5458_v63 = vunpack.c.l.bf16 %v5501_v55 }
  0xbc   : > { %5728 = vrot.lane.b32.xlu0 %v5727_v60, %s9418_s17  ;;  %v5502_v60 = vld [vmem:[%s7028_s14 + $0x40] sm:$0xff]  }
  0xbd   : > { %5723 = vrot.lane.b32.xlu1 %v5722_v59, %s6629_s18  ;;  %v5455_v59 = vunpack.c.h.bf16 %v5500_v48  ;;  %v5463_v6 = vunpack.c.h.bf16 %v5502_v60 }
  0xc0   : > { %5738 = vrot.lane.b32.xlu0 %v5667_v29, %s9420_s23  ;;  %v5438_v29 = vunpack.c.l.bf16 %v5496_v23  ;;  %v5507_v23 = vld [vmem:[%s7028_s14 + $0x68] sm:$0xff]  }
  0xc1   : > { %5733 = vrot.lane.b32.xlu1 %v5732_v62, %s6635_s20  ;;  %v5822_v62 = vpack.i.bf16 %v5451_v53, %v5450_v51  ;;  %v5482_v28 = vunpack.c.l.bf16 %v5507_v23 }
  0xc2   : > { %v5807_v42 = vpack.i.bf16 %v5439_v30, %v5438_v29  ;;  %v5483_v29 = vunpack.c.h.bf16 %v5507_v23 }
  0xc4   : > { %5748 = vrot.lane.b32.xlu0 %v5747_v2, %s6637_s22  ;;  %v5827_v2 = vpack.i.bf16 %v5455_v59, %v5454_v56  ;;  %v5862_v41 = vpack.i.bf16 %v5483_v29, %v5482_v28 }
  0xc5   : > { %5743 = vrot.lane.b32.xlu1 %v5742_v1, %s6636_s21  ;;  %v5459_v1 = vunpack.c.h.bf16 %v5501_v55 }
  0xc8   : > { %5758 = vrot.lane.b32.xlu0 %v5757_v7, %s9420_s23 }
  0xc9   : > { %5753 = vrot.lane.b32.xlu1 %v5752_v5, %s6629_s18  ;;  %v5462_v5 = vunpack.c.l.bf16 %v5502_v60 }
  0xcc   : > { %5768 = vrot.lane.b32.xlu0 %v5767_v8, %s6635_s20  ;;  %v5832_v8 = vpack.i.bf16 %v5459_v1, %v5458_v63  ;;  %v656_v1 = vld [vmem:[#allocation2] sm:$0xff] }
  0xcd   : > { %5763 = vrot.lane.b32.xlu1 %v5762_v10, %s9418_s17  ;;  %v5467_v10 = vunpack.c.h.bf16 %v5503_v4 }
  0xcf   : > { %v5842_v17 = vpack.i.bf16 %v5467_v10, %v5466_v9 }
  0xd0   : > { %5778 = vrot.lane.b32.xlu0 %v5757_v7, %s6633_s19  ;;  %v5504_v7 = vld [vmem:[%s7028_s14 + $0x50] sm:$0xff]  }
  0xd1   : > { %5773 = vrot.lane.b32.xlu1 %v5772_v11, %s6636_s21  ;;  %v5837_v11 = vpack.i.bf16 %v5463_v6, %v5462_v5  ;;  %v5471_v15 = vunpack.c.h.bf16 %v5504_v7 }
  0xd4   : > { %5788 = vrot.lane.b32.xlu0 %v5787_v16, %s6629_s18  ;;  %v5506_v16 = vld [vmem:[%s7028_s14 + $0x60] sm:$0xff]   ;;  %s6641_s14 = smov 120  }
  0xd5   : > { %5783 = vrot.lane.b32.xlu1 %v5782_v14, %s6637_s22  ;;  %v5470_v14 = vunpack.c.l.bf16 %v5504_v7  ;;  %v5479_v25 = vunpack.c.h.bf16 %v5506_v16 }
  0xd7   : > { %v5847_v22 = vpack.i.bf16 %v5471_v15, %v5470_v14 }
  0xd8   : > { %5798 = vrot.lane.b32.xlu0 %v5797_v27, %s6635_s20  ;;  %v5852_v27 = vpack.i.bf16 %v5475_v21, %v5474_v20 }
  0xd9   : > { %5793 = vrot.lane.b32.xlu1 %v5792_v24, %s9420_s23  ;;  %v5478_v24 = vunpack.c.l.bf16 %v5506_v16 }
  0xdb   : > { %v5857_v30 = vpack.i.bf16 %v5479_v25, %v5478_v24 }
  0xdc   : > { %5808 = vrot.lane.b32.xlu0 %v5807_v42, %s6635_s20  ;;  %v5490_v42 = vunpack.c.l.bf16 %v5509_v31 }
  0xdd   : > { %5803 = vrot.lane.b32.xlu1 %v5802_v38, %s6635_s20  ;;  %v5486_v38 = vunpack.c.l.bf16 %v5508_v26 }
  0xde   : > { %v5872_v45 = vpack.i.bf16 %v5491_v43, %v5490_v42 }
  0xdf   : > { %v5867_v44 = vpack.i.bf16 %v5487_v39, %v5486_v38 }
  0xe0   : > { %5818 = vrot.lane.b32.xlu0 %v5817_v54, %s6635_s20 }
  0xe1   : > { %5813 = vrot.lane.b32.xlu1 %v5812_v49, %s6635_s20 }
  0xe4   : > { %5828 = vrot.lane.b32.xlu0 %v5827_v2, %s6635_s20 }
  0xe5   : > { %5823 = vrot.lane.b32.xlu1 %v5822_v62, %s6635_s20 }
  0xe8   : > { %5838 = vrot.lane.b32.xlu0 %v5837_v11, %s6635_s20 }
  0xe9   : > { %5833 = vrot.lane.b32.xlu1 %v5832_v8, %s6635_s20 }
  0xec   : > { %5848 = vrot.lane.b32.xlu0 %v5847_v22, %s6635_s20 }
  0xed   : > { %5843 = vrot.lane.b32.xlu1 %v5842_v17, %s6635_s20 }
  0xf0   : > { %5858 = vrot.lane.b32.xlu0 %v5857_v30, %s6635_s20 }
  0xf1   : > { %5853 = vrot.lane.b32.xlu1 %v5852_v27, %s6635_s20 }
  0xf4   : > { %5868 = vrot.lane.b32.xlu0 %v5867_v44, %s6635_s20 }
  0xf5   : > { %5863 = vrot.lane.b32.xlu1 %v5862_v41, %s6635_s20 }
  0xf9   : > { %5873 = vrot.lane.b32.xlu1 %v5872_v45, %s6635_s20 }
 0x112   : > { %v5659_v48 = vpop.permute.xlu0 %5658 }
 0x113   : > { %v5661_v54 = vunpack.i.h.bf16 %v5659_v48  ;;  %v5660_v55 = vunpack.i.l.bf16 %v5659_v48 }
 0x115   : > { %v953_v7 = vsel %vm619_vm0, %v656_v1, %v5660_v55  ;;  %v954_v8 = vsel %vm619_vm0, %v6937_v32, %v5661_v54 }
 0x116   : > { %v7074_v51 = vpop.permute.xlu0 %5668 }
 0x117   : > { %v7072_v49 = vpop.permute.xlu1 %5663 }
 0x118   : > { %v5666_v41 = vunpack.i.h.bf16 %v7072_v49  ;;  %v5665_v42 = vunpack.i.l.bf16 %v7072_v49 }
 0x11a   : > { %v5679_v56 = vpop.permute.xlu0 %5678  ;;  %v956_v49 = vsel %vm619_vm0, %v6976_v50, %v5666_v41 }
 0x11b   : > { %v5674_v53 = vpop.permute.xlu1 %5673  ;;  %v5681_v62 = vunpack.i.h.bf16 %v5679_v56  ;;  %v5680_v63 = vunpack.i.l.bf16 %v5679_v56 }
 0x11c   : > { %v5676_v59 = vunpack.i.h.bf16 %v5674_v53  ;;  %v5675_v60 = vunpack.i.l.bf16 %v5674_v53 }
 0x11e   : > { %v5689_v6 = vpop.permute.xlu0 %5688  ;;  %v971_v11 = vsel %vm970_vm4, %v5675_v60, %v5680_v63  ;;  %v972_v13 = vsel %vm970_vm4, %v5676_v59, %v5681_v62  ;;  %v962_v16 = vsel %vm9417_vm7, %v953_v7, %v5675_v60  ;;  %v963_v17 = vsel %vm9417_vm7, %v954_v8, %v5676_v59 }
 0x11f   : > { %v5684_v2 = vpop.permute.xlu1 %5683  ;;  %v5691_v9 = vunpack.i.h.bf16 %v5689_v6  ;;  %v5690_v10 = vunpack.i.l.bf16 %v5689_v6  ;;  %v1014_v28 = vpack.c.bf16 %v963_v17, %v962_v16  ;;  %v955_v62 = vsel %vm619_vm0, %v6939_v33, %v5665_v42 }
 0x120   : > { %v5686_v4 = vunpack.i.h.bf16 %v5684_v2  ;;  %v5685_v5 = vunpack.i.l.bf16 %v5684_v2 }
 0x122   : > { %v980_v14 = vsel %vm979_vm5, %v971_v11, %v5685_v5  ;;  %v981_v15 = vsel %vm979_vm5, %v972_v13, %v5686_v4  ;;  %v5699_v24 = vpop.permute.xlu0 %5698  ;;  %v5670_v13 = vunpack.i.l.bf16 %v7074_v51 }
 0x123   : > { %v5694_v20 = vpop.permute.xlu1 %5693  ;;  %v989_v21 = vsel %vm9416_vm6, %v980_v14, %v5690_v10  ;;  %v990_v22 = vsel %vm9416_vm6, %v981_v15, %v5691_v9  ;;  %v5701_v26 = vunpack.i.h.bf16 %v5699_v24  ;;  %v5700_v27 = vunpack.i.l.bf16 %v5699_v24 }
 0x124   : > { %v5696_v32 = vunpack.i.h.bf16 %v5694_v20  ;;  %v5695_v23 = vunpack.i.l.bf16 %v5694_v20  ;;  %v1015_v25 = vpack.c.bf16 %v990_v22, %v989_v21  ;;  %v5671_v15 = vunpack.i.h.bf16 %v7074_v51 }
 0x126   : > { %1297 = vmatprep.mubr.bf16.mxu0 %v1015_v25  ;;  %v997_v29 = vsel %vm610_vm3, %v5690_v10, %v5695_v23  ;;  %v998_v30 = vsel %vm610_vm3, %v5691_v9, %v5696_v32  ;;  %v5709_v43 = vpop.permute.xlu0 %5708 }
 0x127   : > { %v5704_v31 = vpop.permute.xlu1 %5703  ;;  %1298 = vmatmul.mubr.bf16.vlgmr.msra.gmra.mrb[0].mxu0 %v1014_v28  ;;  %v1006_v38 = vsel %vm1005_vm8, %v997_v29, %v5700_v27  ;;  %v1007_v39 = vsel %vm1005_vm8, %v998_v30, %v5701_v26  ;;  %v5711_v53 = vunpack.i.h.bf16 %v5709_v43  ;;  %v5710_v54 = vunpack.i.l.bf16 %v5709_v43 }
 0x128   : > { %v1016_v44 = vpack.c.bf16 %v1007_v39, %v1006_v38  ;;  %v5706_v45 = vunpack.i.h.bf16 %v5704_v31  ;;  %v5705_v48 = vunpack.i.l.bf16 %v5704_v31  ;;  %v957_v29 = vsel %vm619_vm0, %v6985_v52, %v5670_v13 }
 0x129   : > { %v958_v39 = vsel %vm619_vm0, %v6993_v58, %v5671_v15 }
 0x12a   : > { %1363 = vmatmul.mubr.bf16.vlgmr.msra.gmra.mrb[0].mxu1 %v1016_v44  ;;  %v5719_v60 = vpop.permute.xlu0 %5718  ;;  %v974_v63 = vsel %vm970_vm4, %v5706_v45, %v5711_v53  ;;  %v973_v1 = vsel %vm970_vm4, %v5705_v48, %v5710_v54  ;;  %v964_v35 = vsel %vm9417_vm7, %v955_v62, %v5705_v48 }
 0x12b   : > { %v5714_v55 = vpop.permute.xlu1 %5713  ;;  %5369 = vmatprep.mubr.msk.bf16.mxu1 %vm619_vm0, %v1021_v46  ;;  %v5721_v2 = vunpack.i.h.bf16 %v5719_v60  ;;  %v5720_v4 = vunpack.i.l.bf16 %v5719_v60  ;;  %v965_v46 = vsel %vm9417_vm7, %v956_v49, %v5706_v45 }
 0x12c   : > { %v5716_v56 = vunpack.i.h.bf16 %v5714_v55  ;;  %v5715_v59 = vunpack.i.l.bf16 %v5714_v55  ;;  %v1018_v9 = vpack.c.bf16 %v965_v46, %v964_v35  ;;  %v1029_v46 = vpack.c.bf16 %v728_v36, %v7031_v12 }
 0x12e   : > { %v982_v5 = vsel %vm979_vm5, %v973_v1, %v5715_v59  ;;  %v983_v34 = vsel %vm979_vm5, %v974_v63, %v5716_v56  ;;  %v5729_v50 = vpop.permute.xlu0 %5728 }
 0x12f   : > { %v5724_v6 = vpop.permute.xlu1 %5723  ;;  %v991_v33 = vsel %vm9416_vm6, %v982_v5, %v5720_v4  ;;  %v992_v7 = vsel %vm9416_vm6, %v983_v34, %v5721_v2  ;;  %v5731_v32 = vunpack.i.h.bf16 %v5729_v50  ;;  %v5730_v23 = vunpack.i.l.bf16 %v5729_v50 }
 0x130   : > { %v1019_v8 = vpack.c.bf16 %v992_v7, %v991_v33  ;;  %v5726_v10 = vunpack.i.h.bf16 %v5724_v6  ;;  %v5725_v11 = vunpack.i.l.bf16 %v5724_v6 }
 0x131   : > { %v966_v52 = vsel %vm9417_vm7, %v957_v29, %v5730_v23  ;;  %v967_v53 = vsel %vm9417_vm7, %v958_v39, %v5731_v32 }
 0x132   : > { %1305 = vmatprep.mubr.bf16.mxu0 %v1019_v8  ;;  %v5739_v16 = vpop.permute.xlu0 %5738  ;;  %v999_v24 = vsel %vm610_vm3, %v5720_v4, %v5725_v11  ;;  %v1000_v25 = vsel %vm610_vm3, %v5721_v2, %v5726_v10  ;;  %v1022_v1 = vpack.c.bf16 %v967_v53, %v966_v52  ;;  %v2873_v53 = vld [vmem:[#allocation3 + $0x198] sm:$0xff] }
 0x133   : > { %v5734_v14 = vpop.permute.xlu1 %5733  ;;  %1306 = vmatmul.mubr.bf16.gmra.mrb[4].mxu0 %v1018_v9  ;;  %v5741_v21 = vunpack.i.h.bf16 %v5739_v16  ;;  %v5740_v22 = vunpack.i.l.bf16 %v5739_v16 }
 0x134   : > { %v5736_v17 = vunpack.i.h.bf16 %v5734_v14  ;;  %v5735_v20 = vunpack.i.l.bf16 %v5734_v14 }
 0x135   : > { %v1008_v27 = vsel %vm1005_vm8, %v999_v24, %v5740_v22  ;;  %v1009_v28 = vsel %vm1005_vm8, %v1000_v25, %v5741_v21 }
 0x136   : > { %v5749_v31 = vpop.permute.xlu0 %5748  ;;  %v1020_v38 = vpack.c.bf16 %v1009_v28, %v1008_v27  ;;  %v975_v41 = vsel %vm970_vm4, %v5730_v23, %v5735_v20  ;;  %v976_v42 = vsel %vm970_vm4, %v5731_v32, %v5736_v17 }
 0x137   : > { %v5744_v26 = vpop.permute.xlu1 %5743  ;;  %v5751_v43 = vunpack.i.h.bf16 %v5749_v31  ;;  %v5750_v44 = vunpack.i.l.bf16 %v5749_v31 }
 0x138   : > { %v5746_v51 = vunpack.i.h.bf16 %v5744_v26  ;;  %v5745_v30 = vunpack.i.l.bf16 %v5744_v26  ;;  %1371 = vmatmul.mubr.bf16.gmra.mrb[4].mxu1 %v1020_v38 }
 0x139   : > { %5370 = vmatprep.mubr.msk.bf16.mxu1 %vm619_vm0, %v1025_v47 }
 0x13a   : > { %v984_v45 = vsel %vm979_vm5, %v975_v41, %v5745_v30  ;;  %v985_v48 = vsel %vm979_vm5, %v976_v42, %v5746_v51  ;;  %v5759_v60 = vpop.permute.xlu0 %5758 }
 0x13b   : > { %v5754_v58 = vpop.permute.xlu1 %5753  ;;  %v993_v54 = vsel %vm9416_vm6, %v984_v45, %v5750_v44  ;;  %v994_v55 = vsel %vm9416_vm6, %v985_v48, %v5751_v43  ;;  %v5761_v49 = vunpack.i.h.bf16 %v5759_v60  ;;  %v5760_v63 = vunpack.i.l.bf16 %v5759_v60  ;;  %v2682_v45 = vld [vmem:[#allocation3 + $0x1] sm:$0xff]  ;;  %v2683_v48 = vld [vmem:[#allocation3 + $0x9] sm:$0xff] }
 0x13c   : > { %v5756_v56 = vunpack.i.h.bf16 %v5754_v58  ;;  %v5755_v59 = vunpack.i.l.bf16 %v5754_v58  ;;  %v1023_v62 = vpack.c.bf16 %v994_v55, %v993_v54  ;;  %v5877_v52 = vpack.i.bf16 %v2683_v48, %v2682_v45  ;;  %v2874_v58 = vld [vmem:[#allocation3 + $0x1a0] sm:$0xff] }
 0x13d   : > { %v2714_v54 = vld [vmem:[#allocation3 + $0x2] sm:$0xff]  ;;  %v5887_v55 = vpack.i.bf16 %v2874_v58, %v2873_v53 }
 0x13e   : > { %1313 = vmatprep.mubr.bf16.mxu0 %v1023_v62  ;;  %v1001_v2 = vsel %vm610_vm3, %v5750_v44, %v5755_v59  ;;  %v1002_v4 = vsel %vm610_vm3, %v5751_v43, %v5756_v56  ;;  %v5769_v34 = vpop.permute.xlu0 %5768  ;;  %5878 = vrot.lane.b32.xlu0 %v5877_v52, %s6639_s13  ;;  %v2715_v56 = vld [vmem:[#allocation3 + $0xa] sm:$0xff] }
 0x13f   : > { %v5764_v37 = vpop.permute.xlu1 %5763  ;;  %1314 = vmatmul.mubr.bf16.gmra.mrb[8].mxu0 %v1022_v1  ;;  %v1010_v47 = vsel %vm1005_vm8, %v1001_v2, %v5760_v63  ;;  %v1011_v5 = vsel %vm1005_vm8, %v1002_v4, %v5761_v49  ;;  %v5771_v7 = vunpack.i.h.bf16 %v5769_v34  ;;  %v5770_v50 = vunpack.i.l.bf16 %v5769_v34  ;;  %5888 = vrot.lane.b32.xlu1 %v5887_v55, %s6635_s20 }
 0x140   : > { %v1024_v35 = vpack.c.bf16 %v1011_v5, %v1010_v47  ;;  %v5766_v6 = vunpack.i.h.bf16 %v5764_v37  ;;  %v5765_v33 = vunpack.i.l.bf16 %v5764_v37  ;;  %v5882_v59 = vpack.i.bf16 %v2715_v56, %v2714_v54  ;;  %v7255_v37 = vld [vmem:[%s9401_s4] ss:$0 sm:$0xff] }
 0x142   : > { %1379 = vmatmul.mubr.bf16.gmra.mrb[8].mxu1 %v1024_v35  ;;  %v5779_v11 = vpop.permute.xlu0 %5778  ;;  %v978_v15 = vsel %vm970_vm4, %v5766_v6, %v5771_v7  ;;  %v977_v16 = vsel %vm970_vm4, %v5765_v33, %v5770_v50  ;;  %5883 = vrot.lane.b32.xlu0 %v5882_v59, %s6633_s19 }
 0x143   : > { %v5774_v8 = vpop.permute.xlu1 %5773  ;;  %5371 = vmatprep.mubr.msk.bf16.mxu1 %vm619_vm0, %v1029_v46  ;;  %v5781_v13 = vunpack.i.h.bf16 %v5779_v11  ;;  %v5780_v14 = vunpack.i.l.bf16 %v5779_v11 }
 0x144   : > { %v5776_v9 = vunpack.i.h.bf16 %v5774_v8  ;;  %v5775_v10 = vunpack.i.l.bf16 %v5774_v8 }
 0x145   : > { %v959_v12 = vsel %vm619_vm0, %v7001_v61, %v5780_v14  ;;  %v960_v20 = vsel %vm619_vm0, %v7012_v3, %v5781_v13 }
 0x146   : > { %v5789_v32 = vpop.permute.xlu0 %5788  ;;  %v986_v23 = vsel %vm979_vm5, %v977_v16, %v5775_v10  ;;  %v987_v24 = vsel %vm979_vm5, %v978_v15, %v5776_v9  ;;  %v968_v27 = vsel %vm9417_vm7, %v959_v12, %v5765_v33  ;;  %v969_v28 = vsel %vm9417_vm7, %v960_v20, %v5766_v6 }
 0x147   : > { %v5784_v17 = vpop.permute.xlu1 %5783  ;;  %v5791_v25 = vunpack.i.h.bf16 %v5789_v32  ;;  %v5790_v26 = vunpack.i.l.bf16 %v5789_v32  ;;  %v1026_v41 = vpack.c.bf16 %v969_v28, %v968_v27 }
 0x148   : > { %v5786_v21 = vunpack.i.h.bf16 %v5784_v17  ;;  %v5785_v22 = vunpack.i.l.bf16 %v5784_v17 }
 0x14a   : > { %v995_v29 = vsel %vm9416_vm6, %v986_v23, %v5785_v22  ;;  %v996_v61 = vsel %vm9416_vm6, %v987_v24, %v5786_v21  ;;  %v1003_v3 = vsel %vm610_vm3, %v5785_v22, %v5790_v26  ;;  %v1004_v31 = vsel %vm610_vm3, %v5786_v21, %v5791_v25  ;;  %v7240_v62 = vpop.permute.xlu0 %5798 }
 0x14b   : > { %v5794_v51 = vpop.permute.xlu1 %5793  ;;  %v1027_v30 = vpack.c.bf16 %v996_v61, %v995_v29  ;;  %v5800_v14 = vunpack.i.l.bf16 %v7240_v62  ;;  %v5801_v16 = vunpack.i.h.bf16 %v7240_v62  ;;  %vm4647_vm6 = vcmask 1046534  }
 0x14c   : > { %v5796_v38 = vunpack.i.h.bf16 %v5794_v51  ;;  %v5795_v39 = vunpack.i.l.bf16 %v5794_v51 }
 0x14d   : > { %1321 = vmatprep.mubr.bf16.mxu0 %v1027_v30 }
 0x14e   : > { %1322 = vmatmul.mubr.bf16.gmra.mrb[12].mxu0 %v1026_v41  ;;  %v1012_v42 = vsel %vm1005_vm8, %v1003_v3, %v5795_v39  ;;  %v1013_v43 = vsel %vm1005_vm8, %v1004_v31, %v5796_v38  ;;  %v7246_v63 = vpop.permute.xlu0 %5808 }
 0x14f   : > { %v1028_v44 = vpack.c.bf16 %v1013_v43, %v1012_v42  ;;  %v7238_v60 = vpop.permute.xlu1 %5803  ;;  %v5810_v20 = vunpack.i.l.bf16 %v7246_v63  ;;  %v5811_v32 = vunpack.i.h.bf16 %v7246_v63 }
 0x150   : > { %v5805_v8 = vunpack.i.l.bf16 %v7238_v60  ;;  %v5806_v13 = vunpack.i.h.bf16 %v7238_v60 }
 0x151   : > { %1387 = vmatmul.mubr.bf16.gmra.mrb[12].mxu1 %v1028_v44 }
 0x152   : > { %v7248_v1 = vpop.permute.xlu0 %5818 }
 0x153   : > { %v7242_v0 = vpop.permute.xlu1 %5813  ;;  %v5821_v25 = vunpack.i.h.bf16 %v7248_v1  ;;  %v5820_v26 = vunpack.i.l.bf16 %v7248_v1 }
 0x154   : > { %v5816_v17 = vunpack.i.h.bf16 %v7242_v0  ;;  %v5815_v12 = vunpack.i.l.bf16 %v7242_v0 }
 0x156   : > { %v7264_v15 = vpop.permute.xlu0 %5828 }
 0x157   : > { %v7244_v49 = vpop.permute.xlu1 %5823  ;;  %v5830_v38 = vunpack.i.l.bf16 %v7264_v15 }
 0x158   : > { %v5825_v23 = vunpack.i.l.bf16 %v7244_v49  ;;  %v5826_v24 = vunpack.i.h.bf16 %v7244_v49 }
 0x15a   : > { %v7278_v30 = vpop.permute.xlu0 %5838 }
 0x15b   : > { %v7250_v4 = vpop.permute.xlu1 %5833 }
 0x15c   : > { %v5835_v27 = vunpack.i.l.bf16 %v7250_v4 }
 0x15f   : > { %v7258_v7 = vpop.permute.xlu1 %5843 }
 0x163   : > { %v7280_v3 = vpop.permute.xlu1 %5853 }
 0x1fa   : > { %v5526_v2 = vpop.f32.mrb[0].mxu0 }
 0x1fb   : > { %v5527_v36 = vpop.f32.mrb[1].mxu0 }
 0x1fc   : > { %v5528_v47 = vadd.f32 %v5527_v36, %v5526_v2  ;;  %v5529_v5 = vpop.f32.mrb[2].mxu0 }
 0x1fd   : > { %v5530_v34 = vpop.f32.mrb[3].mxu0  ;;  %v1364_v35 = vpop.f32.mrb[0].mxu1 }
 0x1fe   : > { %v5531_v46 = vadd.f32 %v5530_v34, %v5529_v5  ;;  %v1300_v6 = vadd.f32 %v5528_v47, %v7255_v37  ;;  %v1366_v33 = vpop.f32.mrb[1].mxu1 }
 0x1ff   : > { %v1367_v50 = vpop.f32.mrb[2].mxu1 }
 0x200   : > { %v1365_v9 = vadd.f32 %v1364_v35, %v1300_v6  ;;  %v1303_v10 = vadd.f32 %v5531_v46, %v7255_v37  ;;  %v1369_v11 = vpop.f32.mrb[3].mxu1 }
 0x202   : > { %v1395_v21 = vmax.f32 %v1365_v9, 0.0  ;;  %v1368_v22 = vadd.f32 %v1367_v50, %v1303_v10 }
 0x204   : > { %v1411_v28 = vcombine.high %v1395_v21, %v1395_v21  ;;  %v1418_v29 = vrot.slane %v1395_v21, %v6845_v40  ;;  %v1396_v61 = vmax.f32 %v1368_v22, 0.0 }
 0x206   : > { %v1425_v42 = vrot.slane %v1411_v28, %v6845_v40  ;;  %v1426_v43 = vcombine.high %v1418_v29, %v1418_v29  ;;  %v1434_v44 = vrot.slane %v1418_v29, %v6845_v40  ;;  %v1460_v45 = vcombine.high %v1396_v61, %v1396_v61  ;;  %v5532_v48 = vpop.f32.mrb[4].mxu0 }
 0x207   : > { %v1467_v52 = vrot.slane %v1396_v61, %v6845_v40  ;;  %v5533_v53 = vpop.f32.mrb[5].mxu0 }
 0x208   : > { %v1427_v56 = vcombine.high %v1425_v42, %v1425_v42  ;;  %v1441_v59 = vrot.slane %v1425_v42, %v6845_v40  ;;  %v1448_v2 = vrot.slane %v1426_v43, %v6845_v40  ;;  %v1456_v36 = vcombine.high %v1434_v44, %v1434_v44  ;;  %v5535_v47 = vpop.f32.mrb[6].mxu0 }
 0x209   : > { %v1806_v5 = vrot.slane %v1434_v44, %v6855_v57  ;;  %v1474_v34 = vrot.slane %v1460_v45, %v6845_v40  ;;  %v1475_v35 = vcombine.high %v1467_v52, %v1467_v52  ;;  %v1483_v46 = vrot.slane %v1467_v52, %v6845_v40  ;;  %v5536_v6 = vpop.f32.mrb[7].mxu0 }
 0x20a   : > { %v1455_v33 = vrot.slane %v1427_v56, %v6845_v40  ;;  %v1457_v50 = vcombine.high %v1441_v59, %v1441_v59  ;;  %v1458_v9 = vcombine.high %v1448_v2, %v1448_v2  ;;  %v1810_v10 = vrot.slane %v1448_v2, %v6855_v57 }
 0x20b   : > { %v1814_v11 = vrot.slane %v1456_v36, %v6855_v57  ;;  %v1822_v21 = vrot.slane %v1441_v59, %v6855_v57  ;;  %v1476_v22 = vcombine.high %v1474_v34, %v1474_v34  ;;  %v1490_v28 = vrot.slane %v1474_v34, %v6845_v40  ;;  %v1372_v2 = vpop.f32.mrb[4].mxu1 }
 0x20c   : > { %v1459_v29 = vcombine.high %v1455_v33, %v1455_v33  ;;  %v1818_v61 = vrot.slane %v1458_v9, %v6855_v57  ;;  %v1826_v42 = vrot.slane %v1455_v33, %v6855_v57  ;;  %v1830_v43 = vrot.slane %v1457_v50, %v6855_v57  ;;  %v1374_v34 = vpop.f32.mrb[5].mxu1 }
 0x20d   : > { %v2123_v44 = vcombine.low %v1806_v5, %v1810_v10  ;;  %v1497_v45 = vrot.slane %v1475_v35, %v6845_v40  ;;  %v1504_v52 = vrot.slane %v1476_v22, %v6845_v40  ;;  %v1505_v56 = vcombine.high %v1483_v46, %v1483_v46  ;;  %v1375_v50 = vpop.f32.mrb[6].mxu1 }
 0x20e   : > { %v1834_v36 = vrot.slane %v1459_v29, %v6855_v57  ;;  %v2124_v59 = vcombine.low %v1814_v11, %v1818_v61  ;;  %v2140_v55 = vcombine.low %v1822_v21, %v1826_v42  ;;  %v1506_v54 = vcombine.high %v1490_v28, %v1490_v28  ;;  %v1377_v39 = vpop.f32.mrb[7].mxu1 }
 0x20f   : > { %v2131_v58 = vrot.slane %v2123_v44, %v6869_v18  ;;  %v1507_v9 = vcombine.high %v1497_v45, %v1497_v45  ;;  %v1508_v41 = vcombine.high %v1504_v52, %v1504_v52  ;;  %v1838_v33 = vrot.slane %v1483_v46, %v6855_v57  ;;  %v6544_v46 = vld [vmem:[%s9402_s5] sm:$0xff]  }
 0x210   : > { %v2138_v5 = vrot.slane %v2124_v59, %v6869_v18  ;;  %v2141_v35 = vcombine.low %v1830_v43, %v1834_v36  ;;  %v2148_v10 = vrot.slane %v2140_v55, %v6869_v18  ;;  %v1842_v22 = vrot.slane %v1497_v45, %v6855_v57  ;;  %4423 = vmatpush1.bf16.msra.mxu0 %v6544_v46 }
 0x211   : > { %v1846_v11 = vrot.slane %v1505_v56, %v6855_v57  ;;  %v1850_v21 = vrot.slane %v1507_v9, %v6855_v57  ;;  %v1854_v29 = vrot.slane %v1490_v28, %v6855_v57  ;;  %v1858_v61 = vrot.slane %v1504_v52, %v6855_v57  ;;  %4424 = vmatprep.subr.bf16.mxu0 %v6630_v19 }
 0x212   : > { %v1862_v42 = vrot.slane %v1506_v54, %v6855_v57  ;;  %v1866_v43 = vrot.slane %v1508_v41, %v6855_v57  ;;  %v2157_v55 = vcombine.low %v1838_v33, %v1842_v22  ;;  %v5534_v44 = vadd.f32 %v5533_v53, %v5532_v48  ;;  %v5538_v45 = vpop.f32.mrb[8].mxu0  ;;  %5564 = vmatpush1.bf16.msra.mxu1 %v6544_v46 }
 0x213   : > { %v2158_v39 = vcombine.low %v1846_v11, %v1850_v21  ;;  %v2174_v36 = vcombine.low %v1854_v29, %v1858_v61  ;;  %v5537_v56 = vadd.f32 %v5536_v6, %v5535_v47  ;;  %v2139_v59 = vcombine.low %v2131_v58, %v2138_v5  ;;  %v5539_v34 = vpop.f32.mrb[9].mxu0  ;;  %v6545_v6 = vld [vmem:[%s9402_s5 + $0x8] sm:$0xff]   ;;  %5551 = vmatprep.subr.bf16.mxu1 %v6630_v19 }
 0x214   : > { %v2165_v28 = vrot.slane %v2157_v55, %v6869_v18  ;;  %v2175_v52 = vcombine.low %v1862_v42, %v1866_v43  ;;  %v1308_v9 = vadd.f32 %v5534_v44, %v7255_v37  ;;  %v2155_v31 = vrot.slane %v2141_v35, %v6869_v18  ;;  %v5541_v51 = vpop.f32.mrb[10].mxu0  ;;  %4425 = vmatpush1.bf16.msra.mxu0 %v6545_v6 }
 0x215   : > { %v2172_v41 = vrot.slane %v2158_v39, %v6869_v18  ;;  %v2182_v48 = vrot.slane %v2174_v36, %v6869_v18  ;;  %v1311_v53 = vadd.f32 %v5537_v56, %v7255_v37  ;;  %v2541_v58 = vsel %vm970_vm4, %v2139_v59, %v5805_v8  ;;  %v5542_v54 = vpop.f32.mrb[11].mxu0  ;;  %v1380_v47 = vpop.f32.mrb[8].mxu1  ;;  %4426 = vmatprep.subr.bf16.mxu0 %v6630_v19 }
 0x216   : > { %v1373_v33 = vadd.f32 %v1372_v2, %v1308_v9  ;;  %v2156_v5 = vcombine.low %v2148_v10, %v2155_v31  ;;  %2620 = vst.msk [vmem:[#allocation3 + $0x31] sm:$0xff] %vm2571_vm9, %v2541_v58  ;;  %v2539_v35 = vsel %vm970_vm4, %v2139_v59, %v5800_v14  ;;  %v2189_v22 = vrot.slane %v2175_v52, %v6869_v18  ;;  %v1382_v11 = vpop.f32.mrb[9].mxu1  ;;  %v6547_v52 = vld [vmem:[%s9402_s5 + $0x18] sm:$0xff]  }
 0x217   : > { %v1376_v8 = vadd.f32 %v1375_v50, %v1311_v53  ;;  %2618 = vst.msk [vmem:[#allocation3 + $0x19] sm:$0xff] %vm2571_vm9, %v2539_v35  ;;  %v2173_v21 = vcombine.low %v2165_v28, %v2172_v41  ;;  %v5540_v29 = vadd.f32 %v5539_v34, %v5538_v45  ;;  %v5543_v61 = vadd.f32 %v5542_v54, %v5541_v51  ;;  %v7342_v46 = vpop.f32.mrb[10].mxu1  ;;  %v7350_v50 = vpop.permute.xlu0 %5848 }
 0x218   : > { %v1397_v31 = vmax.f32 %v1373_v33, 0.0  ;;  %v2542_v2 = vsel %vm970_vm4, %v2156_v5, %v5806_v13  ;;  %v2540_v14 = vsel %vm970_vm4, %v2156_v5, %v5801_v16  ;;  %v2190_v10 = vcombine.low %v2182_v48, %v2189_v22  ;;  %v1385_v42 = vpop.f32.mrb[11].mxu1  ;;  %v6546_v16 = vld [vmem:[%s9402_s5 + $0x10] sm:$0xff]   ;;  %5565 = vmatpush1.bf16.msra.mxu1 %v6545_v6 }
 0x219   : > { %v1398_v43 = vmax.f32 %v1376_v8, 0.0  ;;  %2621 = vst.msk [vmem:[#allocation3 + $0x39] sm:$0xff] %vm2571_vm9, %v2542_v2  ;;  %2619 = vst.msk [vmem:[#allocation3 + $0x21] sm:$0xff] %vm2571_vm9, %v2540_v14  ;;  %v2545_v60 = vsel %vm970_vm4, %v2173_v21, %v5815_v12  ;;  %v2543_v62 = vsel %vm970_vm4, %v2173_v21, %v5810_v20  ;;  %v1316_v13 = vadd.f32 %v5540_v29, %v7255_v37 }
 0x21a   : > { %v1509_v51 = vcombine.high %v1397_v31, %v1397_v31  ;;  %v1516_v55 = vrot.slane %v1397_v31, %v6845_v40  ;;  %v2546_v44 = vsel %vm970_vm4, %v2190_v10, %v5816_v17  ;;  %2624 = vst.msk [vmem:[#allocation3 + $0x61] sm:$0xff] %vm2571_vm9, %v2545_v60  ;;  %v2544_v12 = vsel %vm970_vm4, %v2190_v10, %v5811_v32 }
 0x21b   : > { %2622 = vst.msk [vmem:[#allocation3 + $0x49] sm:$0xff] %vm2571_vm9, %v2543_v62  ;;  %5552 = vmatprep.subr.bf16.mxu1 %v6630_v19  ;;  %v1558_v20 = vcombine.high %v1398_v43, %v1398_v43  ;;  %v1565_v45 = vrot.slane %v1398_v43, %v6845_v40  ;;  %2625 = vst.msk [vmem:[#allocation3 + $0x69] sm:$0xff] %vm2571_vm9, %v2546_v44  ;;  %v1381_v0 = vadd.f32 %v1380_v47, %v1316_v13 }
 0x21c   : > { %2623 = vst.msk [vmem:[#allocation3 + $0x51] sm:$0xff] %vm2571_vm9, %v2544_v12  ;;  %v5850_v17 = vunpack.i.l.bf16 %v7350_v50  ;;  %4427 = vmatpush1.bf16.msra.mxu0 %v6546_v16  ;;  %v1523_v39 = vrot.slane %v1509_v51, %v6845_v40  ;;  %v1524_v63 = vcombine.high %v1516_v55, %v1516_v55  ;;  %v1532_v32 = vrot.slane %v1516_v55, %v6845_v40 }
 0x21d   : > { %v5856_v36 = vunpack.i.h.bf16 %v7280_v3  ;;  %4428 = vmatprep.subr.bf16.mxu0 %v6630_v19  ;;  %v1572_v56 = vrot.slane %v1558_v20, %v6845_v40  ;;  %v1573_v59 = vcombine.high %v1565_v45, %v1565_v45  ;;  %v1581_v34 = vrot.slane %v1565_v45, %v6845_v40  ;;  %5566 = vmatpush1.bf16.msra.mxu1 %v6546_v16 }
 0x21e   : > { %v5851_v28 = vunpack.i.h.bf16 %v7350_v50  ;;  %v1525_v9 = vcombine.high %v1523_v39, %v1523_v39  ;;  %v1539_v41 = vrot.slane %v1523_v39, %v6845_v40  ;;  %v1546_v48 = vrot.slane %v1524_v63, %v6845_v40  ;;  %5553 = vmatprep.subr.bf16.mxu1 %v6630_v19 }
 0x21f   : > { %v1554_v53 = vcombine.high %v1532_v32, %v1532_v32  ;;  %v1574_v58 = vcombine.high %v1572_v56, %v1572_v56  ;;  %v1588_v54 = vrot.slane %v1572_v56, %v6845_v40  ;;  %v1595_v47 = vrot.slane %v1573_v59, %v6845_v40 }
 0x220   : > { %v1319_v6 = vadd.f32 %v5543_v61, %v7255_v37  ;;  %4429 = vmatpush1.bf16.msra.mxu0 %v6547_v52  ;;  %v1553_v33 = vrot.slane %v1525_v9, %v6845_v40  ;;  %v1555_v5 = vcombine.high %v1539_v41, %v1539_v41  ;;  %v1556_v35 = vcombine.high %v1546_v48, %v1546_v48 }
 0x221   : > { %v1874_v22 = vrot.slane %v1546_v48, %v6855_v57  ;;  %4430 = vmatprep.subr.bf16.mxu0 %v6630_v19  ;;  %v1870_v11 = vrot.slane %v1532_v32, %v6855_v57  ;;  %v1878_v8 = vrot.slane %v1554_v53, %v6855_v57  ;;  %v1602_v21 = vrot.slane %v1574_v58, %v6845_v40  ;;  %v7401_v31 = vpop.f32.mrb[12].mxu0  ;;  %v6548_v53 = vld [vmem:[%s9402_s5 + $0x20] sm:$0xff]  }
 0x222   : > { %v1399_v29 = vmax.f32 %v1381_v0, 0.0  ;;  %5567 = vmatpush1.bf16.msra.mxu1 %v6547_v52  ;;  %v1557_v61 = vcombine.high %v1553_v33, %v1553_v33  ;;  %v1882_v2 = vrot.slane %v1556_v35, %v6855_v57  ;;  %v1890_v14 = vrot.slane %v1553_v33, %v6855_v57  ;;  %v7405_v42 = vpop.f32.mrb[13].mxu0 }
 0x223   : > { %v1603_v10 = vcombine.high %v1581_v34, %v1581_v34  ;;  %5554 = vmatprep.subr.bf16.mxu1 %v6630_v19  ;;  %v1886_v43 = vrot.slane %v1539_v41, %v6855_v57  ;;  %v2191_v60 = vcombine.low %v1870_v11, %v1874_v22  ;;  %v1605_v62 = vcombine.high %v1595_v47, %v1595_v47  ;;  %v7409_v16 = vpop.f32.mrb[14].mxu0 }
 0x224   : > { %v1606_v13 = vcombine.high %v1602_v21, %v1602_v21  ;;  %v1894_v51 = vrot.slane %v1555_v5, %v6855_v57  ;;  %v1898_v55 = vrot.slane %v1557_v61, %v6855_v57  ;;  %v2192_v44 = vcombine.low %v1878_v8, %v1882_v2  ;;  %v7413_v20 = vpop.f32.mrb[15].mxu0  ;;  %v7415_v45 = vpop.f32.mrb[12].mxu1  ;;  %4431 = vmatpush1.bf16.msra.mxu0 %v6548_v53  ;;  %v6549_v61 = vld [vmem:[%s9402_s5 + $0x28] sm:$0xff]  }
 0x225   : > { %v1604_v12 = vcombine.high %v1588_v54, %v1588_v54  ;;  %v7417_v0 = vcombine.low %v1886_v43, %v1890_v14  ;;  %v1902_v39 = vrot.slane %v1581_v34, %v6855_v57  ;;  %v1906_v63 = vrot.slane %v1595_v47, %v6855_v57  ;;  %v1390_v56 = vpop.f32.mrb[13].mxu1  ;;  %4432 = vmatprep.subr.bf16.mxu0 %v6630_v19 }
 0x226   : > { %v1914_v32 = vrot.slane %v1605_v62, %v6855_v57  ;;  %v2199_v59 = vrot.slane %v2191_v60, %v6869_v18  ;;  %v2206_v52 = vrot.slane %v2192_v44, %v6869_v18  ;;  %v2209_v9 = vcombine.low %v1894_v51, %v1898_v55  ;;  %v7425_v48 = vpop.f32.mrb[14].mxu1  ;;  %5568 = vmatpush1.bf16.msra.mxu1 %v6548_v53 }
 0x227   : > { %v1910_v41 = vrot.slane %v1603_v10, %v6855_v57  ;;  %v1918_v34 = vrot.slane %v1588_v54, %v6855_v57  ;;  %v1922_v58 = vrot.slane %v1602_v21, %v6855_v57  ;;  %v7433_v47 = vrot.slane %v1606_v13, %v6855_v57  ;;  %v1393_v5 = vpop.f32.mrb[15].mxu1  ;;  %5555 = vmatprep.subr.bf16.mxu1 %v6630_v19 }
 0x228   : > { %v7435_v33 = vcombine.low %v1902_v39, %v1906_v63  ;;  %v1607_v22 = vcombine.high %v1399_v29, %v1399_v29  ;;  %v1614_v11 = vrot.slane %v1399_v29, %v6845_v40  ;;  %v1384_v8 = vadd.f32 %v7342_v46, %v1319_v6  ;;  %4433 = vmatpush1.bf16.msra.mxu0 %v6549_v61 }
 0x229   : > { %v2226_v35 = vcombine.low %v1910_v41, %v1914_v32  ;;  %v2216_v54 = vrot.slane %v7417_v0, %v6869_v18  ;;  %v7445_v21 = vrot.slane %v1604_v12, %v6855_v57  ;;  %v7447_v2 = vcombine.low %v1918_v34, %v1922_v58  ;;  %v6550_v0 = vld [vmem:[%s9402_s5 + $0x30] sm:$0xff]   ;;  %4434 = vmatprep.subr.bf16.mxu0 %v6630_v19 }
 0x22a   : > { %v7449_v14 = vcombine.low %v2199_v59, %v2206_v52  ;;  %v2233_v46 = vrot.slane %v7435_v33, %v6869_v18  ;;  %v1621_v6 = vrot.slane %v1607_v22, %v6845_v40  ;;  %v1622_v29 = vcombine.high %v1614_v11, %v1614_v11  ;;  %5569 = vmatpush1.bf16.msra.mxu1 %v6549_v61 }
 0x22b   : > { %v1630_v10 = vrot.slane %v1614_v11, %v6845_v40  ;;  %v7457_v43 = vrot.slane %v2226_v35, %v6869_v18  ;;  %v2243_v60 = vcombine.low %v7445_v21, %v7433_v47  ;;  %v1400_v62 = vmax.f32 %v1384_v8, 0.0  ;;  %5556 = vmatprep.subr.bf16.mxu1 %v6630_v19  ;;  %v6551_v8 = vld [vmem:[%s9402_s5 + $0x38] sm:$0xff]  }
 0x22c   : > { %v2549_v13 = vsel %vm970_vm4, %v7449_v14, %v5825_v23  ;;  %v1623_v51 = vcombine.high %v1621_v6, %v1621_v6  ;;  %v1637_v55 = vrot.slane %v1621_v6, %v6845_v40  ;;  %v1644_v44 = vrot.slane %v1622_v29, %v6845_v40  ;;  %4435 = vmatpush1.bf16.msra.mxu0 %v6550_v0  ;;  %v2684_v21 = vld [vmem:[#allocation3 + $0x19] sm:$0xff] }
 0x22d   : > { %v1652_v12 = vcombine.high %v1630_v10, %v1630_v10  ;;  %2628 = vst.msk [vmem:[#allocation3 + $0x91] sm:$0xff] %vm2571_vm9, %v2549_v13  ;;  %v2250_v39 = vrot.slane %v7447_v2, %v6869_v18  ;;  %v1656_v63 = vcombine.high %v1400_v62, %v1400_v62  ;;  %v1663_v23 = vrot.slane %v1400_v62, %v6845_v40  ;;  %v2716_v2 = vld [vmem:[#allocation3 + $0x1a] sm:$0xff] }
 0x22e   : > { %v2223_v32 = vrot.slane %v2209_v9, %v6869_v18  ;;  %v1651_v56 = vrot.slane %v1623_v51, %v6845_v40  ;;  %v1654_v59 = vcombine.high %v1644_v44, %v1644_v44  ;;  %v1934_v52 = vrot.slane %v1630_v10, %v6855_v57  ;;  %4436 = vmatprep.subr.bf16.mxu0 %v6630_v19 }
 0x22f   : > { %v1938_v41 = vrot.slane %v1644_v44, %v6855_v57  ;;  %v1653_v53 = vcombine.high %v1637_v55, %v1637_v55  ;;  %v1942_v34 = vrot.slane %v1652_v12, %v6855_v57  ;;  %v1670_v58 = vrot.slane %v1656_v63, %v6845_v40  ;;  %5570 = vmatpush1.bf16.msra.mxu1 %v6550_v0  ;;  %v6552_v0 = vld [vmem:[%s9402_s5 + $0x40] sm:$0xff]  }
 0x230   : > { %v1671_v5 = vcombine.high %v1663_v23, %v1663_v23  ;;  %v1655_v35 = vcombine.high %v1651_v56, %v1651_v56  ;;  %v1946_v9 = vrot.slane %v1654_v59, %v6855_v57  ;;  %v1950_v22 = vrot.slane %v1637_v55, %v6855_v57  ;;  %5557 = vmatprep.subr.bf16.mxu1 %v6630_v19 }
 0x231   : > { %v1954_v11 = vrot.slane %v1651_v56, %v6855_v57  ;;  %v7489_v61 = vcombine.low %v1934_v52, %v1938_v41  ;;  %v1672_v6 = vcombine.high %v1670_v58, %v1670_v58  ;;  %v1679_v29 = vrot.slane %v1663_v23, %v6845_v40  ;;  %4437 = vmatpush1.bf16.msra.mxu0 %v6551_v8 }
 0x232   : > { %v1686_v10 = vrot.slane %v1670_v58, %v6845_v40  ;;  %v7495_v62 = vrot.slane %v1655_v35, %v6855_v57  ;;  %v2260_v13 = vcombine.low %v1942_v34, %v1946_v9  ;;  %v1693_v55 = vrot.slane %v1671_v5, %v6845_v40  ;;  %4438 = vmatprep.subr.bf16.mxu0 %v6630_v19 }
 0x233   : > { %v7497_v51 = vcombine.low %v1950_v22, %v1954_v11  ;;  %v7501_v44 = vrot.slane %v1653_v53, %v6855_v57  ;;  %v1700_v12 = vrot.slane %v1672_v6, %v6845_v40  ;;  %v1701_v63 = vcombine.high %v1679_v29, %v1679_v29  ;;  %v2687_v22 = vld [vmem:[#allocation3 + $0x39] sm:$0xff]  ;;  %5571 = vmatpush1.bf16.msra.mxu1 %v6551_v8 }
 0x234   : > { %v2224_v23 = vcombine.low %v2216_v54, %v2223_v32  ;;  %v2267_v56 = vrot.slane %v7489_v61, %v6869_v18  ;;  %v2274_v59 = vrot.slane %v2260_v13, %v6869_v18  ;;  %v1702_v52 = vcombine.high %v1686_v10, %v1686_v10  ;;  %5558 = vmatprep.subr.bf16.mxu1 %v6630_v19 }
 0x235   : > { %v1703_v41 = vcombine.high %v1693_v55, %v1693_v55  ;;  %v2277_v53 = vcombine.low %v7501_v44, %v7495_v62  ;;  %v1704_v34 = vcombine.high %v1700_v12, %v1700_v12  ;;  %v1966_v54 = vrot.slane %v1679_v29, %v6855_v57  ;;  %4439 = vmatpush1.bf16.msra.mxu0 %v6552_v0 }
 0x236   : > { %v1970_v32 = vrot.slane %v1693_v55, %v6855_v57  ;;  %v2284_v58 = vrot.slane %v7497_v51, %v6869_v18  ;;  %v1974_v5 = vrot.slane %v1701_v63, %v6855_v57  ;;  %v1986_v9 = vrot.slane %v1700_v12, %v6855_v57  ;;  %4440 = vmatprep.subr.bf16.mxu0 %v6630_v19 }
 0x237   : > { %v1978_v35 = vrot.slane %v1703_v41, %v6855_v57  ;;  %v1982_v11 = vrot.slane %v1686_v10, %v6855_v57  ;;  %v2550_v6 = vsel %vm970_vm4, %v2224_v23, %v5826_v24  ;;  %v2547_v29 = vsel %vm970_vm4, %v7449_v14, %v5820_v26  ;;  %v2686_v24 = vld [vmem:[#allocation3 + $0x31] sm:$0xff]  ;;  %v2685_v26 = vld [vmem:[#allocation3 + $0x21] sm:$0xff]  ;;  %5572 = vmatpush1.bf16.msra.mxu1 %v6552_v0 }
 0x238   : > { %v7522_v61 = vcombine.low %v1966_v54, %v1970_v32  ;;  %v7533_v62 = vrot.slane %v1704_v34, %v6855_v57  ;;  %2629 = vst.msk [vmem:[#allocation3 + $0x99] sm:$0xff] %vm2571_vm9, %v2550_v6  ;;  %v2548_v8 = vsel %vm970_vm4, %v2224_v23, %v5821_v25  ;;  %2626 = vst.msk [vmem:[#allocation3 + $0x79] sm:$0xff] %vm2571_vm9, %v2547_v29  ;;  %v7547_v14 = vld [vmem:[%s9402_s5 + $0x48] sm:$0xff]   ;;  %v7590_v0 = vld [vmem:[%s9402_s5 + $0x50] sm:$0xff]   ;;  %v7604_v34 = vpop.permute.xlu1 %5863  ;;  %v9425_v54 = vunpack.i.l.bf16 %v7258_v7 }
 0x239   : > { %v2294_v13 = vcombine.low %v1974_v5, %v1978_v35  ;;  %v2241_v49 = vcombine.low %v2233_v46, %v7457_v43  ;;  %v1990_v10 = vrot.slane %v1702_v52, %v6855_v57  ;;  %v7550_v1 = vcombine.low %v1982_v11, %v1986_v9  ;;  %2627 = vst.msk [vmem:[#allocation3 + $0x81] sm:$0xff] %vm2571_vm9, %v2548_v8  ;;  %v2718_v46 = vld [vmem:[#allocation3 + $0x32] sm:$0xff]  ;;  %v2719_v43 = vld [vmem:[#allocation3 + $0x3a] sm:$0xff] }
 0x23a   : > { %v2257_v25 = vrot.slane %v2243_v60, %v6869_v18  ;;  %v7557_v33 = vpack.i.bf16 %v2687_v22, %v2686_v24  ;;  %v2301_v51 = vrot.slane %v7522_v61, %v6869_v18  ;;  %v7576_v12 = vpack.i.bf16 %v2685_v26, %v2684_v21  ;;  %4441 = vmatpush1.bf16.msra.mxu0 %v7547_v14  ;;  %v7625_v22 = vld [vmem:[#allocation3 + $0x18] sm:$0xff] }
 0x23b   : > { %v2308_v55 = vrot.slane %v2294_v13, %v6869_v18  ;;  %v2553_v44 = vsel %vm970_vm4, %v2241_v49, %v5835_v27  ;;  %v2551_v47 = vsel %vm970_vm4, %v2241_v49, %v5830_v38  ;;  %v5546_v27 = vadd.f32 %v7405_v42, %v7401_v31  ;;  %4442 = vmatprep.subr.bf16.mxu0 %v6630_v19  ;;  %v7627_v11 = vld [vmem:[#allocation3 + $0x38] sm:$0xff]  ;;  %v7648_v49 = vld [vmem:[#allocation3 + $0x30] sm:$0xff] }
 0x23c   : > { %v2258_v60 = vcombine.low %v2250_v39, %v2257_v25  ;;  %2632 = vst.msk [vmem:[#allocation3 + $0xc1] sm:$0xff] %vm2571_vm9, %v2553_v44  ;;  %2630 = vst.msk [vmem:[#allocation3 + $0xa9] sm:$0xff] %vm2571_vm9, %v2551_v47  ;;  %5898 = vrot.lane.b32.xlu0 %v7557_v33, %s6639_s13  ;;  %v5549_v38 = vadd.f32 %v7413_v20, %v7409_v16  ;;  %v2311_v63 = vcombine.low %v1990_v10, %v7533_v62  ;;  %v2717_v39 = vld [vmem:[#allocation3 + $0x22] sm:$0xff]  ;;  %v7666_v44 = vpop.permute.xlu0 %5858  ;;  %v7668_v47 = vpop.permute.xlu1 %5873 }
 0x23d   : > { %v7583_v23 = vpack.i.bf16 %v2719_v43, %v2718_v46  ;;  %v2275_v52 = vcombine.low %v2267_v56, %v2274_v59  ;;  %v2291_v41 = vrot.slane %v2277_v53, %v6869_v18  ;;  %v9423_v31 = vunpack.i.h.bf16 %v7250_v4  ;;  %5893 = vrot.lane.b32.xlu1 %v7576_v12, %s6639_s13  ;;  %v7602_v53 = vld [vmem:[#allocation3 + $0x20] sm:$0xff]  ;;  %5559 = vmatprep.subr.bf16.mxu1 %v6630_v19 }
 0x23e   : > { %v9424_v16 = vunpack.i.h.bf16 %v7264_v15  ;;  %v1324_v56 = vadd.f32 %v5546_v27, %v7255_v37  ;;  %v1327_v59 = vadd.f32 %v5549_v38, %v7255_v37  ;;  %v2318_v4 = vrot.slane %v7550_v1, %v6869_v18  ;;  %4443 = vmatpush1.bf16.msra.mxu0 %v7590_v0  ;;  %5573 = vmatpush1.bf16.msra.mxu1 %v7547_v14 }
 0x23f   : > { %v2554_v42 = vsel %vm970_vm4, %v2258_v60, %v9423_v31  ;;  %v2292_v15 = vcombine.low %v2284_v58, %v2291_v41  ;;  %v2557_v32 = vsel %vm970_vm4, %v2275_v52, %v9425_v54  ;;  %v9426_v5 = vunpack.i.l.bf16 %v7278_v30  ;;  %4444 = vmatprep.subr.bf16.mxu0 %v6630_v19  ;;  %5560 = vmatprep.subr.bf16.mxu1 %v6630_v19 }
 0x240   : > { %v2552_v20 = vsel %vm970_vm4, %v2258_v60, %v9424_v16  ;;  %2633 = vst.msk [vmem:[#allocation3 + $0xc9] sm:$0xff] %vm2571_vm9, %v2554_v42  ;;  %5908 = vrot.lane.b32.xlu0 %v7583_v23, %s6633_s19  ;;  %v7619_v35 = vpack.i.bf16 %v2717_v39, %v2716_v2  ;;  %v1389_v9 = vadd.f32 %v7415_v45, %v1324_v56  ;;  %2636 = vst.msk [vmem:[#allocation3 + $0xf1] sm:$0xff] %vm2571_vm9, %v2557_v32 }
 0x241   : > { %2631 = vst.msk [vmem:[#allocation3 + $0xb1] sm:$0xff] %vm2571_vm9, %v2552_v20  ;;  %v2555_v37 = vsel %vm970_vm4, %v2275_v52, %v9426_v5  ;;  %v1392_v58 = vadd.f32 %v7425_v48, %v1327_v59  ;;  %v2309_v61 = vcombine.low %v2301_v51, %v2308_v55  ;;  %v9427_v6 = vunpack.i.h.bf16 %v7258_v7  ;;  %v7642_v48 = vld [vmem:[%s9402_s5 + $0x58] sm:$0xff]   ;;  %v2690_v59 = vld [vmem:[#allocation3 + $0x61] sm:$0xff] }
 0x242   : > { %2634 = vst.msk [vmem:[#allocation3 + $0xd9] sm:$0xff] %vm2571_vm9, %v2555_v37  ;;  %v9428_v62 = vunpack.i.h.bf16 %v7278_v30  ;;  %v5912_v45 = vpack.i.bf16 %v7602_v53, %v7625_v22  ;;  %v2325_v8 = vrot.slane %v2311_v63, %v6869_v18  ;;  %5903 = vrot.lane.b32.xlu1 %v7619_v35, %s6633_s19  ;;  %v1401_v7 = vmax.f32 %v1389_v9, 0.0  ;;  %4445 = vmatpush1.bf16.msra.mxu0 %v7642_v48  ;;  %v7682_v63 = vld [vmem:[%s9402_s5 + $0x60] sm:$0xff]  }
 0x243   : > { %v2558_v29 = vsel %vm970_vm4, %v2292_v15, %v9427_v6  ;;  %v1402_v30 = vmax.f32 %v1392_v58, 0.0  ;;  %v9429_v24 = vunpack.i.l.bf16 %v7280_v3  ;;  %v2559_v10 = vsel %vm970_vm4, %v2309_v61, %v5850_v17  ;;  %4446 = vmatprep.subr.bf16.mxu0 %v6630_v19  ;;  %5574 = vmatpush1.bf16.msra.mxu1 %v7590_v0 }
 0x244   : > { %v2556_v13 = vsel %vm970_vm4, %v2292_v15, %v9428_v62  ;;  %2637 = vst.msk [vmem:[#allocation3 + $0xf9] sm:$0xff] %vm2571_vm9, %v2558_v29  ;;  %v5917_v1 = vpack.i.bf16 %v7627_v11, %v7648_v49  ;;  %v2326_v25 = vcombine.low %v2318_v4, %v2325_v8  ;;  %2638 = vst.msk [vmem:[#allocation3 + $0x109] sm:$0xff] %vm2571_vm9, %v2559_v10  ;;  %v5866_v46 = vunpack.i.h.bf16 %v7604_v34 }
 0x245   : > { %2635 = vst.msk [vmem:[#allocation3 + $0xe1] sm:$0xff] %vm2571_vm9, %v2556_v13  ;;  %v2561_v26 = vsel %vm970_vm4, %v2309_v61, %v9429_v24  ;;  %v1705_v43 = vcombine.high %v1401_v7, %v1401_v7  ;;  %v1712_v51 = vrot.slane %v1401_v7, %v6845_v40  ;;  %v1754_v55 = vcombine.high %v1402_v30, %v1402_v30 }
 0x246   : > { %2640 = vst.msk [vmem:[#allocation3 + $0x121] sm:$0xff] %vm2571_vm9, %v2561_v26  ;;  %v1761_v17 = vrot.slane %v1402_v30, %v6845_v40  ;;  %5913 = vrot.lane.b32.xlu0 %v5912_v45, %s6640_s29  ;;  %v2562_v21 = vsel %vm970_vm4, %v2326_v25, %v5856_v36  ;;  %v2560_v60 = vsel %vm970_vm4, %v2326_v25, %v5851_v28  ;;  %v5865_v27 = vunpack.i.l.bf16 %v7604_v34  ;;  %v2691_v28 = vld [vmem:[#allocation3 + $0x69] sm:$0xff] }
 0x247   : > { %v5861_v38 = vunpack.i.h.bf16 %v7666_v44  ;;  %v1719_v2 = vrot.slane %v1705_v43, %v6845_v40  ;;  %v1720_v3 = vcombine.high %v1712_v51, %v1712_v51  ;;  %v1728_v36 = vrot.slane %v1712_v51, %v6845_v40  ;;  %5918 = vrot.lane.b32.xlu1 %v5917_v1, %s6640_s29  ;;  %2641 = vst.msk [vmem:[#allocation3 + $0x129] sm:$0xff] %vm2571_vm9, %v2562_v21 }
 0x248   : > { %v1768_v50 = vrot.slane %v1754_v55, %v6845_v40  ;;  %2639 = vst.msk [vmem:[#allocation3 + $0x111] sm:$0xff] %vm2571_vm9, %v2560_v60  ;;  %v1769_v39 = vcombine.high %v1761_v17, %v1761_v17  ;;  %v1777_v52 = vrot.slane %v1761_v17, %v6845_v40  ;;  %v5860_v41 = vunpack.i.l.bf16 %v7666_v44  ;;  %4447 = vmatpush1.bf16.msra.mxu0 %v7682_v63 }
 0x249   : > { %v5875_v31 = vunpack.i.l.bf16 %v7668_v47  ;;  %v1721_v42 = vcombine.high %v1719_v2, %v1719_v2  ;;  %v1735_v16 = vrot.slane %v1719_v2, %v6845_v40  ;;  %v1742_v20 = vrot.slane %v1720_v3, %v6845_v40  ;;  %4448 = vmatprep.subr.bf16.mxu0 %v6630_v19  ;;  %v5869_v2 = vpop.permute.xlu0 %5868  ;;  %5561 = vmatprep.subr.bf16.mxu1 %v6630_v19 }
 0x24a   : > { %v1750_v56 = vcombine.high %v1728_v36, %v1728_v36  ;;  %5928 = vrot.lane.b32.xlu0 %v5917_v1, %s6635_s20  ;;  %v1770_v4 = vcombine.high %v1768_v50, %v1768_v50  ;;  %v1784_v15 = vrot.slane %v1768_v50, %v6845_v40  ;;  %v1791_v54 = vrot.slane %v1769_v39, %v6845_v40 }
 0x24b   : > { %v7699_v32 = vpack.i.bf16 %v2691_v28, %v2690_v59  ;;  %v1749_v5 = vrot.slane %v1721_v42, %v6845_v40  ;;  %v1751_v37 = vcombine.high %v1735_v16, %v1735_v16  ;;  %v1752_v9 = vcombine.high %v1742_v20, %v1742_v20  ;;  %5923 = vrot.lane.b32.xlu1 %v7619_v35, %s6641_s14 }
 0x24c   : > { %v2002_v58 = vrot.slane %v1742_v20, %v6855_v57  ;;  %v1998_v61 = vrot.slane %v1728_v36, %v6855_v57  ;;  %v2006_v6 = vrot.slane %v1750_v56, %v6855_v57  ;;  %v2014_v29 = vrot.slane %v1735_v16, %v6855_v57  ;;  %5575 = vmatpush1.bf16.msra.mxu1 %v7642_v48  ;;  %v7765_v48 = vld [vmem:[#allocation3 + $0x50] sm:$0xff] }
 0x24d   : > { %v1798_v62 = vrot.slane %v1770_v4, %v6845_v40  ;;  %v1753_v13 = vcombine.high %v1749_v5, %v1749_v5  ;;  %v2010_v45 = vrot.slane %v1752_v9, %v6855_v57  ;;  %v2018_v8 = vrot.slane %v1749_v5, %v6855_v57  ;;  %5562 = vmatprep.subr.bf16.mxu1 %v6630_v19 }
 0x24e   : > { %v1799_v7 = vcombine.high %v1777_v52, %v1777_v52  ;;  %5938 = vrot.lane.b32.xlu0 %v7576_v12, %s9418_s17  ;;  %v2327_v35 = vcombine.low %v1998_v61, %v2002_v58  ;;  %v1800_v30 = vcombine.high %v1784_v15, %v1784_v15  ;;  %v1801_v24 = vcombine.high %v1791_v54, %v1791_v54 }
 0x24f   : > { %v1802_v26 = vcombine.high %v1798_v62, %v1798_v62  ;;  %v2022_v10 = vrot.slane %v1751_v37, %v6855_v57  ;;  %v2026_v40 = vrot.slane %v1753_v13, %v6855_v57  ;;  %v2328_v1 = vcombine.low %v2006_v6, %v2010_v45  ;;  %5933 = vrot.lane.b32.xlu1 %v7557_v33, %s6642_s15  ;;  %v2689_v6 = vld [vmem:[#allocation3 + $0x51] sm:$0xff]  ;;  %v2688_v13 = vld [vmem:[#allocation3 + $0x49] sm:$0xff] }
 0x250   : > { %v2344_v25 = vcombine.low %v2014_v29, %v2018_v8  ;;  %v2335_v43 = vrot.slane %v2327_v35, %v6869_v18  ;;  %v2030_v12 = vrot.slane %v1777_v52, %v6855_v57  ;;  %v2034_v51 = vrot.slane %v1791_v54, %v6855_v57  ;;  %v2723_v54 = vld [vmem:[#allocation3 + $0x6a] sm:$0xff]  ;;  %5576 = vmatpush1.bf16.msra.mxu1 %v7682_v63  ;;  %v2752_v63 = vld [vmem:[#allocation3 + $0x60] sm:$0xff] }
 0x251   : > { %v2042_v55 = vrot.slane %v1801_v24, %v6855_v57  ;;  %v2342_v14 = vrot.slane %v2328_v1, %v6869_v18  ;;  %v2345_v17 = vcombine.low %v2022_v10, %v2026_v40  ;;  %v2038_v21 = vrot.slane %v1799_v7, %v6855_v57  ;;  %v7777_v45 = vld [vmem:[#allocation3 + $0x48] sm:$0xff]  ;;  %v2721_v7 = vld [vmem:[#allocation3 + $0x52] sm:$0xff]  ;;  %5563 = vmatprep.subr.bf16.mxu1 %v6630_v19 }
 0x252   : > { %v2046_v60 = vrot.slane %v1784_v15, %v6855_v57  ;;  %5948 = vrot.lane.b32.xlu0 %v7583_v23, %s6641_s14  ;;  %v2050_v3 = vrot.slane %v1798_v62, %v6855_v57  ;;  %v2054_v36 = vrot.slane %v1800_v30, %v6855_v57  ;;  %v2058_v50 = vrot.slane %v1802_v26, %v6855_v57  ;;  %v2722_v15 = vld [vmem:[#allocation3 + $0x62] sm:$0xff]  ;;  %v2720_v8 = vld [vmem:[#allocation3 + $0x4a] sm:$0xff]  ;;  %v2695_v19 = vld [vmem:[#allocation3 + $0x99] sm:$0xff] }
 0x253   : > { %v2361_v28 = vcombine.low %v2030_v12, %v2034_v51  ;;  %v2352_v39 = vrot.slane %v2344_v25, %v6869_v18  ;;  %v2362_v52 = vcombine.low %v2038_v21, %v2042_v55  ;;  %5943 = vrot.lane.b32.xlu1 %v7583_v23, %s6636_s21  ;;  %v2343_v42 = vcombine.low %v2335_v43, %v2342_v14  ;;  %v2753_v30 = vld [vmem:[#allocation3 + $0x68] sm:$0xff]  ;;  %v2694_v10 = vld [vmem:[#allocation3 + $0x91] sm:$0xff]  ;;  %v2727_v25 = vld [vmem:[#allocation3 + $0x9a] sm:$0xff] }
 0x254   : > { %v2359_v16 = vrot.slane %v2345_v17, %v6869_v18  ;;  %v2378_v56 = vcombine.low %v2046_v60, %v2050_v3  ;;  %v2379_v59 = vcombine.low %v2054_v36, %v2058_v50  ;;  %v5870_v4 = vunpack.i.l.bf16 %v5869_v2  ;;  %v2726_v1 = vld [vmem:[#allocation3 + $0x92] sm:$0xff]  ;;  %v7802_v12 = vld [vmem:[#allocation3 + $0x80] sm:$0xff] }
 0x255   : > { %v2369_v20 = vrot.slane %v2361_v28, %v6869_v18  ;;  %v2376_v57 = vrot.slane %v2362_v52, %v6869_v18  ;;  %v2565_v5 = vsel %vm970_vm4, %v2343_v42, %v5865_v27  ;;  %v2563_v23 = vsel %vm970_vm4, %v2343_v42, %v5860_v41  ;;  %v7805_v51 = vld [vmem:[#allocation3 + $0x78] sm:$0xff]  ;;  %v2882_v14 = vld [vmem:[#allocation3 + $0x81] sm:$0xff]  ;;  %v7819_v50 = vld [vmem:[#allocation3 + $0x90] sm:$0xff] }
 0x256   : > { %v2360_v0 = vcombine.low %v2352_v39, %v2359_v16  ;;  %5963 = vrot.lane.b32.xlu0 %v7699_v32, %s6639_s13  ;;  %v2386_v37 = vrot.slane %v2378_v56, %v6869_v18  ;;  %2644 = vst.msk [vmem:[#allocation3 + $0x151] sm:$0xff] %vm2571_vm9, %v2565_v5  ;;  %2642 = vst.msk [vmem:[#allocation3 + $0x139] sm:$0xff] %vm2571_vm9, %v2563_v23  ;;  %v5876_v9 = vunpack.i.h.bf16 %v7668_v47  ;;  %v5871_v61 = vunpack.i.h.bf16 %v5869_v2  ;;  %v2881_v17 = vld [vmem:[#allocation3 + $0x79] sm:$0xff]  ;;  %v2914_v2 = vld [vmem:[#allocation3 + $0x82] sm:$0xff] }
 0x257   : > { %v2393_v58 = vrot.slane %v2379_v59, %v6869_v18  ;;  %5953 = vrot.lane.b32.xlu1 %v7557_v33, %s9418_s17  ;;  %v2377_v29 = vcombine.low %v2369_v20, %v2376_v57  ;;  %v5972_v62 = vpack.i.bf16 %v2723_v54, %v2722_v15  ;;  %v5957_v33 = vpack.i.bf16 %v2689_v6, %v2688_v13  ;;  %v2913_v60 = vld [vmem:[#allocation3 + $0x7a] sm:$0xff]  ;;  %v2699_v28 = vld [vmem:[#allocation3 + $0xc9] sm:$0xff]  ;;  %v2697_v52 = vld [vmem:[#allocation3 + $0xb1] sm:$0xff] }
 0x258   : > { %v2566_v27 = vsel %vm970_vm4, %v2360_v0, %v5866_v46  ;;  %v2564_v41 = vsel %vm970_vm4, %v2360_v0, %v5861_v38  ;;  %v5977_v47 = vpack.i.bf16 %v7765_v48, %v7777_v45  ;;  %v5967_v35 = vpack.i.bf16 %v2721_v7, %v2720_v8  ;;  %v7816_v36 = vld [vmem:[#allocation3 + $0x98] sm:$0xff]  ;;  %v2698_v39 = vld [vmem:[#allocation3 + $0xc1] sm:$0xff]  ;;  %v2696_v16 = vld [vmem:[#allocation3 + $0xa9] sm:$0xff] }
 0x259   : > { %2645 = vst.msk [vmem:[#allocation3 + $0x159] sm:$0xff] %vm2571_vm9, %v2566_v27  ;;  %2643 = vst.msk [vmem:[#allocation3 + $0x141] sm:$0xff] %vm2571_vm9, %v2564_v41  ;;  %v2394_v18 = vcombine.low %v2386_v37, %v2393_v58  ;;  %v2569_v34 = vsel %vm970_vm4, %v2377_v29, %v5875_v31  ;;  %v2567_v46 = vsel %vm970_vm4, %v2377_v29, %v5870_v4  ;;  %v6557_v31 = vld [vmem:[%s9402_s5 + $0x68] ss:$0 sps:$4 sm:$0xff]   ;;  %v2731_v56 = vld [vmem:[#allocation3 + $0xca] sm:$0xff]  ;;  %v7843_v27 = vpop.permute.xlu1 %5888 }
 0x25a   : > { %5973 = vrot.lane.b32.xlu0 %v5972_v62, %s6633_s19  ;;  %2648 = vst.msk [vmem:[#allocation3 + $0x181] sm:$0xff] %vm2571_vm9, %v2569_v34  ;;  %2646 = vst.msk [vmem:[#allocation3 + $0x169] sm:$0xff] %vm2571_vm9, %v2567_v46  ;;  %v4420_v24 = vsel %vm4418_vm12, %v6557_v31, 0  ;;  %v5982_v26 = vpack.i.bf16 %v2753_v30, %v2752_v63  ;;  %v6042_v40 = vpack.i.bf16 %v2695_v19, %v2694_v10  ;;  %v2730_v20 = vld [vmem:[#allocation3 + $0xc2] sm:$0xff]  ;;  %v2728_v4 = vld [vmem:[#allocation3 + $0xaa] sm:$0xff]  ;;  %vm4641_vm12 = vcmask 1044484  }
 0x25b   : > { %v2570_v44 = vsel %vm970_vm4, %v2394_v18, %v5876_v9  ;;  %v2568_v38 = vsel %vm970_vm4, %v2394_v18, %v5871_v61  ;;  %5958 = vrot.lane.b32.xlu1 %v5957_v33, %s6639_s13  ;;  %4449 = vmatpush1.bf16.msra.mxu0 %v4420_v24  ;;  %v6052_v43 = vpack.i.bf16 %v2727_v25, %v2726_v1  ;;  %v2729_v15 = vld [vmem:[#allocation3 + $0xb2] sm:$0xff]  ;;  %v2853_v5 = vld [vmem:[#allocation3 + $0xa8] sm:$0xff]  ;;  %v2855_v9 = vld [vmem:[#allocation3 + $0xc0] sm:$0xff]  ;;  %v5879_v61 = vpop.permute.xlu0 %5878 }
 0x25c   : > { %2649 = vst.msk [vmem:[#allocation3 + $0x189] sm:$0xff] %vm2571_vm9, %v2570_v44  ;;  %2647 = vst.msk [vmem:[#allocation3 + $0x171] sm:$0xff] %vm2571_vm9, %v2568_v38  ;;  %5577 = vmatpush1.bf16.msra.mxu1 %v4420_v24  ;;  %v6057_v55 = vpack.i.bf16 %v7802_v12, %v7805_v51  ;;  %v6062_v21 = vpack.i.bf16 %v2882_v14, %v2881_v17  ;;  %v6067_v3 = vpack.i.bf16 %v2914_v2, %v2913_v60  ;;  %v2854_v57 = vld [vmem:[#allocation3 + $0xb0] sm:$0xff]  ;;  %v2856_v37 = vld [vmem:[#allocation3 + $0xc8] sm:$0xff] }
 0x25d   : > { %v6117_v42 = vpack.i.bf16 %v2699_v28, %v2698_v39  ;;  %v6112_v59 = vpack.i.bf16 %v2697_v52, %v2696_v16  ;;  %v6127_v54 = vpack.i.bf16 %v2731_v56, %v2730_v20  ;;  %v6122_v0 = vpack.i.bf16 %v2729_v15, %v2728_v4  ;;  %9430 = vst [vmem:[#allocation7_spill] sm:$0xff] %v7843_v27  ;;  %v7849_v29 = vld [vmem:[#allocation3 + $0xf0] sm:$0xff]  ;;  %v2701_v18 = vld [vmem:[#allocation3 + $0xe1] sm:$0xff]  ;;  %v2700_v46 = vld [vmem:[#allocation3 + $0xd9] sm:$0xff] }
 0x25e   : > { %5978 = vrot.lane.b32.xlu0 %v5977_v47, %s6640_s29  ;;  %v6132_v23 = vpack.i.bf16 %v2854_v57, %v2853_v5  ;;  %v6152_v58 = vpack.i.bf16 %v2856_v37, %v2855_v9  ;;  %v6192_v34 = vpack.i.bf16 %v7849_v29, %v7805_v51  ;;  %v7862_v38 = vpack.i.bf16 %v2701_v18, %v2700_v46  ;;  %v2702_v8 = vld [vmem:[#allocation3 + $0xf1] sm:$0xff]  ;;  %v2732_v7 = vld [vmem:[#allocation3 + $0xda] sm:$0xff]  ;;  %v2651_v1 = vld [vmem:[#allocation3 + $0x8] sm:$0xff] }
 0x25f   : > { %5968 = vrot.lane.b32.xlu1 %v5967_v35, %s6633_s19  ;;  %v5884_v6 = vpop.permute.xlu0 %5883  ;;  %v2734_v30 = vld [vmem:[#allocation3 + $0xf2] sm:$0xff]  ;;  %v2735_v63 = vld [vmem:[#allocation3 + $0xfa] sm:$0xff]  ;;  %v5881_v19 = vunpack.i.h.bf16 %v5879_v61  ;;  %v5880_v10 = vunpack.i.l.bf16 %v5879_v61  ;;  %v7881_v2 = vld [vmem:[#allocation3 + $0x108] sm:$0xff] }
 0x260   : > { %v5886_v51 = vunpack.i.h.bf16 %v5884_v6  ;;  %v7879_v60 = vld [vmem:[#allocation3 + $0xf8] sm:$0xff] }
 0x261   : > { %v3964_v17 = vsel %vm2571_vm9, %v2651_v1, %v5881_v19  ;;  %v6222_v56 = vpack.i.bf16 %v7881_v2, %v7879_v60  ;;  %v7910_v19 = vld [vmem:[#allocation3 + $0xe0] sm:$0xff] }
 0x262   : > { %5993 = vrot.lane.b32.xlu0 %v5957_v33, %s6642_s15  ;;  %v3996_v16 = vsel %vm619_vm0, %v3964_v17, %v5886_v51 }
 0x263   : > { %5983 = vrot.lane.b32.xlu1 %v5982_v26, %s6640_s29 }
 0x266   : > { %5998 = vrot.lane.b32.xlu0 %v5967_v35, %s6636_s21 }
 0x267   : > { %5988 = vrot.lane.b32.xlu1 %v5977_v47, %s6635_s20  ;;  %v2733_v47 = vld [vmem:[#allocation3 + $0xe2] sm:$0xff] }
 0x26a   : > { %6008 = vrot.lane.b32.xlu0 %v5982_v26, %s6635_s20  ;;  %v6207_v26 = vpack.i.bf16 %v2733_v47, %v2732_v7 }
 0x26b   : > { %6003 = vrot.lane.b32.xlu1 %v5967_v35, %s6641_s14 }
 0x26e   : > { %6018 = vrot.lane.b32.xlu0 %v5957_v33, %s9418_s17  ;;  %v2703_v33 = vld [vmem:[#allocation3 + $0xf9] sm:$0xff] }
 0x26f   : > { %6013 = vrot.lane.b32.xlu1 %v7699_v32, %s6642_s15  ;;  %v7866_v35 = vpack.i.bf16 %v2703_v33, %v2702_v8 }
 0x272   : > { %6043 = vrot.lane.b32.xlu0 %v6042_v40, %s6639_s13 }
 0x273   : > { %6023 = vrot.lane.b32.xlu1 %v5972_v62, %s6636_s21 }
 0x276   : > { %6053 = vrot.lane.b32.xlu0 %v6052_v43, %s6633_s19 }
 0x277   : > { %6028 = vrot.lane.b32.xlu1 %v5972_v62, %s6641_s14 }
 0x27a   : > { %6058 = vrot.lane.b32.xlu0 %v6057_v55, %s6635_s20  ;;  %v5885_v55 = vunpack.i.l.bf16 %v5884_v6 }
 0x27b   : > { %6033 = vrot.lane.b32.xlu1 %v7699_v32, %s9418_s17  ;;  %v6077_v32 = vpack.i.bf16 %v7816_v36, %v7819_v50 }
 0x27e   : > { %6063 = vrot.lane.b32.xlu0 %v6062_v21, %s6642_s15 }
 0x27f   : > { %6038 = vrot.lane.b32.xlu1 %v6062_v21, %s6639_s13 }
 0x282   : > { %6068 = vrot.lane.b32.xlu0 %v6067_v3, %s6636_s21 }
 0x283   : > { %6048 = vrot.lane.b32.xlu1 %v6067_v3, %s6633_s19 }
 0x286   : > { %6073 = vrot.lane.b32.xlu0 %v6067_v3, %s6641_s14 }
 0x287   : > { %6078 = vrot.lane.b32.xlu1 %v6077_v32, %s6635_s20 }
 0x28a   : > { %6088 = vrot.lane.b32.xlu0 %v6062_v21, %s9418_s17 }
 0x28b   : > { %6083 = vrot.lane.b32.xlu1 %v6042_v40, %s6642_s15 }
 0x28e   : > { %6103 = vrot.lane.b32.xlu0 %v6077_v32, %s6640_s29 }
 0x28f   : > { %6093 = vrot.lane.b32.xlu1 %v6052_v43, %s6636_s21 }
 0x292   : > { %6108 = vrot.lane.b32.xlu0 %v6042_v40, %s9418_s17  ;;  %v2650_v40 = vld [vmem:[#allocation3] sm:$0xff] }
 0x293   : > { %6098 = vrot.lane.b32.xlu1 %v6052_v43, %s6641_s14  ;;  %v7873_v43 = vpack.i.bf16 %v2735_v63, %v2734_v30  ;;  %v3963_v21 = vsel %vm2571_vm9, %v2650_v40, %v5880_v10 }
 0x296   : > { %6118 = vrot.lane.b32.xlu0 %v6117_v42, %s6639_s13 }
 0x297   : > { %6113 = vrot.lane.b32.xlu1 %v6112_v59, %s6639_s13 }
 0x29a   : > { %6128 = vrot.lane.b32.xlu0 %v6127_v54, %s6633_s19 }
 0x29b   : > { %6123 = vrot.lane.b32.xlu1 %v6122_v0, %s6633_s19 }
 0x29e   : > { %6133 = vrot.lane.b32.xlu0 %v6132_v23, %s6635_s20 }
 0x29f   : > { %6138 = vrot.lane.b32.xlu1 %v6112_v59, %s6642_s15 }
 0x2a2   : > { %6153 = vrot.lane.b32.xlu0 %v6152_v58, %s6635_s20 }
 0x2a3   : > { %6143 = vrot.lane.b32.xlu1 %v6122_v0, %s6636_s21 }
 0x2a6   : > { %6158 = vrot.lane.b32.xlu0 %v6132_v23, %s6640_s29 }
 0x2a7   : > { %6148 = vrot.lane.b32.xlu1 %v6122_v0, %s6641_s14 }
 0x2aa   : > { %6168 = vrot.lane.b32.xlu0 %v6112_v59, %s9418_s17 }
 0x2ab   : > { %6163 = vrot.lane.b32.xlu1 %v6117_v42, %s6642_s15 }
 0x2ae   : > { %6183 = vrot.lane.b32.xlu0 %v6152_v58, %s6640_s29  ;;  %v7847_v41 = vpop.permute.xlu0 %5898 }
 0x2af   : > { %6173 = vrot.lane.b32.xlu1 %v6127_v54, %s6636_s21  ;;  %v7851_v62 = vpop.permute.xlu1 %5893 }
 0x2b2   : > { %6188 = vrot.lane.b32.xlu0 %v6117_v42, %s9418_s17  ;;  %v7855_v13 = vpop.permute.xlu0 %5908  ;;  %v3995_v42 = vsel %vm619_vm0, %v3963_v21, %v5885_v55  ;;  %v2704_v21 = vld [vmem:[#allocation3 + $0x109] sm:$0xff] }
 0x2b3   : > { %6178 = vrot.lane.b32.xlu1 %v6127_v54, %s6641_s14 }
 0x2b4   : > { %v7859_v44 = vpop.permute.xlu1 %5903 }
 0x2b6   : > { %6193 = vrot.lane.b32.xlu0 %v6192_v34, %s6640_s29 }
 0x2b7   : > { %6198 = vrot.lane.b32.xlu1 %v7862_v38, %s6639_s13 }
 0x2b8   : > { %v5914_v31 = vpop.permute.xlu0 %5913 }
 0x2b9   : > { %v7868_v24 = vpop.permute.xlu1 %5918  ;;  %v5916_v3 = vunpack.i.h.bf16 %v5914_v31  ;;  %v5915_v32 = vunpack.i.l.bf16 %v5914_v31 }
 0x2ba   : > { %6203 = vrot.lane.b32.xlu0 %v7866_v35, %s6639_s13 }
 0x2bb   : > { %6208 = vrot.lane.b32.xlu1 %v6207_v26, %s6633_s19  ;;  %v4029_v57 = vsel %vm4027_vm13, %v3996_v16, %v5916_v3  ;;  %v4028_v0 = vsel %vm4027_vm13, %v3995_v42, %v5915_v32  ;;  %v5895_v42 = vunpack.i.l.bf16 %v7851_v62  ;;  %v5906_v16 = vunpack.i.h.bf16 %v7859_v44 }
 0x2bc   : > { %v5929_v25 = vpop.permute.xlu0 %5928 }
 0x2bd   : > { %v5924_v14 = vpop.permute.xlu1 %5923  ;;  %v5931_v59 = vunpack.i.h.bf16 %v5929_v25  ;;  %v5930_v4 = vunpack.i.l.bf16 %v5929_v25  ;;  %v7914_v25 = vld [vmem:[#allocation3 + $0xd8] sm:$0xff] }
 0x2be   : > { %6213 = vrot.lane.b32.xlu0 %v7873_v43, %s6633_s19  ;;  %v5926_v15 = vunpack.i.h.bf16 %v5924_v14  ;;  %v5925_v54 = vunpack.i.l.bf16 %v5924_v14  ;;  %v6232_v51 = vpack.i.bf16 %v7910_v19, %v7914_v25  ;;  %v2705_v14 = vld [vmem:[#allocation3 + $0x111] sm:$0xff] }
 0x2bf   : > { %6238 = vrot.lane.b32.xlu1 %v7862_v38, %s6642_s15  ;;  %v7935_v32 = vpack.i.bf16 %v2705_v14, %v2704_v21 }
 0x2c0   : > { %v5939_v28 = vpop.permute.xlu0 %5938  ;;  %v4126_v6 = vsel %vm970_vm4, %v5926_v15, %v5931_v59  ;;  %v4125_v18 = vsel %vm970_vm4, %v5925_v54, %v5930_v4  ;;  %v5921_v59 = vunpack.i.h.bf16 %v7868_v24  ;;  %v5920_v4 = vunpack.i.l.bf16 %v7868_v24 }
 0x2c1   : > { %v5941_v39 = vunpack.i.h.bf16 %v5939_v28  ;;  %v5940_v52 = vunpack.i.l.bf16 %v5939_v28  ;;  %v5934_v20 = vpop.permute.xlu1 %5933  ;;  %v2736_v28 = vld [vmem:[#allocation3 + $0x10a] sm:$0xff] }
 0x2c2   : > { %6218 = vrot.lane.b32.xlu0 %v7873_v43, %s6641_s14  ;;  %v5936_v5 = vunpack.i.h.bf16 %v5934_v20  ;;  %v5935_v23 = vunpack.i.l.bf16 %v5934_v20  ;;  %v7943_v20 = vld [vmem:[#allocation3 + $0x110] sm:$0xff] }
 0x2c3   : > { %6243 = vrot.lane.b32.xlu1 %v6207_v26, %s6636_s21  ;;  %v4060_v9 = vsel %vm9417_vm7, %v4028_v0, %v5940_v52  ;;  %v4061_v58 = vsel %vm9417_vm7, %v4029_v57, %v5941_v39  ;;  %v2737_v39 = vld [vmem:[#allocation3 + $0x112] sm:$0xff]  ;;  %v5896_v52 = vunpack.i.h.bf16 %v7851_v62  ;;  %v2706_v0 = vld [vmem:[#allocation3 + $0x121] sm:$0xff]  ;;  %v6297_v24 = vpack.i.bf16 %v7943_v20, %v7881_v2 }
 0x2c4   : > { %v7894_v37 = vpop.permute.xlu0 %5948  ;;  %v4093_v33 = vsel %vm9415_vm14, %v4060_v9, %v5925_v54  ;;  %v4094_v8 = vsel %vm9415_vm14, %v4061_v58, %v5926_v15  ;;  %v4158_v7 = vsel %vm4157_vm15, %v4125_v18, %v5935_v23  ;;  %v4159_v47 = vsel %vm4157_vm15, %v4126_v6, %v5936_v5 }
 0x2c5   : > { %v5944_v61 = vpop.permute.xlu1 %5943  ;;  %v4222_v1 = vpack.c.bf16 %v4094_v8, %v4093_v33  ;;  %v7950_v62 = vpack.i.bf16 %v2737_v39, %v2736_v28  ;;  %v3965_v5 = vsel %vm2571_vm9, %v7625_v22, %v5895_v42  ;;  %v5901_v58 = vunpack.i.h.bf16 %v7847_v41 }
 0x2c6   : > { %6223 = vrot.lane.b32.xlu0 %v6222_v56, %s6640_s29  ;;  %v5946_v34 = vunpack.i.h.bf16 %v5944_v61  ;;  %v5945_v46 = vunpack.i.l.bf16 %v5944_v61  ;;  %v2707_v56 = vld [vmem:[#allocation3 + $0x129] sm:$0xff]  ;;  %v5900_v61 = vunpack.i.l.bf16 %v7847_v41 }
 0x2c7   : > { %6248 = vrot.lane.b32.xlu1 %v6207_v26, %s6641_s14  ;;  %v7960_v9 = vpack.i.bf16 %v2707_v56, %v2706_v0  ;;  %v3968_v0 = vsel %vm2571_vm9, %v7627_v11, %v5901_v58 }
 0x2c8   : > { %v7906_v31 = vpop.permute.xlu0 %5963  ;;  %v4190_v30 = vsel %vm979_vm5, %v4158_v7, %v5945_v46  ;;  %v4191_v63 = vsel %vm979_vm5, %v4159_v47, %v5946_v34  ;;  %v5951_v34 = vunpack.i.h.bf16 %v7894_v37  ;;  %v5950_v46 = vunpack.i.l.bf16 %v7894_v37  ;;  %v2738_v37 = vld [vmem:[#allocation3 + $0x122] sm:$0xff] }
 0x2c9   : > { %v5954_v10 = vpop.permute.xlu1 %5953  ;;  %v4223_v40 = vpack.c.bf16 %v4191_v63, %v4190_v30  ;;  %v5911_v47 = vunpack.i.h.bf16 %v7855_v13  ;;  %v5910_v30 = vunpack.i.l.bf16 %v7855_v13  ;;  %v3967_v56 = vsel %vm2571_vm9, %v7648_v49, %v5900_v61 }
 0x2ca   : > { %6228 = vrot.lane.b32.xlu0 %v7866_v35, %s9418_s17  ;;  %v5956_v54 = vunpack.i.h.bf16 %v5954_v10  ;;  %v5955_v57 = vunpack.i.l.bf16 %v5954_v10 }
 0x2cb   : > { %6263 = vrot.lane.b32.xlu1 %v7866_v35, %s6642_s15  ;;  %5387 = vmatprep.mubr.msk.bf16.mxu0 %vm4369_vm1, %v4223_v40  ;;  %v6252_v35 = vpack.i.bf16 %v7879_v60, %v7849_v29  ;;  %v5905_v29 = vunpack.i.l.bf16 %v7859_v44  ;;  %v3966_v44 = vsel %vm2571_vm9, %v7602_v53, %v5896_v52  ;;  %v4000_v49 = vsel %vm619_vm0, %v3968_v0, %v5911_v47 }
 0x2cc   : > { %v7919_v26 = vpop.permute.xlu0 %5973  ;;  %4455 = vmatmul.mubr.bf16.vlgmr.msra.gmra.mrb[16].mxu0 %v4222_v1  ;;  %v3998_v22 = vsel %vm619_vm0, %v3966_v44, %v5906_v16  ;;  %v2739_v1 = vld [vmem:[#allocation3 + $0x12a] sm:$0xff] }
 0x2cd   : > { %v7923_v55 = vpop.permute.xlu1 %5958  ;;  %v3997_v6 = vsel %vm619_vm0, %v3965_v5, %v5905_v29  ;;  %v4031_v53 = vsel %vm4027_vm13, %v3998_v22, %v5921_v59  ;;  %v7987_v16 = vpack.i.bf16 %v2739_v1, %v2738_v37  ;;  %v2864_v29 = vld [vmem:[#allocation3 + $0x128] sm:$0xff] }
 0x2ce   : > { %6233 = vrot.lane.b32.xlu0 %v6232_v51, %s6635_s20  ;;  %v4030_v18 = vsel %vm4027_vm13, %v3997_v6, %v5920_v4  ;;  %v4063_v7 = vsel %vm9417_vm7, %v4031_v53, %v5956_v54  ;;  %v3999_v6 = vsel %vm619_vm0, %v3967_v56, %v5910_v30  ;;  %v2709_v56 = vld [vmem:[#allocation3 + $0x141] sm:$0xff] }
 0x2cf   : > { %6273 = vrot.lane.b32.xlu1 %v7873_v43, %s6636_s21  ;;  %v4062_v41 = vsel %vm9417_vm7, %v4030_v18, %v5955_v57  ;;  %v4096_v52 = vsel %vm9415_vm14, %v4063_v7, %v5951_v34 }
 0x2d0   : > { %v7928_v17 = vpop.permute.xlu0 %5978  ;;  %v4095_v13 = vsel %vm9415_vm14, %v4062_v41, %v5950_v46 }
 0x2d1   : > { %v7932_v3 = vpop.permute.xlu1 %5968  ;;  %v5981_v59 = vunpack.i.h.bf16 %v7928_v17  ;;  %v5980_v4 = vunpack.i.l.bf16 %v7928_v17 }
 0x2d2   : > { %6253 = vrot.lane.b32.xlu0 %v6252_v35, %s6635_s20 }
 0x2d3   : > { %6278 = vrot.lane.b32.xlu1 %v7935_v32, %s6639_s13  ;;  %v4033_v58 = vsel %vm4027_vm13, %v4000_v49, %v5981_v59  ;;  %v2741_v49 = vld [vmem:[#allocation3 + $0x142] sm:$0xff] }
 0x2d4   : > { %v5994_v43 = vpop.permute.xlu0 %5993 }
 0x2d5   : > { %v7947_v15 = vpop.permute.xlu1 %5983  ;;  %v5996_v63 = vunpack.i.h.bf16 %v5994_v43  ;;  %v5995_v10 = vunpack.i.l.bf16 %v5994_v43 }
 0x2d6   : > { %6258 = vrot.lane.b32.xlu0 %v6232_v51, %s6640_s29  ;;  %v5986_v59 = vunpack.i.h.bf16 %v7947_v15 }
 0x2d7   : > { %6288 = vrot.lane.b32.xlu1 %v7950_v62, %s6633_s19 }
 0x2d8   : > { %v5999_v23 = vpop.permute.xlu0 %5998 }
 0x2d9   : > { %v5989_v33 = vpop.permute.xlu1 %5988  ;;  %v6001_v51 = vunpack.i.h.bf16 %v5999_v23  ;;  %v6000_v14 = vunpack.i.l.bf16 %v5999_v23  ;;  %v4224_v23 = vpack.c.bf16 %v4096_v52, %v4095_v13  ;;  %v5960_v52 = vunpack.i.l.bf16 %v7923_v55 }
 0x2da   : > { %6268 = vrot.lane.b32.xlu0 %v7862_v38, %s9418_s17  ;;  %v5991_v2 = vunpack.i.h.bf16 %v5989_v33  ;;  %v5990_v8 = vunpack.i.l.bf16 %v5989_v33 }
 0x2db   : > { %6298 = vrot.lane.b32.xlu1 %v6297_v24, %s6635_s20  ;;  %v2863_v24 = vld [vmem:[#allocation3 + $0x120] sm:$0xff]  ;;  %v3969_v0 = vsel %vm2571_vm9, %v7777_v45, %v5960_v52 }
 0x2dc   : > { %v6009_v40 = vpop.permute.xlu0 %6008  ;;  %v4128_v38 = vsel %vm970_vm4, %v5951_v34, %v5991_v2  ;;  %v4127_v35 = vsel %vm970_vm4, %v5950_v46, %v5990_v8  ;;  %v8002_v17 = vpack.i.bf16 %v2864_v29, %v2863_v24  ;;  %v4032_v34 = vsel %vm4027_vm13, %v3999_v6, %v5980_v4  ;;  %v2740_v6 = vld [vmem:[#allocation3 + $0x13a] sm:$0xff] }
 0x2dd   : > { %v4161_v21 = vsel %vm4157_vm15, %v4128_v38, %v5996_v63  ;;  %v4160_v28 = vsel %vm4157_vm15, %v4127_v35, %v5995_v10  ;;  %v6004_v39 = vpop.permute.xlu1 %6003  ;;  %v6011_v22 = vunpack.i.h.bf16 %v6009_v40  ;;  %v6010_v18 = vunpack.i.l.bf16 %v6009_v40 }
 0x2de   : > { %6283 = vrot.lane.b32.xlu0 %v7960_v9, %s6639_s13  ;;  %v4192_v42 = vsel %vm979_vm5, %v4160_v28, %v6000_v14  ;;  %v4193_v43 = vsel %vm979_vm5, %v4161_v21, %v6001_v51  ;;  %v6006_v53 = vunpack.i.h.bf16 %v6004_v39  ;;  %v6005_v11 = vunpack.i.l.bf16 %v6004_v39 }
 0x2df   : > { %6303 = vrot.lane.b32.xlu1 %v7935_v32, %s6642_s15  ;;  %v4225_v57 = vpack.c.bf16 %v4193_v43, %v4192_v42  ;;  %v6322_v28 = vpack.i.bf16 %v7802_v12, %v7943_v20  ;;  %v5971_v43 = vunpack.i.h.bf16 %v7932_v3  ;;  %v5970_v29 = vunpack.i.l.bf16 %v7932_v3 }
 0x2e0   : > { %v6019_v54 = vpop.permute.xlu0 %6018  ;;  %v4130_v47 = vsel %vm970_vm4, %v6006_v53, %v6011_v22  ;;  %v4129_v30 = vsel %vm970_vm4, %v6005_v11, %v6010_v18  ;;  %v5985_v12 = vunpack.i.l.bf16 %v7947_v15 }
 0x2e1   : > { %v6021_v5 = vunpack.i.h.bf16 %v6019_v54  ;;  %v6020_v44 = vunpack.i.l.bf16 %v6019_v54  ;;  %v6014_v61 = vpop.permute.xlu1 %6013  ;;  %5388 = vmatprep.mubr.msk.bf16.mxu0 %vm4369_vm1, %v4225_v57  ;;  %v2708_v54 = vld [vmem:[#allocation3 + $0x139] sm:$0xff]  ;;  %v4001_v15 = vsel %vm619_vm0, %v3969_v0, %v5970_v29 }
 0x2e2   : > { %6293 = vrot.lane.b32.xlu0 %v7987_v16, %s6633_s19  ;;  %4463 = vmatmul.mubr.bf16.gmra.mrb[20].mxu0 %v4224_v23  ;;  %v6016_v46 = vunpack.i.h.bf16 %v6014_v61  ;;  %v6015_v33 = vunpack.i.l.bf16 %v6014_v61  ;;  %v4034_v61 = vsel %vm4027_vm13, %v4001_v15, %v5985_v12 }
 0x2e3   : > { %6308 = vrot.lane.b32.xlu1 %v7950_v62, %s6636_s21  ;;  %v4064_v8 = vsel %vm9417_vm7, %v4032_v34, %v6020_v44  ;;  %v4065_v41 = vsel %vm9417_vm7, %v4033_v58, %v6021_v5  ;;  %v8046_v5 = vpack.i.bf16 %v2709_v56, %v2708_v54 }
 0x2e4   : > { %v8008_v2 = vpop.permute.xlu0 %6043  ;;  %v4162_v40 = vsel %vm4157_vm15, %v4129_v30, %v6015_v33  ;;  %v4163_v37 = vsel %vm4157_vm15, %v4130_v47, %v6016_v46  ;;  %v4097_v51 = vsel %vm9415_vm14, %v4064_v8, %v6005_v11  ;;  %v4098_v14 = vsel %vm9415_vm14, %v4065_v41, %v6006_v53 }
 0x2e5   : > { %v6024_v7 = vpop.permute.xlu1 %6023  ;;  %v4226_v13 = vpack.c.bf16 %v4098_v14, %v4097_v51  ;;  %v6367_v46 = vpack.i.bf16 %v2741_v49, %v2740_v6  ;;  %v8072_v51 = vld [vmem:[#allocation3 + $0x140] sm:$0xff] }
 0x2e6   : > { %6318 = vrot.lane.b32.xlu0 %v8002_v17, %s6635_s20  ;;  %v6026_v63 = vunpack.i.h.bf16 %v6024_v7  ;;  %v6025_v10 = vunpack.i.l.bf16 %v6024_v7 }
 0x2e7   : > { %6313 = vrot.lane.b32.xlu1 %v7950_v62, %s6641_s14  ;;  %v5961_v62 = vunpack.i.h.bf16 %v7923_v55 }
 0x2e8   : > { %v8020_v1 = vpop.permute.xlu0 %6053  ;;  %v4194_v38 = vsel %vm979_vm5, %v4162_v40, %v6025_v10  ;;  %v4195_v35 = vsel %vm979_vm5, %v4163_v37, %v6026_v63 }
 0x2e9   : > { %v6029_v21 = vpop.permute.xlu1 %6028  ;;  %v4227_v39 = vpack.c.bf16 %v4195_v35, %v4194_v38  ;;  %v3970_v57 = vsel %vm2571_vm9, %v7765_v48, %v5961_v62  ;;  %v8077_v35 = vld [vmem:[#allocation3 + $0x138] sm:$0xff] }
 0x2ea   : > { %6328 = vrot.lane.b32.xlu0 %v7960_v9, %s6642_s15  ;;  %v4002_v44 = vsel %vm619_vm0, %v3970_v57, %v5971_v43  ;;  %v6030_v53 = vunpack.i.l.bf16 %v6029_v21  ;;  %9431 = vst [vmem:[#allocation8_spill] sm:$0xff] %v8077_v35  ;;  %v2743_v43 = vld [vmem:[#allocation3 + $0x15a] sm:$0xff] }
 0x2eb   : > { %6323 = vrot.lane.b32.xlu1 %v6322_v28, %s6640_s29  ;;  %5389 = vmatprep.mubr.msk.bf16.mxu0 %vm4369_vm1, %v4227_v39  ;;  %v4035_v48 = vsel %vm4027_vm13, %v4002_v44, %v5986_v59  ;;  %v2711_v28 = vld [vmem:[#allocation3 + $0x159] sm:$0xff]  ;;  %v6377_v39 = vpack.i.bf16 %v8072_v51, %v8077_v35 }
 0x2ec   : > { %v6059_v42 = vpop.permute.xlu0 %6058  ;;  %4471 = vmatmul.mubr.bf16.gmra.mrb[24].mxu0 %v4226_v13  ;;  %v2710_v13 = vld [vmem:[#allocation3 + $0x151] sm:$0xff] }
 0x2ed   : > { %v6034_v20 = vpop.permute.xlu1 %6033  ;;  %v6061_v23 = vunpack.i.h.bf16 %v6059_v42  ;;  %v6060_v24 = vunpack.i.l.bf16 %v6059_v42  ;;  %v6362_v52 = vpack.i.bf16 %v2711_v28, %v2710_v13  ;;  %v2742_v42 = vld [vmem:[#allocation3 + $0x152] sm:$0xff] }
 0x2ee   : > { %6338 = vrot.lane.b32.xlu0 %v7987_v16, %s6636_s21  ;;  %v6036_v55 = vunpack.i.h.bf16 %v6034_v20  ;;  %v6035_v4 = vunpack.i.l.bf16 %v6034_v20  ;;  %v6372_v54 = vpack.i.bf16 %v2743_v43, %v2742_v42 }
 0x2ef   : > { %6333 = vrot.lane.b32.xlu1 %v7935_v32, %s9418_s17  ;;  %v6031_v32 = vunpack.i.h.bf16 %v6029_v21  ;;  %v4131_v33 = vsel %vm970_vm4, %v6030_v53, %v6060_v24 }
 0x2f0   : > { %v6064_v3 = vpop.permute.xlu0 %6063  ;;  %v4066_v11 = vsel %vm9417_vm7, %v4034_v61, %v6035_v4  ;;  %v4067_v58 = vsel %vm9417_vm7, %v4035_v48, %v6036_v55 }
 0x2f1   : > { %v6066_v22 = vunpack.i.h.bf16 %v6064_v3  ;;  %v6065_v45 = vunpack.i.l.bf16 %v6064_v3  ;;  %v8052_v18 = vpop.permute.xlu1 %6038  ;;  %v4132_v8 = vsel %vm970_vm4, %v6031_v32, %v6061_v23  ;;  %v4099_v63 = vsel %vm9415_vm14, %v4066_v11, %v6030_v53  ;;  %v8101_v23 = vld [vmem:[#allocation3 + $0x158] sm:$0xff] }
 0x2f2   : > { %6343 = vrot.lane.b32.xlu0 %v7987_v16, %s6641_s14  ;;  %v4100_v10 = vsel %vm9415_vm14, %v4067_v58, %v6031_v32  ;;  %9432 = vst [vmem:[#allocation9_spill] sm:$0xff] %v8101_v23 }
 0x2f3   : > { %6358 = vrot.lane.b32.xlu1 %v8046_v5, %s6639_s13  ;;  %v4164_v47 = vsel %vm4157_vm15, %v4131_v33, %v6065_v45  ;;  %v4165_v16 = vsel %vm4157_vm15, %v4132_v8, %v6066_v22  ;;  %v4228_v21 = vpack.c.bf16 %v4100_v10, %v4099_v63  ;;  %v8110_v22 = vld [vmem:[#allocation3 + $0x150] sm:$0xff] }
 0x2f4   : > { %v6069_v34 = vpop.permute.xlu0 %6068  ;;  %9433 = vst [vmem:[#allocation10_spill] sm:$0xff] %v8110_v22  ;;  %v6397_v32 = vpack.i.bf16 %v8101_v23, %v8110_v22  ;;  %v2745_v63 = vld [vmem:[#allocation3 + $0x172] sm:$0xff] }
 0x2f5   : > { %v6071_v41 = vunpack.i.h.bf16 %v6069_v34  ;;  %v6070_v7 = vunpack.i.l.bf16 %v6069_v34  ;;  %v8064_v30 = vpop.permute.xlu1 %6048 }
 0x2f6   : > { %6348 = vrot.lane.b32.xlu0 %v8002_v17, %s6640_s29 }
 0x2f7   : > { %v4196_v40 = vsel %vm979_vm5, %v4164_v47, %v6070_v7  ;;  %v4197_v37 = vsel %vm979_vm5, %v4165_v16, %v6071_v41  ;;  %6368 = vrot.lane.b32.xlu1 %v6367_v46, %s6633_s19  ;;  %v2712_v41 = vld [vmem:[#allocation3 + $0x169] sm:$0xff] }
 0x2f8   : > { %v8075_v14 = vpop.permute.xlu0 %6073  ;;  %v4229_v38 = vpack.c.bf16 %v4197_v37, %v4196_v40  ;;  %v2744_v16 = vld [vmem:[#allocation3 + $0x16a] sm:$0xff] }
 0x2f9   : > { %v6079_v17 = vpop.permute.xlu1 %6078  ;;  %v9406_v56 = vunpack.i.h.bf16 %v8075_v14  ;;  %v8139_v37 = vld [vmem:[#allocation3 + $0x170] sm:$0xff] }
 0x2fa   : > { %6353 = vrot.lane.b32.xlu0 %v7960_v9, %s9418_s17  ;;  %5390 = vmatprep.mubr.msk.bf16.mxu0 %vm4369_vm1, %v4229_v38  ;;  %v9405_v9 = vunpack.i.l.bf16 %v8075_v14  ;;  %v6081_v59 = vunpack.i.h.bf16 %v6079_v17  ;;  %v6080_v12 = vunpack.i.l.bf16 %v6079_v17  ;;  %9434 = vst [vmem:[#allocation11_spill] sm:$0xff] %v8139_v37 }
 0x2fb   : > { %4479 = vmatmul.mubr.bf16.gmra.mrb[28].mxu0 %v4228_v21  ;;  %6378 = vrot.lane.b32.xlu1 %v6377_v39, %s6635_s20  ;;  %v8144_v21 = vld [vmem:[#allocation3 + $0x168] sm:$0xff] }
 0x2fc   : > { %v8085_v62 = vpop.permute.xlu0 %6088  ;;  %v4134_v0 = vsel %vm970_vm4, %v9406_v56, %v6081_v59  ;;  %v4133_v3 = vsel %vm970_vm4, %v9405_v9, %v6080_v12  ;;  %9435 = vst [vmem:[#allocation12_spill] sm:$0xff] %v8144_v21  ;;  %v6447_v17 = vpack.i.bf16 %v8139_v37, %v8144_v21  ;;  %v5976_v9 = vunpack.i.h.bf16 %v7919_v26 }
 0x2fd   : > { %v6084_v29 = vpop.permute.xlu1 %6083  ;;  %v5975_v56 = vunpack.i.l.bf16 %v7919_v26  ;;  %v6055_v26 = vunpack.i.l.bf16 %v8020_v1 }
 0x2fe   : > { %6363 = vrot.lane.b32.xlu0 %v6362_v52, %s6639_s13  ;;  %v6086_v20 = vunpack.i.h.bf16 %v6084_v29  ;;  %v6085_v55 = vunpack.i.l.bf16 %v6084_v29 }
 0x2ff   : > { %6383 = vrot.lane.b32.xlu1 %v8046_v5, %s6642_s15 }
 0x300   : > { %v8092_v4 = vpop.permute.xlu0 %6103  ;;  %v4166_v24 = vsel %vm4157_vm15, %v4133_v3, %v6085_v55  ;;  %v4167_v6 = vsel %vm4157_vm15, %v4134_v0, %v6086_v20  ;;  %v2872_v0 = vld [vmem:[#allocation3 + $0x188] sm:$0xff] }
 0x301   : > { %v6094_v57 = vpop.permute.xlu1 %6093 }
 0x302   : > { %6373 = vrot.lane.b32.xlu0 %v6372_v54, %s6633_s19  ;;  %v6096_v15 = vunpack.i.h.bf16 %v6094_v57  ;;  %v6095_v44 = vunpack.i.l.bf16 %v6094_v57  ;;  %v2665_v57 = vld [vmem:[#allocation3 + $0xb0] sm:$0xff] }
 0x303   : > { %6388 = vrot.lane.b32.xlu1 %v6367_v46, %s6636_s21 }
 0x304   : > { %v8106_v49 = vpop.permute.xlu0 %6108  ;;  %v4198_v61 = vsel %vm979_vm5, %v4166_v24, %v6095_v44  ;;  %v4199_v48 = vsel %vm979_vm5, %v4167_v6, %v6096_v15 }
 0x305   : > { %v8112_v45 = vpop.permute.xlu1 %6098  ;;  %v4231_v53 = vpack.c.bf16 %v4199_v48, %v4198_v61 }
 0x306   : > { %6393 = vrot.lane.b32.xlu0 %v6367_v46, %s6641_s14  ;;  %v2713_v46 = vld [vmem:[#allocation3 + $0x171] sm:$0xff] }
 0x307   : > { %6398 = vrot.lane.b32.xlu1 %v6397_v32, %s6635_s20  ;;  %5391 = vmatprep.mubr.msk.bf16.mxu0 %vm4369_vm1, %v4231_v53  ;;  %v6437_v47 = vpack.i.bf16 %v2713_v46, %v2712_v41  ;;  %v2840_v53 = vld [vmem:[#allocation3 + $0x182] sm:$0xff] }
 0x308   : > { %v8119_v11 = vpop.permute.xlu0 %6118 }
 0x309   : > { %v6114_v58 = vpop.permute.xlu1 %6113 }
 0x30a   : > { %6403 = vrot.lane.b32.xlu0 %v6377_v39, %s6640_s29  ;;  %v6116_v42 = vunpack.i.h.bf16 %v6114_v58  ;;  %v6115_v43 = vunpack.i.l.bf16 %v6114_v58  ;;  %v2841_v58 = vld [vmem:[#allocation3 + $0x18a] sm:$0xff] }
 0x30b   : > { %6408 = vrot.lane.b32.xlu1 %v6362_v52, %s6642_s15 }
 0x30c   : > { %v8123_v34 = vpop.permute.xlu0 %6128  ;;  %v3978_v3 = vsel %vm2571_vm9, %v2665_v57, %v6116_v42 }
 0x30d   : > { %v6124_v33 = vpop.permute.xlu1 %6123 }
 0x30e   : > { %6413 = vrot.lane.b32.xlu0 %v8046_v5, %s9418_s17  ;;  %v6442_v5 = vpack.i.bf16 %v2745_v63, %v2744_v16  ;;  %v6126_v59 = vunpack.i.h.bf16 %v6124_v33  ;;  %v6125_v12 = vunpack.i.l.bf16 %v6124_v33 }
 0x30f   : > { %6418 = vrot.lane.b32.xlu1 %v6372_v54, %s6636_s21 }
 0x310   : > { %v8128_v8 = vpop.permute.xlu0 %6133  ;;  %v4010_v6 = vsel %vm619_vm0, %v3978_v3, %v6126_v59  ;;  %v6497_v59 = vpack.i.bf16 %v2841_v58, %v2840_v53  ;;  %v2905_v3 = vld [vmem:[#allocation3 + $0x199] sm:$0xff] }
 0x311   : > { %v8130_v7 = vpop.permute.xlu1 %6138 }
 0x312   : > { %6423 = vrot.lane.b32.xlu0 %v6372_v54, %s6641_s14  ;;  %v2664_v54 = vld [vmem:[#allocation3 + $0xa8] sm:$0xff] }
 0x313   : > { %6438 = vrot.lane.b32.xlu1 %v6437_v47, %s6639_s13  ;;  %v3977_v15 = vsel %vm2571_vm9, %v2664_v54, %v6115_v43  ;;  %v2904_v43 = vld [vmem:[#allocation3 + $0x189] sm:$0xff] }
 0x314   : > { %v8134_v10 = vpop.permute.xlu0 %6153  ;;  %v4009_v24 = vsel %vm619_vm0, %v3977_v15, %v6125_v12  ;;  %v2903_v12 = vld [vmem:[#allocation3 + $0x181] sm:$0xff] }
 0x315   : > { %v8136_v40 = vpop.permute.xlu1 %6143  ;;  %v6477_v54 = vpack.i.bf16 %v2904_v43, %v2903_v12  ;;  %v2906_v15 = vld [vmem:[#allocation3 + $0x1a1] sm:$0xff]  ;;  %v5966_v12 = vunpack.i.h.bf16 %v7906_v31 }
 0x316   : > { %6428 = vrot.lane.b32.xlu0 %v6397_v32, %s6640_s29  ;;  %v2871_v32 = vld [vmem:[#allocation3 + $0x180] sm:$0xff] }
 0x317   : > { %6443 = vrot.lane.b32.xlu1 %v6442_v5, %s6633_s19  ;;  %v6467_v16 = vpack.i.bf16 %v2872_v0, %v2871_v32 }
 0x318   : > { %v8142_v38 = vpop.permute.xlu0 %6158 }
 0x319   : > { %v8146_v28 = vpop.permute.xlu1 %6148 }
 0x31a   : > { %6433 = vrot.lane.b32.xlu0 %v6362_v52, %s9418_s17 }
 0x31b   : > { %6448 = vrot.lane.b32.xlu1 %v6447_v17, %s6635_s20 }
 0x31c   : > { %v8152_v39 = vpop.permute.xlu0 %6168 }
 0x31d   : > { %v8154_v13 = vpop.permute.xlu1 %6163 }
 0x31e   : > { %6463 = vrot.lane.b32.xlu0 %v6442_v5, %s6641_s14 }
 0x31f   : > { %6453 = vrot.lane.b32.xlu1 %v6437_v47, %s6642_s15 }
 0x320   : > { %v6184_v29 = vpop.permute.xlu0 %6183 }
 0x321   : > { %v6186_v20 = vunpack.i.h.bf16 %v6184_v29  ;;  %v6185_v52 = vunpack.i.l.bf16 %v6184_v29  ;;  %v8158_v55 = vpop.permute.xlu1 %6173 }
 0x322   : > { %6473 = vrot.lane.b32.xlu0 %v6447_v17, %s6640_s29 }
 0x323   : > { %6458 = vrot.lane.b32.xlu1 %v6442_v5, %s6636_s21  ;;  %v4042_v33 = vsel %vm4027_vm13, %v4009_v24, %v6185_v52  ;;  %v4043_v46 = vsel %vm4027_vm13, %v4010_v6, %v6186_v20  ;;  %v6492_v6 = vpack.i.bf16 %v2906_v15, %v2905_v3 }
 0x324   : > { %v6189_v44 = vpop.permute.xlu0 %6188 }
 0x325   : > { %v6191_v61 = vunpack.i.h.bf16 %v6189_v44  ;;  %v6190_v48 = vunpack.i.l.bf16 %v6189_v44  ;;  %v6179_v41 = vpop.permute.xlu1 %6178 }
 0x326   : > { %6483 = vrot.lane.b32.xlu0 %v6437_v47, %s9418_s17  ;;  %v6181_v17 = vunpack.i.h.bf16 %v6179_v41  ;;  %v6180_v42 = vunpack.i.l.bf16 %v6179_v41 }
 0x327   : > { %v4074_v63 = vsel %vm9417_vm7, %v4042_v33, %v6190_v48  ;;  %v4075_v5 = vsel %vm9417_vm7, %v4043_v46, %v6191_v61  ;;  %6468 = vrot.lane.b32.xlu1 %v6467_v16, %s6635_s20  ;;  %v2937_v61 = vld [vmem:[#allocation3 + $0x19a] sm:$0xff]  ;;  %v2938_v48 = vld [vmem:[#allocation3 + $0x1a2] sm:$0xff] }
 0x328   : > { %v8172_v29 = vpop.permute.xlu0 %6193  ;;  %v8175_v52 = vsel %vm9415_vm14, %v4074_v63, %v6180_v42  ;;  %v8178_v20 = vsel %vm9415_vm14, %v4075_v5, %v6181_v17  ;;  %v6512_v58 = vpack.i.bf16 %v2938_v48, %v2937_v61 }
 0x329   : > { %v8180_v47 = vpop.permute.xlu1 %6198 }
 0x32a   : > { %6498 = vrot.lane.b32.xlu0 %v6497_v59, %s6641_s14 }
 0x32b   : > { %6478 = vrot.lane.b32.xlu1 %v6477_v54, %s6642_s15 }
 0x32c   : > { %v8186_v0 = vpop.permute.xlu0 %6203 }
 0x32d   : > { %v8188_v44 = vpop.permute.xlu1 %6208 }
 0x32e   : > { %6503 = vrot.lane.b32.xlu0 %v6467_v16, %s6640_s29 }
 0x32f   : > { %6488 = vrot.lane.b32.xlu1 %v6497_v59, %s6636_s21 }
 0x330   : > { %v8192_v24 = vpop.permute.xlu0 %6213 }
 0x331   : > { %v6239_v32 = vpop.permute.xlu1 %6238 }
 0x332   : > { %6508 = vrot.lane.b32.xlu0 %v6477_v54, %s9418_s17  ;;  %v5965_v54 = vunpack.i.l.bf16 %v7906_v31  ;;  %v6241_v3 = vunpack.i.h.bf16 %v6239_v32  ;;  %v6240_v15 = vunpack.i.l.bf16 %v6239_v32  ;;  %v6046_v31 = vunpack.i.h.bf16 %v8008_v2 }
 0x333   : > { %6493 = vrot.lane.b32.xlu1 %v6492_v6, %s6642_s15  ;;  %v6045_v32 = vunpack.i.l.bf16 %v8008_v2  ;;  %v6050_v2 = vunpack.i.l.bf16 %v8064_v30 }
 0x334   : > { %v8196_v53 = vpop.permute.xlu0 %6218 }
 0x335   : > { %v6244_v33 = vpop.permute.xlu1 %6243 }
 0x336   : > { %v6246_v61 = vunpack.i.h.bf16 %v6244_v33  ;;  %v6245_v48 = vunpack.i.l.bf16 %v6244_v33 }
 0x337   : > { %6513 = vrot.lane.b32.xlu1 %v6512_v58, %s6636_s21 }
 0x338   : > { %v8199_v46 = vpop.permute.xlu0 %6223 }
 0x339   : > { %v8201_v41 = vpop.permute.xlu1 %6248 }
 0x33c   : > { %v8203_v16 = vpop.permute.xlu0 %6228 }
 0x33d   : > { %v8205_v63 = vpop.permute.xlu1 %6263 }
 0x340   : > { %v6234_v5 = vpop.permute.xlu0 %6233 }
 0x341   : > { %v6236_v43 = vunpack.i.h.bf16 %v6234_v5  ;;  %v6235_v59 = vunpack.i.l.bf16 %v6234_v5  ;;  %v8209_v6 = vpop.permute.xlu1 %6273 }
 0x343   : > { %v4139_v58 = vsel %vm970_vm4, %v6180_v42, %v6235_v59  ;;  %v4140_v57 = vsel %vm970_vm4, %v6181_v17, %v6236_v43  ;;  %v6056_v17 = vunpack.i.h.bf16 %v8020_v1  ;;  %v6040_v43 = vunpack.i.l.bf16 %v8052_v18 }
 0x344   : > { %v4172_v5 = vsel %vm4157_vm15, %v4139_v58, %v6240_v15  ;;  %v4173_v27 = vsel %vm4157_vm15, %v4140_v57, %v6241_v3  ;;  %v8217_v37 = vpop.permute.xlu0 %6253  ;;  %v6041_v3 = vunpack.i.h.bf16 %v8052_v18  ;;  %v6558_v15 = vld [vmem:[#allocation3 + $0x68] sm:$0xff]  ;;  %v6051_v58 = vunpack.i.h.bf16 %v8064_v30 }
 0x345   : > { %v8222_v33 = vsel %vm979_vm5, %v4172_v5, %v6245_v48  ;;  %v8225_v42 = vsel %vm979_vm5, %v4173_v27, %v6246_v61  ;;  %v8230_v59 = vpop.permute.xlu1 %6278  ;;  %v3972_v48 = vsel %vm2571_vm9, %v6558_v15, %v5966_v12  ;;  %v6559_v27 = vld [vmem:[#allocation3 + $0x60] sm:$0xff]  ;;  %v3976_v18 = vsel %vm2571_vm9, %v7816_v36, %v6046_v31  ;;  %v2660_v12 = vld [vmem:[#allocation3 + $0x78] sm:$0xff] }
 0x346   : > { %v3971_v61 = vsel %vm2571_vm9, %v6559_v27, %v5965_v54  ;;  %v8245_v21 = vsel %vm619_vm0, %v3972_v48, %v5976_v9  ;;  %v3975_v57 = vsel %vm2571_vm9, %v7819_v50, %v6045_v32  ;;  %v8255_v30 = vsel %vm619_vm0, %v3976_v18, %v6056_v17  ;;  %v2661_v54 = vld [vmem:[#allocation3 + $0x80] sm:$0xff] }
 0x347   : > { %v8242_v5 = vsel %vm619_vm0, %v3971_v61, %v5975_v56  ;;  %v8252_v15 = vsel %vm619_vm0, %v3975_v57, %v6055_v26  ;;  %v3973_v56 = vsel %vm2571_vm9, %v2660_v12, %v6040_v43  ;;  %v6105_v27 = vunpack.i.l.bf16 %v8092_v4 }
 0x348   : > { %v8239_v1 = vpop.permute.xlu0 %6258  ;;  %v3974_v48 = vsel %vm2571_vm9, %v2661_v54, %v6041_v3  ;;  %v4005_v36 = vsel %vm619_vm0, %v3973_v56, %v6050_v2  ;;  %v6106_v50 = vunpack.i.h.bf16 %v8092_v4  ;;  %v6135_v31 = vunpack.i.l.bf16 %v8128_v8 }
 0x349   : > { %v8259_v9 = vpop.permute.xlu1 %6288  ;;  %v4006_v32 = vsel %vm619_vm0, %v3974_v48, %v6051_v58  ;;  %v6111_v17 = vunpack.i.h.bf16 %v8106_v49  ;;  %v6110_v26 = vunpack.i.l.bf16 %v8106_v49  ;;  %v6200_v43 = vunpack.i.l.bf16 %v8180_v47 }
 0x34a   : > { %v9410_v3 = vunpack.i.l.bf16 %v8112_v45  ;;  %v6136_v2 = vunpack.i.h.bf16 %v8128_v8  ;;  %v6210_v4 = vunpack.i.l.bf16 %v8188_v44  ;;  %v4038_v58 = vsel %vm4027_vm13, %v4005_v36, %v6105_v27 }
 0x34b   : > { %v6140_v12 = vunpack.i.l.bf16 %v8130_v7  ;;  %v6201_v49 = vunpack.i.h.bf16 %v8180_v47  ;;  %v4039_v56 = vsel %vm4027_vm13, %v4006_v32, %v6106_v50  ;;  %v9411_v48 = vunpack.i.h.bf16 %v8112_v45 }
 0x34c   : > { %v8269_v57 = vpop.permute.xlu0 %6268  ;;  %v4135_v61 = vsel %vm970_vm4, %v9410_v3, %v6135_v31  ;;  %v6211_v8 = vunpack.i.h.bf16 %v8188_v44  ;;  %v3981_v18 = vsel %vm2571_vm9, %v7914_v25, %v6200_v43  ;;  %v6225_v27 = vunpack.i.l.bf16 %v8199_v46 }
 0x34d   : > { %v6299_v54 = vpop.permute.xlu1 %6298  ;;  %v8291_v47 = vsel %vm9417_vm7, %v4038_v58, %v6110_v26  ;;  %v8294_v50 = vsel %vm9417_vm7, %v4039_v56, %v6111_v17  ;;  %v4136_v32 = vsel %vm970_vm4, %v9411_v48, %v6136_v2  ;;  %v4013_v31 = vsel %vm619_vm0, %v3981_v18, %v6210_v4 }
 0x34e   : > { %v6231_v44 = vunpack.i.h.bf16 %v8203_v16  ;;  %v6230_v25 = vunpack.i.l.bf16 %v8203_v16  ;;  %v6141_v43 = vunpack.i.h.bf16 %v8130_v7  ;;  %v4168_v3 = vsel %vm4157_vm15, %v4135_v61, %v6140_v12 }
 0x34f   : > { %v6196_v26 = vunpack.i.h.bf16 %v8172_v29  ;;  %v3982_v17 = vsel %vm2571_vm9, %v7910_v19, %v6201_v49  ;;  %v6145_v56 = vunpack.i.l.bf16 %v8136_v40  ;;  %v6301_v48 = vunpack.i.h.bf16 %v6299_v54 }
 0x350   : > { %v8288_v36 = vpop.permute.xlu0 %6283  ;;  %v4014_v2 = vsel %vm619_vm0, %v3982_v17, %v6211_v8  ;;  %v6300_v4 = vunpack.i.l.bf16 %v6299_v54  ;;  %v6221_v61 = vunpack.i.h.bf16 %v8196_v53  ;;  %v6220_v12 = vunpack.i.l.bf16 %v8196_v53 }
 0x351   : > { %v6304_v58 = vpop.permute.xlu1 %6303  ;;  %v4047_v18 = vsel %vm4027_vm13, %v4014_v2, %v6225_v27  ;;  %v4046_v16 = vsel %vm4027_vm13, %v4013_v31, %v6196_v26  ;;  %v4169_v8 = vsel %vm4157_vm15, %v4136_v32, %v6141_v43  ;;  %v6156_v54 = vunpack.i.h.bf16 %v8134_v10 }
 0x352   : > { %v6306_v22 = vunpack.i.h.bf16 %v6304_v58  ;;  %v6305_v7 = vunpack.i.l.bf16 %v6304_v58  ;;  %v4078_v19 = vsel %vm9417_vm7, %v4046_v16, %v6230_v25  ;;  %v4079_v49 = vsel %vm9417_vm7, %v4047_v18, %v6231_v44 }
 0x353   : > { %v6146_v27 = vunpack.i.h.bf16 %v8136_v40  ;;  %v6195_v31 = vunpack.i.l.bf16 %v8172_v29  ;;  %v4144_v17 = vsel %vm970_vm4, %v6221_v61, %v6301_v48  ;;  %v4143_v58 = vsel %vm970_vm4, %v6220_v12, %v6300_v4 }
 0x354   : > { %v8311_v23 = vpop.permute.xlu0 %6293  ;;  %v4111_v53 = vsel %vm9415_vm14, %v4078_v19, %v6220_v12  ;;  %v4112_v25 = vsel %vm9415_vm14, %v4079_v49, %v6221_v61  ;;  %v4176_v44 = vsel %vm4157_vm15, %v4143_v58, %v6305_v7  ;;  %v4177_v32 = vsel %vm4157_vm15, %v4144_v17, %v6306_v22 }
 0x355   : > { %v6309_v26 = vpop.permute.xlu1 %6308  ;;  %v8329_v29 = vsel %vm979_vm5, %v4168_v3, %v6145_v56  ;;  %v8334_v18 = vsel %vm979_vm5, %v4169_v8, %v6146_v27  ;;  %v6161_v16 = vunpack.i.h.bf16 %v8142_v38  ;;  %v6160_v61 = vunpack.i.l.bf16 %v8142_v38 }
 0x356   : > { %v6311_v2 = vunpack.i.h.bf16 %v6309_v26  ;;  %v6310_v35 = vunpack.i.l.bf16 %v6309_v26  ;;  %v6206_v19 = vunpack.i.h.bf16 %v8186_v0  ;;  %v6205_v3 = vunpack.i.l.bf16 %v8186_v0 }
 0x357   : > { %v4240_v56 = vpack.c.bf16 %v4112_v25, %v4111_v53  ;;  %v6215_v49 = vunpack.i.l.bf16 %v8192_v24  ;;  %v6170_v0 = vunpack.i.l.bf16 %v8152_v39  ;;  %v2670_v53 = vld [vmem:[#allocation3 + $0xf0] sm:$0xff]  ;;  %v6216_v25 = vunpack.i.h.bf16 %v8192_v24 }
 0x358   : > { %v6319_v43 = vpop.permute.xlu0 %6318  ;;  %v4208_v48 = vsel %vm979_vm5, %v4176_v44, %v6310_v35  ;;  %v4209_v4 = vsel %vm979_vm5, %v4177_v32, %v6311_v2  ;;  %v4036_v35 = vsel %vm4027_vm13, %v8242_v5, %v6195_v31  ;;  %v9436_v17 = vunpack.i.l.bf16 %v8085_v62 }
 0x359   : > { %v4241_v7 = vpack.c.bf16 %v4209_v4, %v4208_v48  ;;  %v6314_v12 = vpop.permute.xlu1 %6313  ;;  %v6321_v8 = vunpack.i.h.bf16 %v6319_v43  ;;  %v6320_v2 = vunpack.i.l.bf16 %v6319_v43  ;;  %v3984_v48 = vsel %vm2571_vm9, %v7879_v60, %v6206_v19 }
 0x35a   : > { %v6316_v27 = vunpack.i.h.bf16 %v6314_v12  ;;  %v6315_v44 = vunpack.i.l.bf16 %v6314_v12  ;;  %v3983_v4 = vsel %vm2571_vm9, %v2670_v53, %v6205_v3  ;;  %v4068_v43 = vsel %vm9417_vm7, %v4036_v35, %v9436_v17 }
 0x35b   : > { %5396 = vmatprep.mubr.msk.bf16.mxu1 %vm4369_vm1, %v4241_v7  ;;  %v4015_v12 = vsel %vm619_vm0, %v3983_v4, %v6215_v49  ;;  %v4016_v53 = vsel %vm619_vm0, %v3984_v48, %v6216_v25 }
 0x35c   : > { %v6329_v26 = vpop.permute.xlu0 %6328  ;;  %4527 = vmatmul.mubr.bf16.vlgmr.msra.gmra.mrb[16].mxu1 %v4240_v56  ;;  %v6226_v56 = vunpack.i.h.bf16 %v8199_v46  ;;  %v4146_v58 = vsel %vm970_vm4, %v6316_v27, %v6321_v8  ;;  %v9437_v46 = vunpack.i.h.bf16 %v8085_v62  ;;  %v6166_v62 = vunpack.i.h.bf16 %v8154_v13 }
 0x35d   : > { %v6331_v5 = vunpack.i.h.bf16 %v6329_v26  ;;  %v6330_v31 = vunpack.i.l.bf16 %v6329_v26  ;;  %v6324_v32 = vpop.permute.xlu1 %6323  ;;  %v4145_v26 = vsel %vm970_vm4, %v6315_v44, %v6320_v2 }
 0x35e   : > { %v6326_v7 = vunpack.i.h.bf16 %v6324_v32  ;;  %v6325_v24 = vunpack.i.l.bf16 %v6324_v32 }
 0x35f   : > { %v4178_v22 = vsel %vm4157_vm15, %v4145_v26, %v6330_v31  ;;  %v4179_v35 = vsel %vm4157_vm15, %v4146_v58, %v6331_v5  ;;  %v9438_v58 = vunpack.i.h.bf16 %v8075_v14 }
 0x360   : > { %v6339_v40 = vpop.permute.xlu0 %6338  ;;  %v4037_v60 = vsel %vm4027_vm13, %v8245_v21, %v6326_v7  ;;  %v4048_v21 = vsel %vm4027_vm13, %v4015_v12, %v6226_v56  ;;  %v9439_v7 = vunpack.i.l.bf16 %v8075_v14  ;;  %v6165_v12 = vunpack.i.l.bf16 %v8154_v13 }
 0x361   : > { %v6341_v19 = vunpack.i.h.bf16 %v6339_v40  ;;  %v6340_v3 = vunpack.i.l.bf16 %v6339_v40  ;;  %v6334_v49 = vpop.permute.xlu1 %6333  ;;  %v4069_v8 = vsel %vm9417_vm7, %v4037_v60, %v9437_v46  ;;  %v4049_v40 = vsel %vm4027_vm13, %v4016_v53, %v6325_v24 }
 0x362   : > { %v6336_v32 = vunpack.i.h.bf16 %v6334_v49  ;;  %v6335_v4 = vunpack.i.l.bf16 %v6334_v49  ;;  %v4102_v5 = vsel %vm9415_vm14, %v4069_v8, %v9438_v58  ;;  %v4101_v26 = vsel %vm9415_vm14, %v4068_v43, %v9439_v7 }
 0x363   : > { %v4210_v17 = vsel %vm979_vm5, %v4178_v22, %v6340_v3  ;;  %v4211_v2 = vsel %vm979_vm5, %v4179_v35, %v6341_v19  ;;  %v4230_v24 = vpack.c.bf16 %v4102_v5, %v4101_v26  ;;  %v6176_v3 = vunpack.i.h.bf16 %v8158_v55 }
 0x364   : > { %v4243_v25 = vpack.c.bf16 %v4211_v2, %v4210_v17  ;;  %v8371_v48 = vpop.permute.xlu0 %6343  ;;  %v4080_v31 = vsel %vm9417_vm7, %v4048_v21, %v6335_v4  ;;  %v4081_v22 = vsel %vm9417_vm7, %v4049_v40, %v6336_v32  ;;  %v6175_v53 = vunpack.i.l.bf16 %v8158_v55 }
 0x365   : > { %v8383_v56 = vpop.permute.xlu1 %6358  ;;  %v4113_v60 = vsel %vm9415_vm14, %v4080_v31, %v6315_v44  ;;  %v4114_v19 = vsel %vm9415_vm14, %v4081_v22, %v6316_v27  ;;  %v4233_v14 = vpack.c.bf16 %v8334_v18, %v8329_v29  ;;  %v6121_v43 = vunpack.i.h.bf16 %v8119_v11  ;;  %4487 = vmatmul.mubr.bf16.gmra.mrb[32].mxu0 %v4230_v24 }
 0x366   : > { %5397 = vmatprep.mubr.msk.bf16.mxu1 %vm4369_vm1, %v4243_v25  ;;  %v4242_v35 = vpack.c.bf16 %v4114_v19, %v4113_v60  ;;  %v4040_v13 = vsel %vm4027_vm13, %v8252_v15, %v6160_v61  ;;  %v9440_v44 = vunpack.i.l.bf16 %v8112_v45  ;;  %v9441_v55 = vunpack.i.h.bf16 %v8112_v45 }
 0x367   : > { %v4041_v18 = vsel %vm4027_vm13, %v8255_v30, %v6161_v16  ;;  %v9442_v15 = vunpack.i.h.bf16 %v8146_v28  ;;  %v9443_v46 = vunpack.i.l.bf16 %v8134_v10  ;;  %5392 = vmatprep.mubr.msk.bf16.mxu0 %vm4369_vm1, %v4233_v14  ;;  %v4072_v16 = vsel %vm9417_vm7, %v4040_v13, %v6170_v0  ;;  %v2667_v10 = vld [vmem:[#allocation3 + $0xc8] sm:$0xff] }
 0x368   : > { %v6349_v49 = vpop.permute.xlu0 %6348  ;;  %v4103_v27 = vsel %vm9415_vm14, %v8291_v47, %v9440_v44  ;;  %v4104_v29 = vsel %vm9415_vm14, %v8294_v50, %v9441_v55  ;;  %v9444_v47 = vunpack.i.l.bf16 %v8146_v28  ;;  %4535 = vmatmul.mubr.bf16.gmra.mrb[20].mxu1 %v4242_v35  ;;  %v9445_v8 = vunpack.i.h.bf16 %v8152_v39 }
 0x369   : > { %v4138_v61 = vsel %vm970_vm4, %v9442_v15, %v6156_v54  ;;  %v8422_v30 = vpop.permute.xlu1 %6368  ;;  %v6256_v32 = vunpack.i.h.bf16 %v8217_v37  ;;  %v6255_v4 = vunpack.i.l.bf16 %v8217_v37  ;;  %v8433_v21 = vsel %vm2571_vm9, %v2667_v10, %v6121_v43 }
 0x36a   : > { %v4137_v45 = vsel %vm970_vm4, %v9444_v47, %v9443_v46  ;;  %v4171_v50 = vsel %vm4157_vm15, %v4138_v61, %v6166_v62  ;;  %v4073_v54 = vsel %vm9417_vm7, %v4041_v18, %v9445_v8  ;;  %v6120_v40 = vunpack.i.l.bf16 %v8119_v11  ;;  %v6560_v61 = vld [vmem:[#allocation3 + $0x110] sm:$0xff] }
 0x36b   : > { %v4170_v38 = vsel %vm4157_vm15, %v4137_v45, %v6165_v12  ;;  %v4203_v2 = vsel %vm979_vm5, %v4171_v50, %v6176_v3  ;;  %v6131_v0 = vunpack.i.h.bf16 %v8123_v34  ;;  %v4232_v39 = vpack.c.bf16 %v4104_v29, %v4103_v27  ;;  %v2672_v27 = vld [vmem:[#allocation3 + $0x108] sm:$0xff] }
 0x36c   : > { %v4202_v17 = vsel %vm979_vm5, %v4170_v38, %v6175_v53  ;;  %v6354_v25 = vpop.permute.xlu0 %6353  ;;  %v6130_v58 = vunpack.i.l.bf16 %v8123_v34  ;;  %v6251_v5 = vunpack.i.h.bf16 %v8201_v41  ;;  %v6250_v62 = vunpack.i.l.bf16 %v8201_v41 }
 0x36d   : > { %v9446_v31 = vmov %v9444_v47  ;;  %v6281_v37 = vunpack.i.h.bf16 %v8230_v59  ;;  %v6280_v7 = vunpack.i.l.bf16 %v8230_v59  ;;  %v6379_v26 = vpop.permute.xlu1 %6378  ;;  %v4235_v12 = vpack.c.bf16 %v4203_v2, %v4202_v17  ;;  %4495 = vmatmul.mubr.bf16.gmra.mrb[36].mxu0 %v4232_v39 }
 0x36e   : > { %v4105_v22 = vsel %vm9415_vm14, %v4072_v16, %v9446_v31  ;;  %v9447_v24 = vmov %v9442_v15  ;;  %v4141_v19 = vsel %vm970_vm4, %v6250_v62, %v6255_v4  ;;  %v4142_v3 = vsel %vm970_vm4, %v6251_v5, %v6256_v32 }
 0x36f   : > { %v4106_v60 = vsel %vm9415_vm14, %v4073_v54, %v9447_v24  ;;  %v6291_v53 = vunpack.i.h.bf16 %v8259_v9  ;;  %v6290_v14 = vunpack.i.l.bf16 %v8259_v9  ;;  %v6266_v59 = vunpack.i.h.bf16 %v8205_v63  ;;  %5393 = vmatprep.mubr.msk.bf16.mxu0 %vm4369_vm1, %v4235_v12 }
 0x370   : > { %v6265_v35 = vunpack.i.l.bf16 %v8205_v63  ;;  %v6351_v43 = vunpack.i.h.bf16 %v6349_v49  ;;  %v6350_v28 = vunpack.i.l.bf16 %v6349_v49  ;;  %v8458_v13 = vpop.permute.xlu0 %6363  ;;  %v6275_v44 = vunpack.i.l.bf16 %v8209_v6 }
 0x371   : > { %v6356_v55 = vunpack.i.h.bf16 %v6354_v25  ;;  %v6355_v29 = vunpack.i.l.bf16 %v6354_v25  ;;  %v4234_v18 = vpack.c.bf16 %v4106_v60, %v4105_v22  ;;  %v4175_v9 = vsel %vm4157_vm15, %v4142_v3, %v6266_v59  ;;  %v6384_v46 = vpop.permute.xlu1 %6383 }
 0x372   : > { %v4174_v15 = vsel %vm4157_vm15, %v4141_v19, %v6265_v35  ;;  %v3986_v63 = vsel %vm2571_vm9, %v6560_v61, %v6281_v37  ;;  %v3985_v49 = vsel %vm2571_vm9, %v2672_v27, %v6280_v7  ;;  %v6381_v38 = vunpack.i.h.bf16 %v6379_v26 }
 0x373   : > { %v4017_v47 = vsel %vm619_vm0, %v3985_v49, %v6290_v14  ;;  %v4018_v45 = vsel %vm619_vm0, %v3986_v63, %v6291_v53  ;;  %v6380_v50 = vunpack.i.l.bf16 %v6379_v26  ;;  %v6386_v54 = vunpack.i.h.bf16 %v6384_v46 }
 0x374   : > { %v4050_v16 = vsel %vm4027_vm13, %v4017_v47, %v6350_v28  ;;  %v4051_v8 = vsel %vm4027_vm13, %v4018_v45, %v6351_v43  ;;  %v6385_v10 = vunpack.i.l.bf16 %v6384_v46  ;;  %v8470_v17 = vpop.permute.xlu0 %6373  ;;  %v6346_v2 = vunpack.i.h.bf16 %v8371_v48 }
 0x375   : > { %v6345_v32 = vunpack.i.l.bf16 %v8371_v48  ;;  %v4082_v4 = vsel %vm9417_vm7, %v4050_v16, %v6355_v29  ;;  %v4083_v25 = vsel %vm9417_vm7, %v4051_v8, %v6356_v55  ;;  %v6261_v39 = vunpack.i.h.bf16 %v8239_v1  ;;  %v6389_v7 = vpop.permute.xlu1 %6388  ;;  %v2666_v48 = vld [vmem:[#allocation3 + $0xc0] sm:$0xff]  ;;  %4503 = vmatmul.mubr.bf16.gmra.mrb[40].mxu0 %v4234_v18 }
 0x376   : > { %v6260_v31 = vunpack.i.l.bf16 %v8239_v1  ;;  %v6271_v22 = vunpack.i.h.bf16 %v8269_v57  ;;  %v6270_v37 = vunpack.i.l.bf16 %v8269_v57  ;;  %v4148_v26 = vsel %vm970_vm4, %v6346_v2, %v6381_v38 }
 0x377   : > { %v4147_v12 = vsel %vm970_vm4, %v6345_v32, %v6380_v50  ;;  %v6391_v24 = vunpack.i.h.bf16 %v6389_v7  ;;  %v6390_v60 = vunpack.i.l.bf16 %v6389_v7  ;;  %v4181_v3 = vsel %vm4157_vm15, %v4148_v26, %v6386_v54  ;;  %v6562_v54 = vld [vmem:[#allocation3 + $0x120] sm:$0xff] }
 0x378   : > { %v4180_v19 = vsel %vm4157_vm15, %v4147_v12, %v6385_v10  ;;  %v8484_v53 = vpop.permute.xlu0 %6393  ;;  %v4115_v1 = vsel %vm9415_vm14, %v4082_v4, %v6345_v32  ;;  %v4116_v14 = vsel %vm9415_vm14, %v4083_v25, %v6346_v2  ;;  %v3979_v57 = vsel %vm2571_vm9, %v2666_v48, %v6120_v40 }
 0x379   : > { %v6276_v59 = vunpack.i.h.bf16 %v8209_v6  ;;  %v4212_v35 = vsel %vm979_vm5, %v4180_v19, %v6390_v60  ;;  %v4213_v43 = vsel %vm979_vm5, %v4181_v3, %v6391_v24  ;;  %v9448_v28 = vpack.c.bf16 %v8225_v42, %v8222_v33  ;;  %v6399_v6 = vpop.permute.xlu1 %6398 }
 0x37a   : > { %v4011_v27 = vsel %vm619_vm0, %v3979_v57, %v6130_v58  ;;  %v4012_v11 = vsel %vm619_vm0, %v8433_v21, %v6131_v0  ;;  %v4245_v40 = vpack.c.bf16 %v4213_v43, %v4212_v35  ;;  %v4206_v55 = vsel %vm979_vm5, %v4174_v15, %v6275_v44 }
 0x37b   : > { %5394 = vmatprep.mubr.msk.bf16.mxu0 %vm4369_vm1, %v9448_v28  ;;  %v4044_v29 = vsel %vm4027_vm13, %v4011_v27, %v6260_v31  ;;  %v4045_v18 = vsel %vm4027_vm13, %v4012_v11, %v6261_v39  ;;  %v4244_v33 = vpack.c.bf16 %v4116_v14, %v4115_v1  ;;  %v4207_v42 = vsel %vm979_vm5, %v4175_v9, %v6276_v59 }
 0x37c   : > { %v4076_v61 = vsel %vm9417_vm7, %v4044_v29, %v6270_v37  ;;  %v4077_v58 = vsel %vm9417_vm7, %v4045_v18, %v6271_v22  ;;  %v6286_v34 = vunpack.i.h.bf16 %v8288_v36  ;;  %v6285_v63 = vunpack.i.l.bf16 %v8288_v36  ;;  %5398 = vmatprep.mubr.msk.bf16.mxu1 %vm4369_vm1, %v4245_v40  ;;  %v6404_v21 = vpop.permute.xlu0 %6403 }
 0x37d   : > { %v6296_v0 = vunpack.i.h.bf16 %v8311_v23  ;;  %v6295_v44 = vunpack.i.l.bf16 %v8311_v23  ;;  %v6396_v15 = vunpack.i.h.bf16 %v8484_v53  ;;  %v6395_v49 = vunpack.i.l.bf16 %v8484_v53  ;;  %4543 = vmatmul.mubr.bf16.gmra.mrb[24].mxu1 %v4244_v33  ;;  %v6409_v38 = vpop.permute.xlu1 %6408  ;;  %v6561_v23 = vld [vmem:[#allocation3 + $0x128] sm:$0xff] }
 0x37e   : > { %v6401_v9 = vunpack.i.h.bf16 %v6399_v6  ;;  %v6400_v46 = vunpack.i.l.bf16 %v6399_v6  ;;  %v6406_v47 = vunpack.i.h.bf16 %v6404_v21  ;;  %v6405_v45 = vunpack.i.l.bf16 %v6404_v21  ;;  %v9450_v21 = vld [vmem:[#allocation8_spill] sm:$0xff] }
 0x37f   : > { %v4239_v50 = vpack.c.bf16 %v4207_v42, %v4206_v55  ;;  %v4109_v36 = vsel %vm9415_vm14, %v4076_v61, %v6250_v62  ;;  %v4110_v16 = vsel %vm9415_vm14, %v4077_v58, %v6251_v5  ;;  %v3988_v8 = vsel %vm2571_vm9, %v6561_v23, %v6286_v34 }
 0x380   : > { %v3987_v10 = vsel %vm2571_vm9, %v6562_v54, %v6285_v63  ;;  %v6411_v2 = vunpack.i.h.bf16 %v6409_v38  ;;  %v6410_v32 = vunpack.i.l.bf16 %v6409_v38  ;;  %v9449_v4 = vpack.c.bf16 %v8178_v20, %v8175_v52  ;;  %v6414_v25 = vpop.permute.xlu0 %6413 }
 0x381   : > { %v4019_v39 = vsel %vm619_vm0, %v3987_v10, %v6295_v44  ;;  %v4020_v62 = vsel %vm619_vm0, %v3988_v8, %v6296_v0  ;;  %v6416_v41 = vunpack.i.h.bf16 %v6414_v25  ;;  %v6415_v5 = vunpack.i.l.bf16 %v6414_v25  ;;  %v6419_v26 = vpop.permute.xlu1 %6418 }
 0x382   : > { %4511 = vmatmul.mubr.bf16.gmra.mrb[44].mxu0 %v9449_v4  ;;  %v4150_v31 = vsel %vm970_vm4, %v6396_v15, %v6401_v9  ;;  %v4149_v22 = vsel %vm970_vm4, %v6395_v49, %v6400_v46  ;;  %v4052_v37 = vsel %vm4027_vm13, %v4019_v39, %v6405_v45  ;;  %v4053_v7 = vsel %vm4027_vm13, %v4020_v62, %v6406_v47 }
 0x383   : > { %5395 = vmatprep.mubr.msk.bf16.mxu0 %vm4369_vm1, %v4239_v50  ;;  %v4084_v52 = vsel %vm9417_vm7, %v4052_v37, %v6415_v5  ;;  %v4085_v20 = vsel %vm9417_vm7, %v4053_v7, %v6416_v41  ;;  %v6421_v12 = vunpack.i.h.bf16 %v6419_v26  ;;  %v6420_v24 = vunpack.i.l.bf16 %v6419_v26 }
 0x384   : > { %v4182_v60 = vsel %vm4157_vm15, %v4149_v22, %v6410_v32  ;;  %v4183_v48 = vsel %vm4157_vm15, %v4150_v31, %v6411_v2  ;;  %v6424_v19 = vpop.permute.xlu0 %6423  ;;  %v4117_v3 = vsel %vm9415_vm14, %v4084_v52, %v6395_v49  ;;  %v4118_v53 = vsel %vm9415_vm14, %v4085_v20, %v6396_v15 }
 0x385   : > { %v4214_v1 = vsel %vm979_vm5, %v4182_v60, %v6420_v24  ;;  %v4215_v14 = vsel %vm979_vm5, %v4183_v48, %v6421_v12  ;;  %v8544_v59 = vpop.permute.xlu1 %6438  ;;  %v4238_v35 = vpack.c.bf16 %v4110_v16, %v4109_v36  ;;  %v4246_v43 = vpack.c.bf16 %v4118_v53, %v4117_v3  ;;  %v9451_v48 = vld [vmem:[#allocation9_spill] sm:$0xff]  ;;  %v9452_v3 = vld [vmem:[#allocation10_spill] sm:$0xff] }
 0x386   : > { %v4247_v57 = vpack.c.bf16 %v4215_v14, %v4214_v1  ;;  %v6361_v40 = vunpack.i.h.bf16 %v8383_v56  ;;  %v6360_v6 = vunpack.i.l.bf16 %v8383_v56  ;;  %v6371_v29 = vunpack.i.h.bf16 %v8422_v30 }
 0x387   : > { %v6370_v18 = vunpack.i.l.bf16 %v8422_v30  ;;  %v6426_v50 = vunpack.i.h.bf16 %v6424_v19  ;;  %v6425_v36 = vunpack.i.l.bf16 %v6424_v19  ;;  %v6366_v23 = vunpack.i.h.bf16 %v8458_v13 }
 0x388   : > { %5399 = vmatprep.mubr.msk.bf16.mxu1 %vm4369_vm1, %v4247_v57  ;;  %v6429_v28 = vpop.permute.xlu0 %6428  ;;  %v3990_v63 = vsel %vm2571_vm9, %v8072_v51, %v6361_v40  ;;  %v3989_v0 = vsel %vm2571_vm9, %v9450_v21, %v6360_v6  ;;  %v6365_v8 = vunpack.i.l.bf16 %v8458_v13  ;;  %v6376_v31 = vunpack.i.h.bf16 %v8470_v17  ;;  %v9453_v21 = vld [vmem:[#allocation12_spill] sm:$0xff] }
 0x389   : > { %4551 = vmatmul.mubr.bf16.gmra.mrb[28].mxu1 %v4246_v43  ;;  %v8547_v27 = vpop.permute.xlu1 %6443  ;;  %v6431_v33 = vunpack.i.h.bf16 %v6429_v28  ;;  %v6430_v42 = vunpack.i.l.bf16 %v6429_v28  ;;  %v4021_v56 = vsel %vm619_vm0, %v3989_v0, %v6370_v18  ;;  %v4022_v15 = vsel %vm619_vm0, %v3990_v63, %v6371_v29 }
 0x38a   : > { %4519 = vmatmul.mubr.bf16.gmra.mrb[48].mxu0 %v4238_v35  ;;  %v6375_v13 = vunpack.i.l.bf16 %v8470_v17  ;;  %v3992_v19 = vsel %vm2571_vm9, %v9451_v48, %v6366_v23  ;;  %v3991_v53 = vsel %vm2571_vm9, %v9452_v3, %v6365_v8  ;;  %v6440_v57 = vunpack.i.l.bf16 %v8544_v59  ;;  %v8624_v3 = vld [vmem:[%s9403_s6] ss:$0 sm:$0xff] }
 0x38b   : > { %v4054_v30 = vsel %vm4027_vm13, %v4021_v56, %v6430_v42  ;;  %v4055_v46 = vsel %vm4027_vm13, %v4022_v15, %v6431_v33  ;;  %v4024_v14 = vsel %vm619_vm0, %v3992_v19, %v6376_v31  ;;  %v6441_v63 = vunpack.i.h.bf16 %v8544_v59 }
 0x38c   : > { %v6434_v11 = vpop.permute.xlu0 %6433  ;;  %v4023_v1 = vsel %vm619_vm0, %v3991_v53, %v6375_v13  ;;  %v3993_v0 = vsel %vm2571_vm9, %v9453_v21, %v6440_v57  ;;  %v6446_v56 = vunpack.i.h.bf16 %v8547_v27  ;;  %v6445_v15 = vunpack.i.l.bf16 %v8547_v27 }
 0x38d   : > { %v6449_v55 = vpop.permute.xlu1 %6448  ;;  %v6436_v58 = vunpack.i.h.bf16 %v6434_v11  ;;  %v6435_v34 = vunpack.i.l.bf16 %v6434_v11 }
 0x38e   : > { %v6451_v49 = vunpack.i.h.bf16 %v6449_v55  ;;  %v6450_v9 = vunpack.i.l.bf16 %v6449_v55 }
 0x38f   : > { %v4086_v51 = vsel %vm9417_vm7, %v4054_v30, %v6435_v34  ;;  %v4087_v16 = vsel %vm9417_vm7, %v4055_v46, %v6436_v58 }
 0x390   : > { %v8553_v61 = vpop.permute.xlu0 %6463  ;;  %v4152_v10 = vsel %vm970_vm4, %v6426_v50, %v6451_v49  ;;  %v4151_v2 = vsel %vm970_vm4, %v6425_v36, %v6450_v9  ;;  %v4119_v41 = vsel %vm9415_vm14, %v4086_v51, %v6425_v36  ;;  %v4120_v5 = vsel %vm9415_vm14, %v4087_v16, %v6426_v50 }
 0x391   : > { %v6454_v44 = vpop.permute.xlu1 %6453  ;;  %v4248_v60 = vpack.c.bf16 %v4120_v5, %v4119_v41  ;;  %v6466_v29 = vunpack.i.h.bf16 %v8553_v61  ;;  %v6465_v18 = vunpack.i.l.bf16 %v8553_v61 }
 0x392   : > { %v6456_v47 = vunpack.i.h.bf16 %v6454_v44  ;;  %v6455_v45 = vunpack.i.l.bf16 %v6454_v44 }
 0x394   : > { %v6474_v38 = vpop.permute.xlu0 %6473  ;;  %v4184_v25 = vsel %vm4157_vm15, %v4151_v2, %v6455_v45  ;;  %v4185_v39 = vsel %vm4157_vm15, %v4152_v10, %v6456_v47  ;;  %v9454_v2 = vld [vmem:[#allocation11_spill] sm:$0xff] }
 0x395   : > { %v6459_v54 = vpop.permute.xlu1 %6458  ;;  %v6476_v7 = vunpack.i.h.bf16 %v6474_v38  ;;  %v6475_v26 = vunpack.i.l.bf16 %v6474_v38 }
 0x396   : > { %v6461_v32 = vunpack.i.h.bf16 %v6459_v54  ;;  %v6460_v4 = vunpack.i.l.bf16 %v6459_v54 }
 0x397   : > { %v4056_v35 = vsel %vm4027_vm13, %v4023_v1, %v6475_v26  ;;  %v4057_v43 = vsel %vm4027_vm13, %v4024_v14, %v6476_v7  ;;  %v9455_v26 = vld [vmem:[#allocation7_spill] sm:$0xff] }
 0x398   : > { %v6484_v62 = vpop.permute.xlu0 %6483  ;;  %v4216_v22 = vsel %vm979_vm5, %v4184_v25, %v6460_v4  ;;  %v4217_v37 = vsel %vm979_vm5, %v4185_v39, %v6461_v32  ;;  %v3994_v32 = vsel %vm2571_vm9, %v9454_v2, %v6441_v63  ;;  %v4025_v4 = vsel %vm619_vm0, %v3993_v0, %v6445_v15 }
 0x399   : > { %v4249_v52 = vpack.c.bf16 %v4217_v37, %v4216_v22  ;;  %v6469_v20 = vpop.permute.xlu1 %6468  ;;  %v6486_v12 = vunpack.i.h.bf16 %v6484_v62  ;;  %v6485_v24 = vunpack.i.l.bf16 %v6484_v62  ;;  %v4026_v62 = vsel %vm619_vm0, %v3994_v32, %v6446_v56 }
 0x39a   : > { %v6471_v6 = vunpack.i.h.bf16 %v6469_v20  ;;  %v6470_v55 = vunpack.i.l.bf16 %v6469_v20  ;;  %v5890_v20 = vunpack.i.l.bf16 %v9455_v26 }
 0x39b   : > { %5400 = vmatprep.mubr.msk.bf16.mxu1 %vm4369_vm1, %v4249_v52  ;;  %v4088_v11 = vsel %vm9417_vm7, %v4056_v35, %v6485_v24  ;;  %v4089_v40 = vsel %vm9417_vm7, %v4057_v43, %v6486_v12  ;;  %v5891_v52 = vunpack.i.h.bf16 %v9455_v26 }
 0x39c   : > { %v8582_v17 = vpop.permute.xlu0 %6498  ;;  %4559 = vmatmul.mubr.bf16.gmra.mrb[32].mxu1 %v4248_v60  ;;  %v4121_v30 = vsel %vm9415_vm14, %v4088_v11, %v6465_v18  ;;  %v4122_v61 = vsel %vm9415_vm14, %v4089_v40, %v6466_v29  ;;  %v4154_v46 = vsel %vm970_vm4, %v6466_v29, %v6471_v6  ;;  %v4153_v47 = vsel %vm970_vm4, %v6465_v18, %v6470_v55 }
 0x39d   : > { %v6479_v28 = vpop.permute.xlu1 %6478  ;;  %v6501_v41 = vunpack.i.h.bf16 %v8582_v17  ;;  %v6500_v5 = vunpack.i.l.bf16 %v8582_v17  ;;  %v4250_v31 = vpack.c.bf16 %v4122_v61, %v4121_v30 }
 0x39e   : > { %v6481_v33 = vunpack.i.h.bf16 %v6479_v28  ;;  %v6480_v42 = vunpack.i.l.bf16 %v6479_v28 }
 0x39f   : > { %v4456_v58 = vpop.f32.mrb[16].mxu0  ;;  %v4156_v48 = vsel %vm970_vm4, %v6501_v41, %v5891_v52  ;;  %v4155_v19 = vsel %vm970_vm4, %v6500_v5, %v5890_v20 }
 0x3a0   : > { %v6504_v34 = vpop.permute.xlu0 %6503  ;;  %v4458_v44 = vpop.f32.mrb[17].mxu0  ;;  %v4186_v50 = vsel %vm4157_vm15, %v4153_v47, %v6480_v42  ;;  %v4187_v36 = vsel %vm4157_vm15, %v4154_v46, %v6481_v33  ;;  %v4457_v11 = vadd.f32 %v8624_v3, %v4456_v58 }
 0x3a1   : > { %v6489_v49 = vpop.permute.xlu1 %6488  ;;  %v4459_v9 = vpop.f32.mrb[18].mxu0  ;;  %v6506_v51 = vunpack.i.h.bf16 %v6504_v34  ;;  %v6505_v16 = vunpack.i.l.bf16 %v6504_v34 }
 0x3a2   : > { %v6491_v45 = vunpack.i.h.bf16 %v6489_v49  ;;  %v6490_v59 = vunpack.i.l.bf16 %v6489_v49  ;;  %v4461_v38 = vpop.f32.mrb[19].mxu0  ;;  %v4460_v55 = vadd.f32 %v8624_v3, %v4459_v9  ;;  %v4583_v29 = vmax.f32 %v4457_v11, 0.0 }
 0x3a3   : > { %v4058_v13 = vsel %vm4027_vm13, %v4025_v4, %v6505_v16  ;;  %v4059_v22 = vsel %vm4027_vm13, %v4026_v62, %v6506_v51 }
 0x3a4   : > { %v6509_v27 = vpop.permute.xlu0 %6508  ;;  %v4218_v23 = vsel %vm979_vm5, %v4186_v50, %v6490_v59  ;;  %v4219_v8 = vsel %vm979_vm5, %v4187_v36, %v6491_v45  ;;  %v4584_v18 = vmax.f32 %v4460_v55, 0.0  ;;  %v4872_v42 = vrot.slane %v4583_v29, 7 }
 0x3a5   : > { %v6511_v54 = vunpack.i.h.bf16 %v6509_v27  ;;  %v6510_v10 = vunpack.i.l.bf16 %v6509_v27  ;;  %v4251_v25 = vpack.c.bf16 %v4219_v8, %v4218_v23  ;;  %v6494_v39 = vpop.permute.xlu1 %6493  ;;  %v4668_v21 = vrot.slane %v4583_v29, 1 }
 0x3a6   : > { %v6496_v37 = vunpack.i.h.bf16 %v6494_v39  ;;  %v6495_v7 = vunpack.i.l.bf16 %v6494_v39  ;;  %v4702_v0 = vrot.slane %v4583_v29, 2  ;;  %v4736_v44 = vrot.slane %v4583_v29, 3 }
 0x3a7   : > { %5401 = vmatprep.mubr.msk.bf16.mxu1 %vm4369_vm1, %v4251_v25  ;;  %v4090_v12 = vsel %vm9417_vm7, %v4058_v13, %v6510_v10  ;;  %v4091_v24 = vsel %vm9417_vm7, %v4059_v22, %v6511_v54  ;;  %v4770_v58 = vrot.slane %v4583_v29, 4  ;;  %v4804_v15 = vrot.slane %v4583_v29, 5 }
 0x3a8   : > { %4567 = vmatmul.mubr.bf16.gmra.mrb[36].mxu1 %v4250_v31  ;;  %v4189_v1 = vsel %vm4157_vm15, %v4156_v48, %v6496_v37  ;;  %v4188_v14 = vsel %vm4157_vm15, %v4155_v19, %v6495_v7  ;;  %v4123_v57 = vsel %vm9415_vm14, %v4090_v12, %v6500_v5  ;;  %v4124_v35 = vsel %vm9415_vm14, %v4091_v24, %v6501_v41 }
 0x3a9   : > { %v6514_v60 = vpop.permute.xlu1 %6513  ;;  %v4252_v6 = vpack.c.bf16 %v4124_v35, %v4123_v57  ;;  %v4838_v49 = vrot.slane %v4583_v29, 6  ;;  %v4956_v30 = vrot.slane %v4584_v18, 1  ;;  %v4990_v47 = vrot.slane %v4584_v18, 2 }
 0x3aa   : > { %v6516_v53 = vunpack.i.h.bf16 %v6514_v60  ;;  %v6515_v17 = vunpack.i.l.bf16 %v6514_v60  ;;  %v5024_v45 = vrot.slane %v4584_v18, 3  ;;  %v5058_v59 = vrot.slane %v4584_v18, 4 }
 0x3ab   : > { %v5092_v38 = vrot.slane %v4584_v18, 5  ;;  %v5126_v50 = vrot.slane %v4584_v18, 6  ;;  %v5160_v36 = vrot.slane %v4584_v18, 7  ;;  %vm4644_vm14 = vcmask 1045509  }
 0x3ac   : > { %v4220_v43 = vsel %vm979_vm5, %v4188_v14, %v6515_v17  ;;  %v4221_v28 = vsel %vm979_vm5, %v4189_v1, %v6516_v53  ;;  %vm4650_vm7 = vcmask 1047559  }
 0x3ad   : > { %v4253_v40 = vpack.c.bf16 %v4221_v28, %v4220_v43 }
 0x3af   : > { %5402 = vmatprep.mubr.msk.bf16.mxu1 %vm4369_vm1, %v4253_v40 }
 0x3b0   : > { %4575 = vmatmul.mubr.bf16.gmra.mrb[40].mxu1 %v4252_v6 }
 0x3b5   : > { %v4464_v33 = vpop.f32.mrb[20].mxu0 }
 0x3b6   : > { %v4465_v34 = vadd.f32 %v8624_v3, %v4464_v33  ;;  %v4466_v63 = vpop.f32.mrb[21].mxu0 }
 0x3b7   : > { %v4467_v56 = vpop.f32.mrb[22].mxu0 }
 0x3b8   : > { %v4585_v9 = vmax.f32 %v4465_v34, 0.0  ;;  %v4468_v61 = vadd.f32 %v8624_v3, %v4467_v56  ;;  %v4469_v46 = vpop.f32.mrb[23].mxu0 }
 0x3ba   : > { %v4586_v51 = vmax.f32 %v4468_v61, 0.0  ;;  %v4873_v16 = vrot.slane %v4585_v9, 6  ;;  %v4669_v27 = vsel %vm4632_vm2, %v4585_v9, %v4668_v21  ;;  %v4703_v23 = vrot.slane %v4585_v9, 1 }
 0x3bb   : > { %v4737_v8 = vrot.slane %v4585_v9, 2  ;;  %v4771_v54 = vrot.slane %v4585_v9, 3  ;;  %v4805_v10 = vrot.slane %v4585_v9, 4  ;;  %v4839_v2 = vrot.slane %v4585_v9, 5 }
 0x3bc   : > { %v4874_v32 = vsel %vm4632_vm2, %v4873_v16, %v4872_v42  ;;  %v4704_v4 = vsel %vm4632_vm2, %v4703_v23, %v4702_v0  ;;  %v4922_v25 = vrot.slane %v4586_v51, 7  ;;  %v4957_v39 = vsel %vm4632_vm2, %v4586_v51, %v4956_v30 }
 0x3bd   : > { %v4738_v62 = vsel %vm4632_vm2, %v4737_v8, %v4736_v44  ;;  %v4772_v41 = vsel %vm4632_vm2, %v4771_v54, %v4770_v58  ;;  %v4806_v5 = vsel %vm4632_vm2, %v4805_v10, %v4804_v15  ;;  %v4840_v31 = vsel %vm4632_vm2, %v4839_v2, %v4838_v49 }
 0x3be   : > { %v4923_v13 = vsel %vm4632_vm2, %v4922_v25, %v4584_v18  ;;  %v4991_v22 = vrot.slane %v4586_v51, 1  ;;  %v5025_v37 = vrot.slane %v4586_v51, 2  ;;  %v5059_v7 = vrot.slane %v4586_v51, 3 }
 0x3bf   : > { %v4472_v26 = vpop.f32.mrb[24].mxu0  ;;  %v5093_v52 = vrot.slane %v4586_v51, 4  ;;  %v5127_v20 = vrot.slane %v4586_v51, 5  ;;  %v5161_v12 = vrot.slane %v4586_v51, 6  ;;  %v4631_v24 = vrot.slane %v4585_v9, 7 }
 0x3c0   : > { %v4473_v60 = vadd.f32 %v8624_v3, %v4472_v26  ;;  %v4474_v48 = vpop.f32.mrb[25].mxu0  ;;  %v4992_v19 = vsel %vm4632_vm2, %v4991_v22, %v4990_v47  ;;  %v5026_v53 = vsel %vm4632_vm2, %v5025_v37, %v5024_v45  ;;  %v5060_v17 = vsel %vm4632_vm2, %v5059_v7, %v5058_v59 }
 0x3c1   : > { %v4475_v1 = vpop.f32.mrb[26].mxu0  ;;  %v5094_v14 = vsel %vm4632_vm2, %v5093_v52, %v5092_v38  ;;  %v5128_v57 = vsel %vm4632_vm2, %v5127_v20, %v5126_v50  ;;  %v5162_v35 = vsel %vm4632_vm2, %v5161_v12, %v5160_v36  ;;  %v4633_v43 = vsel %vm4632_vm2, %v4631_v24, %v4583_v29 }
 0x3c2   : > { %v4587_v28 = vmax.f32 %v4473_v60, 0.0  ;;  %v4476_v11 = vadd.f32 %v8624_v3, %v4475_v1  ;;  %v4477_v40 = vpop.f32.mrb[27].mxu0 }
 0x3c4   : > { %v4588_v6 = vmax.f32 %v4476_v11, 0.0  ;;  %v4875_v55 = vrot.slane %v4587_v28, 5  ;;  %v4670_v18 = vrot.slane %v4587_v28, 7  ;;  %v4705_v33 = vsel %vm4635_vm10, %v4587_v28, %v4704_v4 }
 0x3c5   : > { %v4739_v42 = vrot.slane %v4587_v28, 1  ;;  %v4773_v34 = vrot.slane %v4587_v28, 2  ;;  %v4807_v63 = vrot.slane %v4587_v28, 3  ;;  %v4841_v21 = vrot.slane %v4587_v28, 4 }
 0x3c6   : > { %v4876_v0 = vsel %vm4635_vm10, %v4875_v55, %v4874_v32  ;;  %v4671_v44 = vsel %vm4635_vm10, %v4670_v18, %v4669_v27  ;;  %v4924_v56 = vrot.slane %v4588_v6, 6  ;;  %v4958_v58 = vrot.slane %v4588_v6, 7 }
 0x3c7   : > { %v4740_v29 = vsel %vm4635_vm10, %v4739_v42, %v4738_v62  ;;  %v4774_v15 = vsel %vm4635_vm10, %v4773_v34, %v4772_v41  ;;  %v4808_v49 = vsel %vm4635_vm10, %v4807_v63, %v4806_v5  ;;  %v4842_v30 = vsel %vm4635_vm10, %v4841_v21, %v4840_v31 }
 0x3c8   : > { %v4925_v9 = vsel %vm4635_vm10, %v4924_v56, %v4923_v13  ;;  %v4959_v61 = vsel %vm4635_vm10, %v4958_v58, %v4957_v39  ;;  %v4993_v46 = vsel %vm4635_vm10, %v4588_v6, %v4992_v19  ;;  %v5027_v47 = vrot.slane %v4588_v6, 1 }
 0x3c9   : > { %v5061_v45 = vrot.slane %v4588_v6, 2  ;;  %v5095_v59 = vrot.slane %v4588_v6, 3  ;;  %v5129_v38 = vrot.slane %v4588_v6, 4  ;;  %v5163_v36 = vrot.slane %v4588_v6, 5 }
 0x3ca   : > { %v5028_v50 = vsel %vm4635_vm10, %v5027_v47, %v5026_v53  ;;  %v4634_v51 = vrot.slane %v4587_v28, 6 }
 0x3cb   : > { %v5062_v16 = vsel %vm4635_vm10, %v5061_v45, %v5060_v17  ;;  %v5096_v27 = vsel %vm4635_vm10, %v5095_v59, %v5094_v14  ;;  %v5130_v23 = vsel %vm4635_vm10, %v5129_v38, %v5128_v57  ;;  %v5164_v8 = vsel %vm4635_vm10, %v5163_v36, %v5162_v35 }
 0x3cc   : > { %v4636_v54 = vsel %vm4635_vm10, %v4634_v51, %v4633_v43 }
 0x3ce   : > { %v4480_v10 = vpop.f32.mrb[28].mxu0 }
 0x3cf   : > { %v4481_v2 = vadd.f32 %v8624_v3, %v4480_v10  ;;  %v4482_v32 = vpop.f32.mrb[29].mxu0 }
 0x3d0   : > { %v4483_v4 = vpop.f32.mrb[30].mxu0 }
 0x3d1   : > { %v4589_v25 = vmax.f32 %v4481_v2, 0.0  ;;  %v4484_v39 = vadd.f32 %v8624_v3, %v4483_v4  ;;  %v4485_v62 = vpop.f32.mrb[31].mxu0 }
 0x3d3   : > { %v4590_v41 = vmax.f32 %v4484_v39, 0.0  ;;  %v4877_v5 = vrot.slane %v4589_v25, 4  ;;  %v4672_v31 = vrot.slane %v4589_v25, 6  ;;  %v4706_v13 = vrot.slane %v4589_v25, 7 }
 0x3d4   : > { %v8674_v22 = vsel %vm4638_vm11, %v4589_v25, %v4740_v29  ;;  %v4775_v37 = vrot.slane %v4589_v25, 1  ;;  %v4809_v7 = vrot.slane %v4589_v25, 2  ;;  %v4843_v26 = vrot.slane %v4589_v25, 3 }
 0x3d5   : > { %v8677_v52 = vsel %vm4638_vm11, %v4877_v5, %v4876_v0  ;;  %v8680_v20 = vsel %vm4638_vm11, %v4672_v31, %v4671_v44  ;;  %v8683_v12 = vsel %vm4638_vm11, %v4706_v13, %v4705_v33  ;;  %v4926_v24 = vrot.slane %v4590_v41, 5 }
 0x3d6   : > { %v8686_v60 = vsel %vm4638_vm11, %v4775_v37, %v4774_v15  ;;  %v8689_v48 = vsel %vm4638_vm11, %v4809_v7, %v4808_v49  ;;  %v8692_v19 = vsel %vm4638_vm11, %v4843_v26, %v4842_v30  ;;  %v4960_v53 = vrot.slane %v4590_v41, 6 }
 0x3d7   : > { %v8695_v17 = vsel %vm4638_vm11, %v4926_v24, %v4925_v9  ;;  %v4994_v1 = vrot.slane %v4590_v41, 7  ;;  %v8698_v14 = vsel %vm4638_vm11, %v4590_v41, %v5028_v50  ;;  %v5063_v57 = vrot.slane %v4590_v41, 1 }
 0x3d8   : > { %v8701_v35 = vsel %vm4638_vm11, %v4960_v53, %v4959_v61  ;;  %v5097_v43 = vrot.slane %v4590_v41, 2  ;;  %v5131_v40 = vrot.slane %v4590_v41, 3  ;;  %v5165_v6 = vrot.slane %v4590_v41, 4 }
 0x3d9   : > { %v8704_v28 = vsel %vm4638_vm11, %v4994_v1, %v4993_v46  ;;  %v8707_v11 = vsel %vm4638_vm11, %v5063_v57, %v5062_v16  ;;  %v4637_v18 = vrot.slane %v4589_v25, 5 }
 0x3da   : > { %v8710_v55 = vsel %vm4638_vm11, %v5097_v43, %v5096_v27  ;;  %v8713_v33 = vsel %vm4638_vm11, %v5131_v40, %v5130_v23  ;;  %v8716_v42 = vsel %vm4638_vm11, %v5165_v6, %v5164_v8 }
 0x3db   : > { %v8719_v34 = vsel %vm4638_vm11, %v4637_v18, %v4636_v54 }
 0x42f   : > { %v4528_v63 = vpop.f32.mrb[16].mxu1 }
 0x430   : > { %v4530_v21 = vpop.f32.mrb[17].mxu1  ;;  %v4529_v44 = vadd.f32 %v8624_v3, %v4528_v63 }
 0x431   : > { %v4531_v0 = vpop.f32.mrb[18].mxu1 }
 0x432   : > { %v4533_v56 = vpop.f32.mrb[19].mxu1  ;;  %v4532_v58 = vadd.f32 %v8624_v3, %v4531_v0  ;;  %v8723_v29 = vmax.f32 %v4529_v44, 0.0 }
 0x434   : > { %v8725_v15 = vmax.f32 %v4532_v58, 0.0  ;;  %v4717_v30 = vrot.slane %v8723_v29, 1  ;;  %v4751_v9 = vrot.slane %v8723_v29, 2  ;;  %v4785_v61 = vrot.slane %v8723_v29, 3 }
 0x435   : > { %v4819_v59 = vrot.slane %v8723_v29, 4  ;;  %v4853_v38 = vrot.slane %v8723_v29, 5  ;;  %v4887_v50 = vrot.slane %v8723_v29, 6 }
 0x436   : > { %v4936_v27 = vrot.slane %v8725_v15, 7  ;;  %v5005_v23 = vrot.slane %v8725_v15, 1  ;;  %v5039_v8 = vrot.slane %v8725_v15, 2  ;;  %v5073_v4 = vrot.slane %v8725_v15, 3 }
 0x437   : > { %v5107_v25 = vrot.slane %v8725_v15, 4  ;;  %v5141_v5 = vrot.slane %v8725_v15, 5  ;;  %v5175_v31 = vrot.slane %v8725_v15, 6 }
 0x438   : > { %v4488_v49 = vpop.f32.mrb[32].mxu0 }
 0x439   : > { %v4489_v46 = vadd.f32 %v8624_v3, %v4488_v49  ;;  %v4490_v47 = vpop.f32.mrb[33].mxu0 }
 0x43a   : > { %v4491_v36 = vpop.f32.mrb[34].mxu0 }
 0x43b   : > { %v4536_v45 = vpop.f32.mrb[20].mxu1  ;;  %v8738_v54 = vmax.f32 %v4489_v46, 0.0  ;;  %v4492_v10 = vadd.f32 %v8624_v3, %v4491_v36  ;;  %v4493_v2 = vpop.f32.mrb[35].mxu0 }
 0x43c   : > { %v4537_v51 = vadd.f32 %v8624_v3, %v4536_v45  ;;  %v4538_v16 = vpop.f32.mrb[21].mxu1 }
 0x43d   : > { %v4539_v32 = vpop.f32.mrb[22].mxu1  ;;  %v8748_v13 = vmax.f32 %v4492_v10, 0.0  ;;  %v4879_v37 = vrot.slane %v8738_v54, 3  ;;  %v4674_v7 = vrot.slane %v8738_v54, 5  ;;  %v4708_v26 = vrot.slane %v8738_v54, 6 }
 0x43e   : > { %v8743_v39 = vmax.f32 %v4537_v51, 0.0  ;;  %v4540_v62 = vadd.f32 %v8624_v3, %v4539_v32  ;;  %v4541_v41 = vpop.f32.mrb[23].mxu1  ;;  %v4742_v53 = vrot.slane %v8738_v54, 7  ;;  %v4777_v1 = vsel %vm4641_vm12, %v8738_v54, %v8686_v60 }
 0x43f   : > { %v4811_v57 = vrot.slane %v8738_v54, 1  ;;  %v4880_v43 = vsel %vm4641_vm12, %v4879_v37, %v8677_v52  ;;  %v4675_v40 = vsel %vm4641_vm12, %v4674_v7, %v8680_v20  ;;  %v4709_v6 = vsel %vm4641_vm12, %v4708_v26, %v8683_v12 }
 0x440   : > { %v8753_v24 = vmax.f32 %v4540_v62, 0.0  ;;  %v4845_v18 = vrot.slane %v8738_v54, 2  ;;  %v4496_v63 = vpop.f32.mrb[36].mxu0  ;;  %v4743_v21 = vsel %vm4641_vm12, %v4742_v53, %v8674_v22  ;;  %v4928_v0 = vrot.slane %v8748_v13, 4 }
 0x441   : > { %v4812_v60 = vsel %vm4641_vm12, %v4811_v57, %v8689_v48  ;;  %v4962_v44 = vrot.slane %v8748_v13, 5  ;;  %v4497_v52 = vadd.f32 %v8624_v3, %v4496_v63  ;;  %v4498_v56 = vpop.f32.mrb[37].mxu0  ;;  %v4996_v12 = vrot.slane %v8748_v13, 6 }
 0x442   : > { %v4846_v20 = vsel %vm4641_vm12, %v4845_v18, %v8692_v19  ;;  %v5030_v58 = vrot.slane %v8748_v13, 7  ;;  %v4499_v49 = vpop.f32.mrb[38].mxu0  ;;  %v4929_v22 = vsel %vm4641_vm12, %v4928_v0, %v8695_v17  ;;  %v5065_v46 = vsel %vm4641_vm12, %v8748_v13, %v8707_v11 }
 0x443   : > { %v4963_v48 = vsel %vm4641_vm12, %v4962_v44, %v8701_v35  ;;  %v5099_v47 = vrot.slane %v8748_v13, 1  ;;  %v8786_v45 = vmax.f32 %v4497_v52, 0.0  ;;  %v4500_v19 = vadd.f32 %v8624_v3, %v4499_v49  ;;  %v4501_v36 = vpop.f32.mrb[39].mxu0 }
 0x444   : > { %v4997_v51 = vsel %vm4641_vm12, %v4996_v12, %v8704_v28  ;;  %v5031_v17 = vsel %vm4641_vm12, %v5030_v58, %v8698_v14  ;;  %v5133_v16 = vrot.slane %v8748_v13, 2  ;;  %v4684_v11 = vrot.slane %v8743_v39, 7 }
 0x445   : > { %v5100_v35 = vsel %vm4641_vm12, %v5099_v47, %v8710_v55  ;;  %v5167_v10 = vrot.slane %v8748_v13, 3  ;;  %v8798_v2 = vmax.f32 %v4500_v19, 0.0  ;;  %v4881_v32 = vrot.slane %v8786_v45, 2 }
 0x446   : > { %v4676_v62 = vrot.slane %v8786_v45, 4  ;;  %v4710_v28 = vrot.slane %v8786_v45, 5  ;;  %v4744_v14 = vrot.slane %v8786_v45, 6  ;;  %v4778_v41 = vrot.slane %v8786_v45, 7 }
 0x447   : > { %v4813_v55 = vsel %vm4644_vm14, %v8786_v45, %v4812_v60  ;;  %v4847_v37 = vrot.slane %v8786_v45, 1  ;;  %v4882_v7 = vsel %vm4644_vm14, %v4881_v32, %v4880_v43  ;;  %v4930_v53 = vrot.slane %v8798_v2, 3 }
 0x448   : > { %v4677_v13 = vsel %vm4644_vm14, %v4676_v62, %v4675_v40  ;;  %v4711_v26 = vsel %vm4644_vm14, %v4710_v28, %v4709_v6  ;;  %v4504_v57 = vpop.f32.mrb[40].mxu0  ;;  %v4745_v18 = vsel %vm4644_vm14, %v4744_v14, %v4743_v21  ;;  %v4779_v63 = vsel %vm4644_vm14, %v4778_v41, %v4777_v1 }
 0x449   : > { %v4848_v0 = vsel %vm4644_vm14, %v4847_v37, %v4846_v20  ;;  %v4964_v44 = vrot.slane %v8798_v2, 4  ;;  %v4505_v60 = vadd.f32 %v8624_v3, %v4504_v57  ;;  %v4506_v52 = vpop.f32.mrb[41].mxu0  ;;  %v4931_v43 = vsel %vm4644_vm14, %v4930_v53, %v4929_v22 }
 0x44a   : > { %v4998_v40 = vrot.slane %v8798_v2, 5  ;;  %v5032_v6 = vrot.slane %v8798_v2, 6  ;;  %v4507_v56 = vpop.f32.mrb[42].mxu0  ;;  %v5066_v21 = vrot.slane %v8798_v2, 7  ;;  %v8824_v1 = vsel %vm4644_vm14, %v8798_v2, %v5100_v35 }
 0x44b   : > { %v4965_v12 = vsel %vm4644_vm14, %v4964_v44, %v4963_v48  ;;  %v8828_v20 = vsel %vm4641_vm12, %v5133_v16, %v8713_v33  ;;  %v8830_v58 = vmax.f32 %v4505_v60, 0.0  ;;  %v4508_v49 = vadd.f32 %v8624_v3, %v4507_v56  ;;  %v4509_v22 = vpop.f32.mrb[43].mxu0 }
 0x44c   : > { %v4999_v47 = vsel %vm4644_vm14, %v4998_v40, %v4997_v51  ;;  %v5033_v19 = vsel %vm4644_vm14, %v5032_v6, %v5031_v17  ;;  %v5067_v48 = vsel %vm4644_vm14, %v5066_v21, %v5065_v46  ;;  %v5135_v36 = vrot.slane %v8798_v2, 1 }
 0x44d   : > { %v8839_v35 = vsel %vm4641_vm12, %v5167_v10, %v8716_v42  ;;  %v5169_v33 = vrot.slane %v8798_v2, 2  ;;  %v8842_v16 = vmax.f32 %v4508_v49, 0.0  ;;  %v4883_v62 = vrot.slane %v8830_v58, 1 }
 0x44e   : > { %v4678_v28 = vrot.slane %v8830_v58, 3  ;;  %v4712_v51 = vrot.slane %v8830_v58, 4  ;;  %v4746_v14 = vrot.slane %v8830_v58, 5  ;;  %v4780_v41 = vrot.slane %v8830_v58, 6 }
 0x44f   : > { %v4814_v42 = vrot.slane %v8830_v58, 7  ;;  %v4884_v37 = vsel %vm4647_vm6, %v4883_v62, %v4882_v7  ;;  %v4849_v44 = vsel %vm4647_vm6, %v8830_v58, %v4848_v0  ;;  %v4966_v22 = vrot.slane %v8842_v16, 3 }
 0x450   : > { %v4544_v32 = vpop.f32.mrb[24].mxu1  ;;  %v4679_v53 = vsel %vm4647_vm6, %v4678_v28, %v4677_v13  ;;  %v4713_v57 = vsel %vm4647_vm6, %v4712_v51, %v4711_v26  ;;  %v4747_v56 = vsel %vm4647_vm6, %v4746_v14, %v4745_v18  ;;  %v4781_v21 = vsel %vm4647_vm6, %v4780_v41, %v4779_v63 }
 0x451   : > { %v4545_v17 = vadd.f32 %v8624_v3, %v4544_v32  ;;  %v4546_v46 = vpop.f32.mrb[25].mxu1  ;;  %v4815_v13 = vsel %vm4647_vm6, %v4814_v42, %v4813_v55  ;;  %v4932_v26 = vrot.slane %v8842_v16, 2  ;;  %v5000_v62 = vrot.slane %v8842_v16, 4 }
 0x452   : > { %v4547_v10 = vpop.f32.mrb[26].mxu1  ;;  %v5034_v28 = vrot.slane %v8842_v16, 5  ;;  %v5068_v18 = vrot.slane %v8842_v16, 6  ;;  %v4967_v46 = vsel %vm4647_vm6, %v4966_v22, %v4965_v12 }
 0x453   : > { %v8856_v60 = vmax.f32 %v4545_v17, 0.0  ;;  %v4548_v40 = vadd.f32 %v8624_v3, %v4547_v10  ;;  %v4549_v6 = vpop.f32.mrb[27].mxu1  ;;  %v4933_v55 = vsel %vm4647_vm6, %v4932_v26, %v4931_v43  ;;  %v5001_v14 = vsel %vm4647_vm6, %v5000_v62, %v4999_v47 }
 0x454   : > { %v5035_v41 = vsel %vm4647_vm6, %v5034_v28, %v5033_v19  ;;  %v5069_v42 = vsel %vm4647_vm6, %v5068_v18, %v5067_v48  ;;  %v5102_v10 = vrot.slane %v8842_v16, 7 }
 0x455   : > { %v4512_v52 = vpop.f32.mrb[44].mxu0  ;;  %v8865_v0 = vmax.f32 %v4548_v40, 0.0 }
 0x456   : > { %v4513_v49 = vadd.f32 %v8624_v3, %v4512_v52  ;;  %v4514_v7 = vpop.f32.mrb[45].mxu0 }
 0x457   : > { %v4515_v32 = vpop.f32.mrb[46].mxu0 }
 0x458   : > { %v8870_v51 = vmax.f32 %v4513_v49, 0.0  ;;  %v4516_v63 = vadd.f32 %v8624_v3, %v4515_v32  ;;  %v4517_v17 = vpop.f32.mrb[47].mxu0 }
 0x45a   : > { %v8879_v52 = vmax.f32 %v4516_v63, 0.0  ;;  %v4885_v40 = vsel %vm4650_vm7, %v8870_v51, %v4884_v37  ;;  %v4680_v6 = vrot.slane %v8870_v51, 2  ;;  %v4714_v49 = vrot.slane %v8870_v51, 3 }
 0x45b   : > { %4900 = vrot.lane.b32.xlu0 %v4885_v40, %s6643_s8  ;;  %v4748_v43 = vrot.slane %v8870_v51, 4  ;;  %v4782_v12 = vrot.slane %v8870_v51, 5  ;;  %v4816_v47 = vrot.slane %v8870_v51, 6  ;;  %v4850_v19 = vrot.slane %v8870_v51, 7 }
 0x45c   : > { %v4681_v48 = vsel %vm4650_vm7, %v4680_v6, %v4679_v53  ;;  %v4715_v7 = vsel %vm4650_vm7, %v4714_v49, %v4713_v57  ;;  %v4934_v37 = vrot.slane %v8879_v52, 1  ;;  %v4968_v26 = vrot.slane %v8879_v52, 2  ;;  %v4552_v57 = vpop.f32.mrb[28].mxu1 }
 0x45d   : > { %v4520_v22 = vpop.f32.mrb[48].mxu0  ;;  %v4749_v32 = vsel %vm4650_vm7, %v4748_v43, %v4747_v56  ;;  %v8896_v62 = vsel %vm4650_vm7, %v4782_v12, %v4781_v21  ;;  %v8899_v28 = vsel %vm4650_vm7, %v4816_v47, %v4815_v13  ;;  %v8902_v18 = vsel %vm4650_vm7, %v4850_v19, %v4849_v44  ;;  %v4554_v44 = vpop.f32.mrb[29].mxu1 }
 0x45e   : > { %v4521_v53 = vadd.f32 %v8624_v3, %v4520_v22  ;;  %v4522_v63 = vpop.f32.mrb[49].mxu0  ;;  %v8906_v17 = vsel %vm4650_vm7, %v4934_v37, %v4933_v55  ;;  %v8909_v40 = vsel %vm4650_vm7, %v4968_v26, %v4967_v46  ;;  %v5002_v56 = vrot.slane %v8879_v52, 3  ;;  %v4555_v47 = vpop.f32.mrb[30].mxu1 }
 0x45f   : > { %v4523_v21 = vpop.f32.mrb[50].mxu0  ;;  %4696 = vrot.lane.b32.xlu0 %v4681_v48, %s6644_s9  ;;  %v4553_v13 = vadd.f32 %v8624_v3, %v4552_v57  ;;  %v5036_v6 = vrot.slane %v8879_v52, 4  ;;  %v5070_v49 = vrot.slane %v8879_v52, 5  ;;  %v5103_v55 = vsel %vm4647_vm6, %v5102_v10, %v8824_v1  ;;  %v4557_v22 = vpop.f32.mrb[31].mxu1 }
 0x460   : > { %v8918_v43 = vmax.f32 %v4521_v53, 0.0  ;;  %v4524_v46 = vadd.f32 %v8624_v3, %v4523_v21  ;;  %v4525_v12 = vpop.f32.mrb[51].mxu0  ;;  %v8922_v19 = vsel %vm4650_vm7, %v5002_v56, %v5001_v14  ;;  %v5104_v48 = vrot.slane %v8879_v52, 6 }
 0x461   : > { %v8925_v37 = vmax.f32 %v4553_v13, 0.0  ;;  %v4556_v26 = vadd.f32 %v8624_v3, %v4555_v47  ;;  %v8929_v63 = vsel %vm4650_vm7, %v5036_v6, %v5035_v41  ;;  %v8932_v1 = vsel %vm4650_vm7, %v5070_v49, %v5069_v42 }
 0x462   : > { %v8934_v10 = vmax.f32 %v4524_v46, 0.0  ;;  %v8937_v53 = vsel %vm4650_vm7, %v5104_v48, %v5103_v55  ;;  %v5136_v14 = vsel %vm4644_vm14, %v5135_v36, %v8828_v20  ;;  %v5138_v57 = vrot.slane %v8879_v52, 7 }
 0x463   : > { %v8944_v56 = vmax.f32 %v4556_v26, 0.0  ;;  %4730 = vrot.lane.b32.xlu0 %v4715_v7, %s6635_s20  ;;  %v5137_v41 = vsel %vm4647_vm6, %v8842_v16, %v5136_v14  ;;  %v4682_v42 = vrot.slane %v8918_v43, 1  ;;  %v4686_v21 = vrot.slane %v8856_v60, 6 }
 0x464   : > { %v8952_v13 = vsel %vm4650_vm7, %v5138_v57, %v5137_v41  ;;  %v4688_v44 = vrot.slane %v8925_v37, 5  ;;  %v5170_v20 = vsel %vm4644_vm14, %v5169_v33, %v8839_v35  ;;  %v5171_v36 = vrot.slane %v8842_v16, 1 }
 0x465   : > { %v4683_v7 = vsel %vm4632_vm2, %v8723_v29, %v4682_v42  ;;  %v4716_v6 = vrot.slane %v8918_v43, 2  ;;  %v4720_v49 = vrot.slane %v8856_v60, 7  ;;  %v4722_v55 = vrot.slane %v8925_v37, 6 }
 0x466   : > { %v4685_v46 = vsel %vm4635_vm10, %v4684_v11, %v4683_v7  ;;  %v5172_v12 = vsel %vm4647_vm6, %v5171_v36, %v5170_v20  ;;  %v4750_v2 = vrot.slane %v8918_v43, 3  ;;  %v4753_v35 = vrot.slane %v8743_v39, 1 }
 0x467   : > { %4764 = vrot.lane.b32.xlu0 %v4749_v32, %s6639_s13  ;;  %v4687_v33 = vsel %vm4638_vm11, %v4686_v21, %v4685_v46  ;;  %v8975_v16 = vsel %vm4650_vm7, %v8879_v52, %v5172_v12  ;;  %v4718_v47 = vsel %vm4632_vm2, %v4717_v30, %v4716_v6  ;;  %v4756_v11 = vrot.slane %v8925_v37, 7 }
 0x468   : > { %v8982_v48 = vsel %vm4641_vm12, %v4688_v44, %v4687_v33  ;;  %v4719_v26 = vsel %vm4635_vm10, %v8743_v39, %v4718_v47  ;;  %v4752_v32 = vsel %vm4632_vm2, %v4751_v9, %v4750_v2  ;;  %v4784_v22 = vrot.slane %v8918_v43, 4 }
 0x469   : > { %v4721_v52 = vsel %vm4638_vm11, %v4720_v49, %v4719_v26  ;;  %v4754_v14 = vsel %vm4635_vm10, %v4753_v35, %v4752_v32  ;;  %v4787_v30 = vrot.slane %v8743_v39, 2  ;;  %v4789_v57 = vrot.slane %v8856_v60, 1 }
 0x46a   : > { %v8995_v41 = vsel %vm4641_vm12, %v4722_v55, %v4721_v52  ;;  %v4755_v42 = vsel %vm4638_vm11, %v8856_v60, %v4754_v14  ;;  %v4786_v9 = vsel %vm4632_vm2, %v4785_v61, %v4784_v22  ;;  %v4818_v21 = vrot.slane %v8918_v43, 5 }
 0x46b   : > { %4798 = vrot.lane.b32.xlu0 %v8896_v62, %s6629_s18  ;;  %v9006_v44 = vsel %vm4641_vm12, %v4756_v11, %v4755_v42  ;;  %v4788_v20 = vsel %vm4635_vm10, %v4787_v30, %v4786_v9  ;;  %v4821_v36 = vrot.slane %v8743_v39, 3  ;;  %v4823_v7 = vrot.slane %v8856_v60, 2 }
 0x46c   : > { %v4790_v6 = vsel %vm4638_vm11, %v4789_v57, %v4788_v20  ;;  %v4820_v61 = vsel %vm4632_vm2, %v4819_v59, %v4818_v21  ;;  %v4825_v49 = vrot.slane %v8925_v37, 1  ;;  %v4852_v55 = vrot.slane %v8918_v43, 6 }
 0x46d   : > { %v4791_v62 = vsel %vm4641_vm12, %v8925_v37, %v4790_v6  ;;  %v4822_v46 = vsel %vm4635_vm10, %v4821_v36, %v4820_v61  ;;  %v4855_v12 = vrot.slane %v8743_v39, 4  ;;  %v4857_v2 = vrot.slane %v8856_v60, 3 }
 0x46e   : > { %v4824_v35 = vsel %vm4638_vm11, %v4823_v7, %v4822_v46  ;;  %v4854_v33 = vsel %vm4632_vm2, %v4853_v38, %v4852_v55  ;;  %v4859_v59 = vrot.slane %v8925_v37, 2  ;;  %v4886_v47 = vrot.slane %v8918_v43, 7 }
 0x46f   : > { %4832 = vrot.lane.b32.xlu0 %v8899_v28, %s6642_s15  ;;  %v4826_v11 = vsel %vm4641_vm12, %v4825_v49, %v4824_v35  ;;  %v4856_v26 = vsel %vm4635_vm10, %v4855_v12, %v4854_v33  ;;  %v4889_v32 = vrot.slane %v8743_v39, 5  ;;  %v4891_v22 = vrot.slane %v8856_v60, 4  ;;  %v4560_v21 = vpop.f32.mrb[32].mxu1 }
 0x470   : > { %v4858_v52 = vsel %vm4638_vm11, %v4857_v2, %v4856_v26  ;;  %v4888_v38 = vsel %vm4632_vm2, %v4887_v50, %v4886_v47  ;;  %v4893_v14 = vrot.slane %v8925_v37, 3  ;;  %v4937_v28 = vsel %vm4632_vm2, %v4936_v27, %v8934_v10  ;;  %v4562_v6 = vpop.f32.mrb[33].mxu1 }
 0x471   : > { %v4860_v30 = vsel %vm4641_vm12, %v4859_v59, %v4858_v52  ;;  %v4890_v57 = vsel %vm4635_vm10, %v4889_v32, %v4888_v38  ;;  %v4938_v42 = vrot.slane %v8753_v24, 6  ;;  %v4940_v9 = vrot.slane %v8865_v0, 5  ;;  %v4563_v46 = vpop.f32.mrb[34].mxu1 }
 0x472   : > { %v4892_v20 = vsel %vm4638_vm11, %v4891_v22, %v4890_v57  ;;  %v4942_v50 = vrot.slane %v8944_v56, 4  ;;  %v4970_v36 = vrot.slane %v8934_v10, 1  ;;  %v4972_v7 = vrot.slane %v8753_v24, 7  ;;  %v4565_v47 = vpop.f32.mrb[35].mxu1 }
 0x473   : > { %4866 = vrot.lane.b32.xlu0 %v8902_v18, %s6633_s19  ;;  %v4561_v27 = vadd.f32 %v8624_v3, %v4560_v21  ;;  %v4894_v61 = vsel %vm4641_vm12, %v4893_v14, %v4892_v20  ;;  %v4939_v49 = vsel %vm4635_vm10, %v4938_v42, %v4937_v28  ;;  %v4974_v55 = vrot.slane %v8865_v0, 6 }
 0x474   : > { %v4941_v12 = vsel %vm4638_vm11, %v4940_v9, %v4939_v49  ;;  %v4971_v2 = vsel %vm4632_vm2, %v8725_v15, %v4970_v36  ;;  %v4976_v35 = vrot.slane %v8944_v56, 5  ;;  %v5004_v33 = vrot.slane %v8934_v10, 2 }
 0x475   : > { %v9062_v18 = vmax.f32 %v4561_v27, 0.0  ;;  %v4564_v59 = vadd.f32 %v8624_v3, %v4563_v46  ;;  %v4943_v26 = vsel %vm4641_vm12, %v4942_v50, %v4941_v12  ;;  %v4973_v32 = vsel %vm4635_vm10, %v4972_v7, %v4971_v2 }
 0x476   : > { %v4975_v22 = vsel %vm4638_vm11, %v4974_v55, %v4973_v32  ;;  %v5006_v52 = vsel %vm4632_vm2, %v5005_v23, %v5004_v33  ;;  %v5008_v38 = vrot.slane %v8865_v0, 7  ;;  %v5010_v14 = vrot.slane %v8944_v56, 6 }
 0x477   : > { %v9073_v28 = vmax.f32 %v4564_v59, 0.0  ;;  %4950 = vrot.lane.b32.xlu0 %v8906_v17, %s6636_s21  ;;  %v4690_v57 = vrot.slane %v9062_v18, 4  ;;  %v4724_v42 = vrot.slane %v9062_v18, 5  ;;  %v4758_v9 = vrot.slane %v9062_v18, 6 }
 0x478   : > { %v4792_v21 = vrot.slane %v9062_v18, 7  ;;  %v9083_v23 = vsel %vm4644_vm14, %v9062_v18, %v4826_v11  ;;  %v4861_v20 = vrot.slane %v9062_v18, 1  ;;  %v4895_v50 = vrot.slane %v9062_v18, 2 }
 0x479   : > { %v4691_v36 = vsel %vm4644_vm14, %v4690_v57, %v8982_v48  ;;  %v4725_v17 = vsel %vm4644_vm14, %v4724_v42, %v8995_v41  ;;  %v4759_v7 = vsel %vm4644_vm14, %v4758_v9, %v9006_v44  ;;  %v4944_v27 = vrot.slane %v9073_v28, 3 }
 0x47a   : > { %v4793_v6 = vsel %vm4644_vm14, %v4792_v21, %v4791_v62  ;;  %v4862_v11 = vsel %vm4644_vm14, %v4861_v20, %v4860_v30  ;;  %v4896_v49 = vsel %vm4644_vm14, %v4895_v50, %v4894_v61  ;;  %v4977_v55 = vsel %vm4641_vm12, %v4976_v35, %v4975_v22 }
 0x47b   : > { %4984 = vrot.lane.b32.xlu0 %v8909_v40, %s6640_s29  ;;  %v4945_v48 = vsel %vm4644_vm14, %v4944_v27, %v4943_v26  ;;  %v4978_v41 = vrot.slane %v9073_v28, 4  ;;  %v5007_v44 = vsel %vm4635_vm10, %v8753_v24, %v5006_v52  ;;  %v5012_v46 = vrot.slane %v9073_v28, 5  ;;  %v4568_v59 = vpop.f32.mrb[36].mxu1 }
 0x47c   : > { %v5009_v62 = vsel %vm4638_vm11, %v5008_v38, %v5007_v44  ;;  %v5038_v30 = vrot.slane %v8934_v10, 3  ;;  %v5041_v61 = vrot.slane %v8753_v24, 1  ;;  %v5044_v12 = vrot.slane %v8944_v56, 7  ;;  %v4570_v38 = vpop.f32.mrb[37].mxu1 }
 0x47d   : > { %v4979_v2 = vsel %vm4644_vm14, %v4978_v41, %v4977_v55  ;;  %v5011_v40 = vsel %vm4641_vm12, %v5010_v14, %v5009_v62  ;;  %v5046_v35 = vrot.slane %v9073_v28, 6  ;;  %v5072_v33 = vrot.slane %v8934_v10, 4  ;;  %v4571_v9 = vpop.f32.mrb[38].mxu1 }
 0x47e   : > { %v5013_v47 = vsel %vm4644_vm14, %v5012_v46, %v5011_v40  ;;  %v5040_v26 = vsel %vm4632_vm2, %v5039_v8, %v5038_v30  ;;  %v5075_v32 = vrot.slane %v8753_v24, 2  ;;  %v5077_v22 = vrot.slane %v8865_v0, 1  ;;  %v4573_v55 = vpop.f32.mrb[39].mxu1 }
 0x47f   : > { %5018 = vrot.lane.b32.xlu0 %v8922_v19, %s9420_s23  ;;  %v4569_v52 = vadd.f32 %v8624_v3, %v4568_v59  ;;  %v5042_v14 = vsel %vm4635_vm10, %v5041_v61, %v5040_v26  ;;  %v5074_v57 = vsel %vm4632_vm2, %v5073_v4, %v5072_v33  ;;  %v5080_v42 = vrot.slane %v9073_v28, 7  ;;  %s6646_s23 = smov 104  }
 0x480   : > { %v5043_v8 = vsel %vm4638_vm11, %v8865_v0, %v5042_v14  ;;  %v5076_v21 = vsel %vm4635_vm10, %v5075_v32, %v5074_v57  ;;  %v5106_v20 = vrot.slane %v8934_v10, 5  ;;  %v5109_v19 = vrot.slane %v8753_v24, 3 }
 0x481   : > { %v9132_v50 = vmax.f32 %v4569_v52, 0.0  ;;  %v4572_v27 = vadd.f32 %v8624_v3, %v4571_v9  ;;  %v5045_v41 = vsel %vm4641_vm12, %v5044_v12, %v5043_v8  ;;  %v5078_v4 = vsel %vm4638_vm11, %v5077_v22, %v5076_v21 }
 0x482   : > { %v5047_v44 = vsel %vm4644_vm14, %v5046_v35, %v5045_v41  ;;  %v5079_v46 = vsel %vm4641_vm12, %v8944_v56, %v5078_v4  ;;  %v5108_v62 = vsel %vm4632_vm2, %v5107_v25, %v5106_v20  ;;  %v5111_v30 = vrot.slane %v8865_v0, 2 }
 0x483   : > { %v9144_v61 = vmax.f32 %v4572_v27, 0.0  ;;  %5052 = vrot.lane.b32.xlu0 %v8929_v63, %s9419_s16  ;;  %v4692_v12 = vrot.slane %v9132_v50, 3  ;;  %v4726_v40 = vrot.slane %v9132_v50, 4  ;;  %v4760_v35 = vrot.slane %v9132_v50, 5  ;;  %v4576_v38 = vpop.f32.mrb[40].mxu1  ;;  %s6647_s16 = smov [#allocation4]  }
 0x484   : > { %v4794_v33 = vrot.slane %v9132_v50, 6  ;;  %v4828_v59 = vrot.slane %v9132_v50, 7  ;;  %v4863_v25 = vsel %vm4647_vm6, %v9132_v50, %v4862_v11  ;;  %v4897_v26 = vrot.slane %v9132_v50, 1 }
 0x485   : > { %v4693_v32 = vsel %vm4647_vm6, %v4692_v12, %v4691_v36  ;;  %v4727_v22 = vsel %vm4647_vm6, %v4726_v40, %v4725_v17  ;;  %v4761_v63 = vsel %vm4647_vm6, %v4760_v35, %v4759_v7  ;;  %v4946_v52 = vrot.slane %v9144_v61, 2  ;;  %v4578_v17 = vpop.f32.mrb[41].mxu1 }
 0x486   : > { %v4795_v14 = vsel %vm4647_vm6, %v4794_v33, %v4793_v6  ;;  %v4829_v57 = vsel %vm4647_vm6, %v4828_v59, %v9083_v23  ;;  %v4898_v9 = vsel %vm4647_vm6, %v4897_v26, %v4896_v49  ;;  %v4980_v11 = vrot.slane %v9144_v61, 3  ;;  %v4579_v6 = vpop.f32.mrb[42].mxu1 }
 0x487   : > { %5086 = vrot.lane.b32.xlu0 %v8932_v1, %s9418_s17  ;;  %v4577_v36 = vadd.f32 %v8624_v3, %v4576_v38  ;;  %v4947_v7 = vsel %vm4647_vm6, %v4946_v52, %v4945_v48  ;;  %v5014_v8 = vrot.slane %v9144_v61, 4  ;;  %v5048_v21 = vrot.slane %v9144_v61, 5  ;;  %v6563_v3 = vld [vmem:[%s9403_s6] ss:$0 sm:$0xff]  ;;  %v4581_v48 = vpop.f32.mrb[43].mxu1  ;;  %s9457_s17 = smov 88  }
 0x488   : > { %v4981_v20 = vsel %vm4647_vm6, %v4980_v11, %v4979_v2  ;;  %v5081_v23 = vsel %vm4644_vm14, %v5080_v42, %v5079_v46  ;;  %v5082_v49 = vrot.slane %v9144_v61, 6  ;;  %v5110_v27 = vsel %vm4635_vm10, %v5109_v19, %v5108_v62 }
 0x489   : > { %v9175_v55 = vmax.f32 %v4577_v36, 0.0  ;;  %v4580_v1 = vadd.f32 %v6563_v3, %v4579_v6  ;;  %v5015_v41 = vsel %vm4647_vm6, %v5014_v8, %v5013_v47  ;;  %v5049_v4 = vsel %vm4647_vm6, %v5048_v21, %v5047_v44 }
 0x48a   : > { %v5083_v2 = vsel %vm4647_vm6, %v5082_v49, %v5081_v23  ;;  %v5112_v42 = vsel %vm4638_vm11, %v5111_v30, %v5110_v27  ;;  %v5113_v46 = vrot.slane %v8944_v56, 1  ;;  %v5116_v19 = vrot.slane %v9144_v61, 7 }
 0x48b   : > { %v9186_v62 = vmax.f32 %v4580_v1, 0.0  ;;  %5120 = vrot.lane.b32.xlu0 %v8937_v53, %s6646_s23  ;;  %v4694_v12 = vrot.slane %v9175_v55, 2  ;;  %v4728_v47 = vrot.slane %v9175_v55, 3  ;;  %v4762_v44 = vrot.slane %v9175_v55, 4 }
 0x48c   : > { %v4796_v40 = vrot.slane %v9175_v55, 5  ;;  %v4830_v30 = vrot.slane %v9175_v55, 6  ;;  %v4864_v35 = vrot.slane %v9175_v55, 7  ;;  %v9198_v33 = vsel %vm4650_vm7, %v9175_v55, %v4898_v9 }
 0x48d   : > { %v4695_v59 = vsel %vm4650_vm7, %v4694_v12, %v4693_v32  ;;  %v4729_v53 = vsel %vm4650_vm7, %v4728_v47, %v4727_v22  ;;  %v4763_v26 = vsel %vm4650_vm7, %v4762_v44, %v4761_v63  ;;  %v4948_v52 = vrot.slane %v9186_v62, 1 }
 0x48e   : > { %4698 = vrot.lane.b32.xlu1 %v4695_v59, %s6644_s9  ;;  %v4797_v38 = vsel %vm4650_vm7, %v4796_v40, %v4795_v14  ;;  %v4831_v11 = vsel %vm4650_vm7, %v4830_v30, %v4829_v57  ;;  %v9208_v36 = vsel %vm4650_vm7, %v4864_v35, %v4863_v25  ;;  %v4982_v9 = vrot.slane %v9186_v62, 2 }
 0x48f   : > { %5154 = vrot.lane.b32.xlu0 %v8952_v13, %s6637_s22  ;;  %v9214_v32 = vsel %vm4650_vm7, %v4948_v52, %v4947_v7  ;;  %v5016_v22 = vrot.slane %v9186_v62, 3  ;;  %v5050_v63 = vrot.slane %v9186_v62, 4  ;;  %v5084_v17 = vrot.slane %v9186_v62, 5 }
 0x490   : > { %v9220_v14 = vsel %vm4650_vm7, %v4982_v9, %v4981_v20  ;;  %v5114_v25 = vsel %vm4641_vm12, %v5113_v46, %v5112_v42  ;;  %v5118_v57 = vrot.slane %v9186_v62, 6  ;;  %v5140_v8 = vrot.slane %v8934_v10, 6 }
 0x491   : > { %v5017_v13 = vsel %vm4650_vm7, %v5016_v22, %v5015_v41  ;;  %v5051_v7 = vsel %vm4650_vm7, %v5050_v63, %v5049_v4  ;;  %v5085_v21 = vsel %vm4650_vm7, %v5084_v17, %v5083_v2  ;;  %v5115_v6 = vsel %vm4644_vm14, %v9073_v28, %v5114_v25 }
 0x492   : > { %4732 = vrot.lane.b32.xlu1 %v4729_v53, %s6635_s20  ;;  %v5117_v20 = vsel %vm4647_vm6, %v5116_v19, %v5115_v6  ;;  %v5142_v23 = vsel %vm4632_vm2, %v5141_v5, %v5140_v8  ;;  %v5143_v49 = vrot.slane %v8753_v24, 4  ;;  %v5145_v27 = vrot.slane %v8865_v0, 3  ;;  %s9458_s20 = smov 96  }
 0x493   : > { %5188 = vrot.lane.b32.xlu0 %v8975_v16, %s6641_s14  ;;  %v5119_v3 = vsel %vm4650_vm7, %v5118_v57, %v5117_v20  ;;  %v5147_v1 = vrot.slane %v8944_v56, 2  ;;  %v5149_v48 = vrot.slane %v9073_v28, 1  ;;  %v5152_v41 = vrot.slane %v9186_v62, 7 }
 0x494   : > { %v5144_v4 = vsel %vm4635_vm10, %v5143_v49, %v5142_v23  ;;  %v5174_v2 = vrot.slane %v8934_v10, 7  ;;  %v5177_v5 = vrot.slane %v8753_v24, 5  ;;  %v5179_v42 = vrot.slane %v8865_v0, 4 }
 0x495   : > { %v5146_v46 = vsel %vm4638_vm11, %v5145_v27, %v5144_v4  ;;  %v5181_v16 = vrot.slane %v8944_v56, 3  ;;  %v5183_v19 = vrot.slane %v9073_v28, 2  ;;  %v5185_v12 = vrot.slane %v9144_v61, 1 }
 0x496   : > { %4766 = vrot.lane.b32.xlu1 %v4763_v26, %s6639_s13  ;;  %v5148_v47 = vsel %vm4641_vm12, %v5147_v1, %v5146_v46  ;;  %v5176_v10 = vsel %vm4632_vm2, %v5175_v31, %v5174_v2  ;;  %v4640_v24 = vrot.slane %v8738_v54, 4  ;;  %v4643_v0 = vrot.slane %v8786_v45, 3  ;;  %s5411_s13 = sshll.u32 %s6710_s28, 8 }
 0x497   : > { %v5150_v44 = vsel %vm4644_vm14, %v5149_v48, %v5148_v47  ;;  %v5178_v56 = vsel %vm4635_vm10, %v5177_v5, %v5176_v10  ;;  %v4646_v28 = vrot.slane %v8830_v58, 2  ;;  %v4649_v40 = vrot.slane %v8870_v51, 1 }
 0x498   : > { %v5151_v30 = vsel %vm4647_vm6, %v9144_v61, %v5150_v44  ;;  %v5180_v35 = vsel %vm4638_vm11, %v5179_v42, %v5178_v56  ;;  %v4642_v15 = vsel %vm4641_vm12, %v4640_v24, %v8719_v34  ;;  %v4652_v53 = vrot.slane %v8723_v29, 7 }
 0x499   : > { %v5153_v54 = vsel %vm4650_vm7, %v5152_v41, %v5151_v30  ;;  %v5182_v31 = vsel %vm4641_vm12, %v5181_v16, %v5180_v35  ;;  %v4645_v45 = vsel %vm4644_vm14, %v4643_v0, %v4642_v15  ;;  %v4654_v26 = vrot.slane %v8743_v39, 6 }
 0x49a   : > { %4800 = vrot.lane.b32.xlu1 %v4797_v38, %s6629_s18  ;;  %v5184_v58 = vsel %vm4644_vm14, %v5183_v19, %v5182_v31  ;;  %v4648_v51 = vsel %vm4647_vm6, %v4646_v28, %v4645_v45  ;;  %v4658_v52 = vrot.slane %v8925_v37, 4  ;;  %v4656_v9 = vrot.slane %v8856_v60, 5  ;;  %s9456_s18 = smov 80  }
 0x49b   : > { %v5186_v59 = vsel %vm4647_vm6, %v5185_v12, %v5184_v58  ;;  %v4651_v61 = vsel %vm4650_vm7, %v4649_v40, %v4648_v51  ;;  %v4660_v38 = vrot.slane %v9062_v18, 3  ;;  %v4653_v22 = vsel %vm4632_vm2, %v4652_v53, %v8918_v43 }
 0x49c   : > { %v5187_v34 = vsel %vm4650_vm7, %v9186_v62, %v5186_v59  ;;  %v4662_v63 = vrot.slane %v9132_v50, 2  ;;  %v4655_v29 = vsel %vm4635_vm10, %v4654_v26, %v4653_v22  ;;  %v4664_v17 = vrot.slane %v9175_v55, 1 }
 0x49d   : > { %v4657_v62 = vsel %vm4638_vm11, %v4656_v9, %v4655_v29  ;;  %vm9459_vm2 = vcmask 785408   ;;  %vm9460_vm10 = vcmask 916480   ;;  %vm9461_vm11 = vcmask 982016  }
 0x49e   : > { %4834 = vrot.lane.b32.xlu1 %v4831_v11, %s6642_s15  ;;  %v4659_v39 = vsel %vm4641_vm12, %v4658_v52, %v4657_v62  ;;  %s9349_s15 = scalar_lea.hbm %s9404_s7, %s5411_s13 }
 0x49f   : > { %v4661_v37 = vsel %vm4644_vm14, %v4660_v38, %v4659_v39  ;;  %vm5220_vm14 = vcmask 850944  }
 0x4a0   : > { %v4663_v60 = vsel %vm4647_vm6, %v4662_v63, %v4661_v37  ;;  %vm5194_vm6 = vcmask 64512  }
 0x4a1   : > { %v4665_v43 = vsel %vm4650_vm7, %v4664_v17, %v4663_v60  ;;  %vm5207_vm7 = vcmask 457728  }
 0x4a2   : > { %4868 = vrot.lane.b32.xlu1 %v9208_v36, %s6633_s19  ;;  %s299_s19 = sand.u32 1, %s6618_s25  }
 0x4a3   : > { %s9355_s28 = scalar_lea.sflag [#allocation5], %s299_s19 }
 0x4a6   : > { %4902 = vrot.lane.b32.xlu1 %v9198_v33, %s6643_s8 }
 0x4aa   : > { %4952 = vrot.lane.b32.xlu1 %v9214_v32, %s6636_s21  ;;  %s5333_s21 = sshll.u32 %s299_s19, 4 }
 0x4ae   : > { %4986 = vrot.lane.b32.xlu1 %v9220_v14, %s6640_s29 }
 0x4b2   : > { %5020 = vrot.lane.b32.xlu1 %v5017_v13, %s9456_s18  ;;  %s6568_s18 = sshll.u32 %s6647_s16, 4  ;;  %s6569_s18 = int_to_ptr.vmem [resolvable:$false] %s6568_s18 }
 0x4b6   : > { %5054 = vrot.lane.b32.xlu1 %v5051_v7, %s9457_s17  ;;  %s6570_s17 = scalar_lea.vmem %s6569_s18, 512 }
 0x4ba   : > { %5088 = vrot.lane.b32.xlu1 %v5085_v21, %s9458_s20 }
 0x4be   : > { %5122 = vrot.lane.b32.xlu1 %v5119_v3, %s6646_s23 }
 0x4c2   : > { %5156 = vrot.lane.b32.xlu1 %v5153_v54, %s6637_s22  ;;  %s9325_s22 = scalar_lea.vmem [#allocation4], %s5333_s21 }
 0x4c3   : > { %s5243_s23 = sshll.u32 %s9325_s22, 4  ;;  %s9342_s23 = int_to_ptr.vmem [resolvable:$true] %s5243_s23 }
 0x4c4   : > { %s6564_s8 = scalar_lea.vmem %s9342_s23, 256  ;;  %p6571_p0 = scmp.lt.s32.totalorder %s9342_s23, %s6569_s18 }
 0x4c5   : > { %p6565_p11 = scmp.ne.s32.totalorder %s9342_s23, %s6564_s8  ;;  %p6572_p1 = scmp.lt.s32.totalorder %s6570_s17, %s6564_s8 }
 0x4c6   : > { %5190 = vrot.lane.b32.xlu1 %v5187_v34, %s6641_s14 }
 0x4c7   : > { %p6566_p12 = pnand %p6565_p11, %p6727_p5  ;;  %p6573_p2 = por %p6572_p1, %p6571_p0 }
 0x4c9   : > { %p6567_p13 = pneg %p6566_p12 }
 0x4cb   : > { %p6574_p3 = pnand %p6573_p2, %p6567_p13 }
 0x4cd   : > { %v4901_v18 = vpop.permute.xlu0 %4900 }
 0x4d1   : > { %v4697_v50 = vpop.permute.xlu0 %4696 }
 0x4d2   : > { %v5195_v13 = vsel %vm5194_vm6, %v4651_v61, %v4697_v50 }
 0x4d5   : > { %v4731_v55 = vpop.permute.xlu0 %4730 }
 0x4d6   : > { %v5197_v7 = vsel %vm970_vm4, %v5195_v13, %v4731_v55 }
 0x4d9   : > { %v4765_v33 = vpop.permute.xlu0 %4764 }
 0x4da   : > { %v5199_v21 = vsel %vm2571_vm9, %v5197_v7, %v4765_v33 }
 0x4dd   : > { %v4799_v11 = vpop.permute.xlu0 %4798 }
 0x4de   : > { %v5201_v6 = vsel %vm610_vm3, %v5199_v21, %v4799_v11 }
 0x4e1   : > { %v4833_v36 = vpop.permute.xlu0 %4832 }
 0x4e2   : > { %v5203_v23 = vsel %vm4157_vm15, %v5201_v6, %v4833_v36 }
 0x4e5   : > { %v4867_v32 = vpop.permute.xlu0 %4866 }
 0x4e6   : > { %v5205_v49 = vsel %vm619_vm0, %v5203_v23, %v4867_v32 }
 0x4e7   : > { %v5208_v3 = vsel %vm5207_vm7, %v5205_v49, %v4901_v18 }
 0x4e9   : > { %v4951_v14 = vpop.permute.xlu0 %4950 }
 0x4ea   : > { %v5210_v1 = vsel %vm979_vm5, %v5208_v3, %v4951_v14 }
 0x4ed   : > { %v4985_v25 = vpop.permute.xlu0 %4984 }
 0x4ee   : > { %v5212_v48 = vsel %vm4027_vm13, %v5210_v1, %v4985_v25 }
 0x4f1   : > { %v5019_v57 = vpop.permute.xlu0 %5018 }
 0x4f2   : > { %v5214_v4 = vsel %vm1005_vm8, %v5212_v48, %v5019_v57 }
 0x4f5   : > { %v5053_v8 = vpop.permute.xlu0 %5052 }
 0x4f6   : > { %v5216_v5 = vsel %vm4369_vm1, %v5214_v4, %v5053_v8 }
 0x4f9   : > { %v5087_v20 = vpop.permute.xlu0 %5086 }
 0x4fa   : > { %v5218_v42 = vsel %vm9459_vm2, %v5216_v5, %v5087_v20 }
 0x4fd   : > { %v5121_v27 = vpop.permute.xlu0 %5120 }
 0x4fe   : > { %v5221_v46 = vsel %vm5220_vm14, %v5218_v42, %v5121_v27 }
 0x500   : > { %v4699_v41 = vpop.permute.xlu1 %4698 }
 0x501   : > { %v5155_v2 = vpop.permute.xlu0 %5154  ;;  %v5196_v15 = vsel %vm5194_vm6, %v4665_v43, %v4699_v41 }
 0x502   : > { %v5223_v19 = vsel %vm9460_vm10, %v5221_v46, %v5155_v2 }
 0x504   : > { %v4733_v16 = vpop.permute.xlu1 %4732 }
 0x505   : > { %v5189_v12 = vpop.permute.xlu0 %5188  ;;  %v5198_v54 = vsel %vm970_vm4, %v5196_v15, %v4733_v16  ;;  %vm9464_vm4 = vmmov %vm9461_vm11 }
 0x506   : > { %v5225_v47 = vsel %vm9461_vm11, %v5223_v19, %v5189_v12 }
 0x507   : > { %5227 = vst [vmem:[%s9325_s22] sm:$0xff] %v5225_v47 }
 0x508   : > { %v4767_v10 = vpop.permute.xlu1 %4766 }
 0x509   : > { %v5200_v45 = vsel %vm2571_vm9, %v5198_v54, %v4767_v10 }
 0x50c   : > { %v4801_v24 = vpop.permute.xlu1 %4800 }
 0x50d   : > { %v5202_v58 = vsel %vm610_vm3, %v5200_v45, %v4801_v24  ;;  %vm9462_vm3 = vmmov %vm9459_vm2 }
 0x510   : > { %v4835_v0 = vpop.permute.xlu1 %4834 }
 0x511   : > { %v5204_v51 = vsel %vm4157_vm15, %v5202_v58, %v4835_v0 }
 0x514   : > { %v4869_v44 = vpop.permute.xlu1 %4868 }
 0x515   : > { %v5206_v59 = vsel %vm619_vm0, %v5204_v51, %v4869_v44  ;;  %vm9463_vm0 = vmmov %vm9460_vm10 }
 0x518   : > { %v4903_v56 = vpop.permute.xlu1 %4902 }
 0x519   : > { %v5209_v53 = vsel %vm5207_vm7, %v5206_v59, %v4903_v56 }
 0x51c   : > { %v4953_v28 = vpop.permute.xlu1 %4952 }
 0x51d   : > { %v5211_v34 = vsel %vm979_vm5, %v5209_v53, %v4953_v28 }
 0x520   : > { %v4987_v40 = vpop.permute.xlu1 %4986 }
 0x521   : > { %v5213_v26 = vsel %vm4027_vm13, %v5211_v34, %v4987_v40 }
 0x524   : > { %v5021_v30 = vpop.permute.xlu1 %5020 }
 0x525   : > { %v5215_v52 = vsel %vm1005_vm8, %v5213_v26, %v5021_v30 }
 0x528   : > { %v5055_v35 = vpop.permute.xlu1 %5054 }
 0x529   : > { %v5217_v38 = vsel %vm4369_vm1, %v5215_v52, %v5055_v35 }
 0x52c   : > { %v5089_v31 = vpop.permute.xlu1 %5088 }
 0x52d   : > { %v5219_v22 = vsel %vm9462_vm3, %v5217_v38, %v5089_v31 }
 0x530   : > { %v5123_v61 = vpop.permute.xlu1 %5122 }
 0x531   : > { %v5222_v63 = vsel %vm5220_vm14, %v5219_v22, %v5123_v61 }
 0x534   : > { %v5157_v9 = vpop.permute.xlu1 %5156 }
 0x535   : > { %v5224_v29 = vsel %vm9463_vm0, %v5222_v63, %v5157_v9 }
 0x538   : > { %v5191_v17 = vpop.permute.xlu1 %5190 }
 0x539   : > { %v5226_v62 = vsel %vm9464_vm4, %v5224_v29, %v5191_v17 }
 0x53a   : > { %5228 = vst [vmem:[%s9325_s22 + $0x8] sm:$0xff] %v5226_v62 }
 0x53b   : > { %6577 = shalt.err (!%p6574_p3)
}
 0x53c   : > { %s6578_s20 = scalar_lea.hbm %s9349_s15, 256  ;;  %s6582_s22 = scalar_lea.hbm %s9404_s7, 512 }
 0x53d   : > { %p6579_p4 = scmp.ne.s32.totalorder %s9349_s15, %s6578_s20  ;;  %p6583_p9 = scmp.lt.u32.totalorder %s9349_s15, %s9404_s7 }
 0x53e   : > { %p6584_p10 = scmp.lt.u32.totalorder %s6582_s22, %s6578_s20  ;;  %p6586_p12 = scmp.lt.u32.totalorder %s6578_s20, %s9349_s15 }
 0x53f   : > { %p6580_p7 = pnand %p6579_p4, %p6727_p5 }
 0x540   : > { %p6585_p11 = por %p6584_p10, %p6583_p9 }
 0x541   : > { %p6581_p8 = pneg %p6580_p7 }
 0x542   : > { %p6587_p13 = por %p6586_p12, %p6585_p11 }
 0x544   : > { %p6588_p0 = pnand %p6587_p13, %p6581_p8 }
 0x546   : > { %6591 = shalt.err (!%p6588_p0)
}
 0x547   : > { %s6648_s14 = smov 128  }
 0x548   : > { %5578 = dma.vmem_to_hbm [thread:$0]  (%p6727_p5), %s9342_s23, 256, %s9349_s15, %s9355_s28, %s6648_s14, %s6648_s14, %s6644_s9  }
 0x549 PF: > { %p5584_p1 = scmp.ge.s32.totalorder %s6626_s27, 2  ;;  %s5258_s8 = sand.u32 1, %s6614_s24  }
 0x54a   : > { %s5259_s16 = scalar_lea.sflag [#allocation5], %s5258_s8 }
 0x54b   : > { %p5581_p2 = pnand %p5584_p1, %p6731_p6 }
 0x54d   : > { %6609 = dma.done.wait (!%p5581_p2), %s5259_s16, 256  }
 0x54e   : > { %6611 = vsyncadd (!%p5581_p2), %s5259_s16, 4294967040  ;;  %p17_p3 = scmp.ge.s32.totalorder %s6714_s30, 4   ;;  %s9465_s24 = smov %s6618_s25 }
 0x54f   : > { %s9466_s25 = smov %s6622_s26  ;;  %s9467_s26 = smov %s6725_s10 }
 0x550   : > { %s9468_s27 = smov %s6714_s30  ;;  %19 = sbr.rel (!%p17_p3) target bundleno = 3 (0x3), region = 95 }
 0x557   :  { %5264 = vsyncpa [#allocation5], 1 }
 0x558   :  { %5266 = vsyncpa [#allocation5 + $0x1], 1 }

</bundles_post_ra>
